<compile_context>
chip_gen: v7x
topology: tpu7x:2x2x1
jax: 0.10.0
libtpu: 0.0.40
codegen_flags: <defaults>
</compile_context>

<pallas_src>
import functools

import jax
import jax.numpy as jnp
from jax.experimental import pallas as pl
from jax.experimental.pallas import tpu as pltpu


def _round_up(x, m):
    return (x + m - 1) // m * m


# ----------------------------------------------------------------------------- hw caps
def _tpu_caps():
    """Returns (physical VMEM bytes, bf16-VPU available) with conservative fallbacks."""
    kind = ""
    try:
        kind = jax.devices()[0].device_kind.lower()
    except Exception:
        pass
    try:
        cap = int(pltpu.get_tpu_info().vmem_capacity_bytes)
    except Exception:
        if "v7" in kind:
            cap = 64 * 1024 * 1024
        elif kind:
            cap = 128 * 1024 * 1024          # v5e / v6e physical VMEM
        else:
            cap = 64 * 1024 * 1024           # unknown: be conservative
    bf16_vpu = ("v6" in kind) or ("v7" in kind)   # v5e has no bf16 VALUs
    return cap, bf16_vpu


def _choose_images_per_block(N, per_image_bytes, budget_bytes):
    target = max(1, budget_bytes // max(per_image_bytes, 1))
    if N >= 2:
        # keep >= 2 parallel grid steps so dual-TC chips (v7x) shard the batch
        target = min(target, N // 2)
    target = int(max(1, min(target, N)))
    nb = 1
    for d in range(1, N + 1):
        if N % d == 0 and d <= target:
            nb = d
    return nb


# ----------------------------------------------------------------------------- kernel
def _mbconv_se_kernel(
    x_ref,        # (Cin,  I)    f32   I = Nb*R*Wr, lane-aligned layout
    mask_ref,     # (1,    I)    f32   1 at real pixels, 0 at pad rows/cols
    scales_ref,   # (Cmax, 10)   f32   packed BN scales/biases + SE biases
    w_exp_ref,    # (Chid, Cin)  bf16
    w_dw_ref,     # (Chid, K*K)  tap dtype
    w_proj_ref,   # (Cout, Chid) bf16
    w_se1_ref,    # (Cmid, Cout) f32
    w_se2_ref,    # (Cout, Cmid) f32
    o_ref,        # (Cout, I)    f32
    big_ref,      # VMEM (Chid, L) tap dtype  -- zero-haloed depthwise buffer
    shift_ref,    # VMEM (Chid, S) tap dtype  -- one dx-shifted view, reused over dy
    *, Wr, R, K, Nb, residual, align, inv_hw,
):
    Cin = x_ref.shape[0]
    Chid = w_exp_ref.shape[0]
    Cout = w_proj_ref.shape[0]
    Cmid = w_se1_ref.shape[0]
    p = K // 2
    I1 = R * Wr
    I = Nb * I1
    L = big_ref.shape[1]
    S = shift_ref.shape[1]          # = I + 2*p*Wr
    tap_dtype = big_ref.dtype

    mask = mask_ref[...]                                      # (1, I)
    sc = scales_ref[...]                                      # (Cmax, 10)
    bn0_s, bn0_b = sc[:Cin, 0:1], sc[:Cin, 1:2]
    bn1_s, bn1_b = sc[:Chid, 2:3], sc[:Chid, 3:4]
    bn2_s, bn2_b = sc[:Chid, 4:5], sc[:Chid, 5:6]
    bn3_s, bn3_b = sc[:Cout, 6:7], sc[:Cout, 7:8]
    b_se1, b_se2 = sc[:Cmid, 8:9], sc[:Cout, 9:10]

    # --- pre-block: ReLU then folded BatchNorm ------------------------------------
    h0 = jnp.maximum(x_ref[...], 0.0) * bn0_s + bn0_b         # (Cin, I) f32

    # --- MBConv expand: 1x1 conv == channel matmul on MXU (bf16 x bf16 -> f32) ----
    e = jnp.dot(w_exp_ref[...], h0.astype(jnp.bfloat16),
                preferred_element_type=jnp.float32)           # (Chid, I)
    e = jnp.maximum(e * bn1_s + bn1_b, 0.0)

    # --- depthwise KxK conv (stride 1) via flat, lane-aligned padded scratch ------
    # Halos are zeroed every step (cheap, TC-split safe); the interior is fully
    # rewritten.  Pad rows/cols inside the interior are zeroed by `mask`.
    big_ref[:, 0:align] = jnp.zeros((Chid, align), tap_dtype)
    big_ref[:, align + I:L] = jnp.zeros((Chid, L - align - I), tap_dtype)
    big_ref[:, align:align + I] = (e * mask).astype(tap_dtype)

    base = align - p * Wr - p          # = 128 - p  (always >= 0)
    w_dw = w_dw_ref[...]               # (Chid, K*K)
    acc = jnp.zeros((Chid, I), tap_dtype)
    for dx in range(K):                # K unaligned lane shifts total (not K^2)
        shift_ref[...] = big_ref[:, base + dx: base + dx + S]
        for dy in range(K):            # 128-aligned reloads of the shared view
            t = dy * K + dx
            acc = acc + shift_ref[:, dy * Wr: dy * Wr + I] * w_dw[:, t:t + 1]

    dw = jnp.maximum(acc.astype(jnp.float32) * bn2_s + bn2_b, 0.0)   # (Chid, I)

    # --- project: 1x1 conv == channel matmul (bf16 -> f32) + BN -------------------
    pj = jnp.dot(w_proj_ref[...], dw.astype(jnp.bfloat16),
                 preferred_element_type=jnp.float32)                 # (Cout, I)
    pj = pj * bn3_s + bn3_b
    if residual:
        # recompute h0 from x_ref (still in VMEM) so h0 is not live across the taps
        pj = pj + (jnp.maximum(x_ref[...], 0.0) * bn0_s + bn0_b)

    # --- SE block: per-image masked avg pool -> FC+ReLU -> FC+Sigmoid -> scale ----
    pools = []
    for img in range(Nb):
        a = img * I1
        pools.append(jnp.sum(pj[:, a:a + I1] * mask[:, a:a + I1],
                             axis=-1, keepdims=True))                # (Cout, 1)
    pool = pools[0] if Nb == 1 else jnp.concatenate(pools, axis=-1)  # (Cout, Nb)
    pool = pool * inv_hw
    s1 = jnp.maximum(
        jnp.dot(w_se1_ref[...], pool, preferred_element_type=jnp.float32) + b_se1,
        0.0)                                                         # (Cmid, Nb)
    s2 = jax.nn.sigmoid(
        jnp.dot(w_se2_ref[...], s1, preferred_element_type=jnp.float32) + b_se2)

    for img in range(Nb):                                            # lane-dense stores
        a = img * I1
        o_ref[:, a:a + I1] = pj[:, a:a + I1] * s2[:, img:img + 1]


# ----------------------------------------------------------------------------- wrapper
def mbconv_with_se_block(x_nchw, params, *, kernel, stride, images_per_block=None):
    """x_nchw: (N, Cin, H, W) f32 -> (N, Cout, H, W) f32 (NCHW, like PyTorch)."""
    # TODO(synk): stride > 1 output subsampling is not implemented in-kernel.
    assert stride == 1, "only stride=1 supported"
    assert kernel % 2 == 1, "odd depthwise kernel expected (padding = kernel//2)"
    N, Cin, H, W = x_nchw.shape
    Chid = params["w_exp"].shape[-1]
    Cout = params["w_proj"].shape[-1]
    Cmid = params["w_se1"].shape[-1]
    K, p = kernel, kernel // 2
    residual = (stride == 1 and Cin == Cout)

    Wr = _round_up(W + 2 * p, 128)     # lane-aligned row stride (trailing zero cols)
    R = H + 2 * p                      # rows per image incl. trailing zero halo rows
    I1 = R * Wr                        # lanes per image

    vmem_cap, use_bf16 = _tpu_caps()
    vmem_limit = int(min(vmem_cap * 3 // 4, 100 * 1024 * 1024))
    tap_dtype = jnp.bfloat16 if use_bf16 else jnp.float32
    tap_bytes = 2 if use_bf16 else 4

    if images_per_block is None:
        per_img = I1 * (2 * Cin * 4 + 2 * Cout * 4 + 2 * Chid * tap_bytes
                        + 4 * (3 * Chid + Cout + Cin))
        Nb = _choose_images_per_block(N, per_img, vmem_limit // 2)
    else:
        assert N % images_per_block == 0
        Nb = int(images_per_block)
    G = N // Nb
    I = Nb * I1

    ALIGN = p * Wr + 128               # lane-aligned, and >= p*Wr + p for any K
    L = ALIGN + I + p * Wr + 128       # flat padded depthwise scratch length
    S = I + 2 * p * Wr                 # dx-shifted view length

    # TODO(synk): for very large H*W (v7x 64 MiB VMEM) or N==1 on dual-TC v7x, add a
    # spatial-tile grid axis with a p-row halo and a two-pass / finalize SE pool.

    # NCHW -> (Cin, N*R*Wr): per image, real rows [0,H) / cols [0,W), trailing zeros.
    xs = jnp.transpose(x_nchw.astype(jnp.float32), (1, 0, 2, 3))     # (Cin, N, H, W)
    xs = jnp.pad(xs, ((0, 0), (0, 0), (0, 2 * p), (0, Wr - W)))      # (Cin, N, R, Wr)
    xs = xs.reshape(Cin, N * I1)

    idx = jnp.arange(I1)
    m1 = ((idx % Wr) < W) & ((idx // Wr) < H)
    mask = jnp.tile(m1, Nb).astype(jnp.float32).reshape(1, I)

    # Pack all per-channel BN scales/biases and SE biases into one (Cmax, 10) array.
    Cmax = max(Cin, Chid, Cout, Cmid)

    def col(v, C):
        return jnp.pad(v.reshape(-1).astype(jnp.float32), (0, Cmax - C))

    scales = jnp.stack([
        col(params["bn0_s"], Cin), col(params["bn0_b"], Cin),
        col(params["bn1_s"], Chid), col(params["bn1_b"], Chid),
        col(params["bn2_s"], Chid), col(params["bn2_b"], Chid),
        col(params["bn3_s"], Cout), col(params["bn3_b"], Cout),
        col(params["b_se1"], Cmid), col(params["b_se2"], Cout),
    ], axis=1)                                                        # (Cmax, 10)

    w_expT = params["w_exp"].T.astype(jnp.bfloat16)                   # (Chid, Cin)
    w_projT = params["w_proj"].T.astype(jnp.bfloat16)                 # (Cout, Chid)
    w_dw2 = params["w_dw"].reshape(K * K, Chid).T.astype(tap_dtype)   # (Chid, K*K)
    w_se1T = params["w_se1"].T.astype(jnp.float32)                    # (Cmid, Cout)
    w_se2T = params["w_se2"].T.astype(jnp.float32)                    # (Cout, Cmid)

    def rep(a):  # small constant operand replicated to every grid step
        return pl.BlockSpec(a.shape, lambda b: (0, 0))

    in_specs = [
        pl.BlockSpec((Cin, I), lambda b: (0, b)),
        rep(mask), rep(scales), rep(w_expT), rep(w_dw2), rep(w_projT),
        rep(w_se1T), rep(w_se2T),
    ]

    kern = functools.partial(
        _mbconv_se_kernel, Wr=Wr, R=R, K=K, Nb=Nb,
        residual=residual, align=ALIGN, inv_hw=1.0 / float(H * W))

    out = pl.pallas_call(
        kern,
        out_shape=jax.ShapeDtypeStruct((Cout, N * I1), jnp.float32),
        grid=(G,),
        in_specs=in_specs,
        out_specs=pl.BlockSpec((Cout, I), lambda b: (0, b)),
        scratch_shapes=[pltpu.VMEM((Chid, L), tap_dtype),
                        pltpu.VMEM((Chid, S), tap_dtype)],
        compiler_params=pltpu.CompilerParams(
            dimension_semantics=("parallel",),
            vmem_limit_bytes=vmem_limit,
        ),
    )(xs, mask, scales, w_expT, w_dw2, w_projT, w_se1T, w_se2T)

    # (Cout, N*R*Wr) -> (N, Cout, H, W): drop trailing pad rows/cols.
    y = out.reshape(Cout, N, R, Wr)
    return jnp.transpose(y, (1, 0, 2, 3))[:, :, :H, :W]


# ----------------------------------------------------------------------------- params
def init_params(key, in_channels, out_channels, reduce_ratio, kernel):
    Cin, Cout, K = in_channels, out_channels, kernel
    Chid = Cin * reduce_ratio                 # MBConv expansion
    Cmid = max(1, Cout // reduce_ratio)       # SE reduction

    def bn_fold(C):  # PyTorch-default BN, inference mode (running stats)
        gamma = jnp.ones((1, C), jnp.float32)
        beta = jnp.zeros((1, C), jnp.float32)
        mean = jnp.zeros((1, C), jnp.float32)
        var = jnp.ones((1, C), jnp.float32)
        s = gamma / jnp.sqrt(var + 1e-5)
        return s, beta - mean * s

    ks = jax.random.split(key, 6)
    bn0_s, bn0_b = bn_fold(Cin)
    bn1_s, bn1_b = bn_fold(Chid)
    bn2_s, bn2_b = bn_fold(Chid)
    bn3_s, bn3_b = bn_fold(Cout)
    return dict(
        bn0_s=bn0_s, bn0_b=bn0_b,
        w_exp=0.1 * jax.random.normal(ks[0], (Cin, Chid), jnp.float32),
        bn1_s=bn1_s, bn1_b=bn1_b,
        w_dw=0.1 * jax.random.normal(ks[1], (K, K, Chid), jnp.float32),
        bn2_s=bn2_s, bn2_b=bn2_b,
        w_proj=0.1 * jax.random.normal(ks[2], (Chid, Cout), jnp.float32),
        bn3_s=bn3_s, bn3_b=bn3_b,
        w_se1=0.1 * jax.random.normal(ks[3], (Cout, Cmid), jnp.float32),
        b_se1=0.05 * jax.random.normal(ks[4], (1, Cmid), jnp.float32),
        w_se2=0.1 * jax.random.normal(ks[5], (Cmid, Cout), jnp.float32),
        b_se2=jnp.zeros((1, Cout), jnp.float32),
    )


# ----------------------------------------------------------------------------- pure-JAX reference
def reference(x_nchw, params, *, kernel, stride):
    K, p = kernel, kernel // 2
    x = jnp.transpose(x_nchw, (0, 2, 3, 1)).astype(jnp.float32)
    N, H, W, Cin = x.shape
    Cout = params["w_proj"].shape[-1]
    bc = lambda v: v.reshape(1, 1, 1, -1)
    h0 = jnp.maximum(x, 0.0) * bc(params["bn0_s"]) + bc(params["bn0_b"])
    e = jnp.einsum("nhwc,cd->nhwd", h0, params["w_exp"])
    e = jnp.maximum(e * bc(params["bn1_s"]) + bc(params["bn1_b"]), 0.0)
    ep = jnp.pad(e, ((0, 0), (p, p), (p, p), (0, 0)))
    acc = jnp.zeros_like(e)
    for dy in range(K):
        for dx in range(K):
            acc = acc + ep[:, dy:dy + H, dx:dx + W, :] * params["w_dw"][dy, dx]
    dw = jnp.maximum(acc * bc(params["bn2_s"]) + bc(params["bn2_b"]), 0.0)
    pj = jnp.einsum("nhwc,cd->nhwd", dw, params["w_proj"])
    pj = pj * bc(params["bn3_s"]) + bc(params["bn3_b"])
    if stride == 1 and Cin == Cout:
        pj = pj + h0
    pool = jnp.mean(pj, axis=(1, 2))                                   # (N, Cout)
    s1 = jnp.maximum(pool @ params["w_se1"] + params["b_se1"], 0.0)
    s2 = jax.nn.sigmoid(s1 @ params["w_se2"] + params["b_se2"])
    y = pj * s2[:, None, None, :]
    return jnp.transpose(y, (0, 3, 1, 2))


# ----------------------------------------------------------------------------- main
if __name__ == "__main__":
    def check(name, *, N, Cin, Cout, rr, K, H, W, images_per_block=None, tag=0):
        key = jax.random.fold_in(jax.random.PRNGKey(0), tag)
        kx, kp = jax.random.split(key)
        x = jax.random.normal(kx, (N, Cin, H, W), jnp.float32)
        params = init_params(kp, Cin, Cout, rr, K)
        y = mbconv_with_se_block(x, params, kernel=K, stride=1,
                                 images_per_block=images_per_block)
        y = jax.block_until_ready(y)
        y_ref = reference(x, params, kernel=K, stride=1)
        err = float(jnp.max(jnp.abs(y - y_ref)))
        assert y.shape == (N, Cout, H, W), (name, y.shape)
        # tolerance covers bf16 MXU operands for the 1x1 convs plus (on v6e/v7x)
        # bf16 depthwise tap multiply-adds -- a deliberate precision choice.
        assert err < 2.5e-2, f"{name}: mismatch vs reference, max abs err = {err}"
        return err

    # main config (Nb=1, grid=2 parallel steps)
    check("base", N=2, Cin=4, Cout=8, rr=4, K=3, H=16, W=16, tag=0)
    # batch folded into lanes (2 images per grid step) + 5x5 depthwise kernel
    check("batch_block_k5", N=4, Cin=4, Cout=8, rr=4, K=5, H=8, W=8,
          images_per_block=2, tag=1)
    # residual path (stride==1 and Cin==Cout)
    check("residual", N=2, Cin=8, Cout=8, rr=4, K=3, H=8, W=8, tag=2)

    print("KERNEL_OK")
</pallas_src>

<mosaic_0001>
module attributes {stable_mosaic.version = 11 : i64} {
  func.func @_mbconv_se_kernel(%arg0: i32, %arg1: memref<4x2304xf32, #tpu.memory_space<vmem>>, %arg2: memref<1x2304xf32, #tpu.memory_space<vmem>>, %arg3: memref<16x10xf32, #tpu.memory_space<vmem>>, %arg4: memref<16x4xbf16, #tpu.memory_space<vmem>>, %arg5: memref<16x9xf32, #tpu.memory_space<vmem>>, %arg6: memref<8x16xbf16, #tpu.memory_space<vmem>>, %arg7: memref<2x8xf32, #tpu.memory_space<vmem>>, %arg8: memref<8x2xf32, #tpu.memory_space<vmem>>, %arg9: memref<8x2304xf32, #tpu.memory_space<vmem>>, %arg10: memref<16x2816xf32, #tpu.memory_space<vmem>>, %arg11: memref<16x2560xf32, #tpu.memory_space<vmem>>) attributes {dimension_semantics = [#tpu.dimension_semantics<parallel>], iteration_bounds = array<i64: 2>, scalar_prefetch = 0 : i64, scratch_operands = 2 : i64, tpu.core_type = #tpu.core_type<tc>, window_params = [{transform_indices = @transform_0, window_bounds = array<i64: 4, 2304>}, {pipeline_mode = #tpu.pipeline_mode<synchronous>, transform_indices = @transform_1, window_bounds = array<i64: 1, 2304>}, {pipeline_mode = #tpu.pipeline_mode<synchronous>, transform_indices = @transform_2, window_bounds = array<i64: 16, 10>}, {pipeline_mode = #tpu.pipeline_mode<synchronous>, transform_indices = @transform_3, window_bounds = array<i64: 16, 4>}, {pipeline_mode = #tpu.pipeline_mode<synchronous>, transform_indices = @transform_4, window_bounds = array<i64: 16, 9>}, {pipeline_mode = #tpu.pipeline_mode<synchronous>, transform_indices = @transform_5, window_bounds = array<i64: 8, 16>}, {pipeline_mode = #tpu.pipeline_mode<synchronous>, transform_indices = @transform_6, window_bounds = array<i64: 2, 8>}, {pipeline_mode = #tpu.pipeline_mode<synchronous>, transform_indices = @transform_7, window_bounds = array<i64: 8, 2>}, {transform_indices = @transform_8, window_bounds = array<i64: 8, 2304>}]} {
    %c0 = arith.constant 0 : index
    %c0_0 = arith.constant 0 : index
    %0 = vector.load %arg2[%c0, %c0_0] : memref<1x2304xf32, #tpu.memory_space<vmem>>, vector<1x2304xf32>
    %c0_1 = arith.constant 0 : index
    %c0_2 = arith.constant 0 : index
    %1 = vector.load %arg3[%c0_1, %c0_2] : memref<16x10xf32, #tpu.memory_space<vmem>>, vector<16x10xf32>
    %2 = vector.extract_strided_slice %1 {offsets = [0, 0], sizes = [4, 1], strides = [1, 1]} : vector<16x10xf32> to vector<4x1xf32>
    %3 = vector.extract_strided_slice %1 {offsets = [0, 1], sizes = [4, 1], strides = [1, 1]} : vector<16x10xf32> to vector<4x1xf32>
    %4 = vector.extract_strided_slice %1 {offsets = [0, 2], sizes = [16, 1], strides = [1, 1]} : vector<16x10xf32> to vector<16x1xf32>
    %5 = vector.extract_strided_slice %1 {offsets = [0, 3], sizes = [16, 1], strides = [1, 1]} : vector<16x10xf32> to vector<16x1xf32>
    %6 = vector.extract_strided_slice %1 {offsets = [0, 4], sizes = [16, 1], strides = [1, 1]} : vector<16x10xf32> to vector<16x1xf32>
    %7 = vector.extract_strided_slice %1 {offsets = [0, 5], sizes = [16, 1], strides = [1, 1]} : vector<16x10xf32> to vector<16x1xf32>
    %8 = vector.extract_strided_slice %1 {offsets = [0, 6], sizes = [8, 1], strides = [1, 1]} : vector<16x10xf32> to vector<8x1xf32>
    %9 = vector.extract_strided_slice %1 {offsets = [0, 7], sizes = [8, 1], strides = [1, 1]} : vector<16x10xf32> to vector<8x1xf32>
    %10 = vector.extract_strided_slice %1 {offsets = [0, 8], sizes = [2, 1], strides = [1, 1]} : vector<16x10xf32> to vector<2x1xf32>
    %11 = vector.extract_strided_slice %1 {offsets = [0, 9], sizes = [8, 1], strides = [1, 1]} : vector<16x10xf32> to vector<8x1xf32>
    %c0_3 = arith.constant 0 : index
    %c0_4 = arith.constant 0 : index
    %12 = vector.load %arg1[%c0_3, %c0_4] : memref<4x2304xf32, #tpu.memory_space<vmem>>, vector<4x2304xf32>
    %cst = arith.constant 0.000000e+00 : f32
    %13 = vector.broadcast %cst : f32 to vector<4x2304xf32>
    %14 = arith.maximumf %12, %13 : vector<4x2304xf32>
    %15 = vector.broadcast %2 : vector<4x1xf32> to vector<4x2304xf32>
    %16 = arith.mulf %14, %15 : vector<4x2304xf32>
    %17 = vector.broadcast %3 : vector<4x1xf32> to vector<4x2304xf32>
    %18 = arith.addf %16, %17 : vector<4x2304xf32>
    %c0_5 = arith.constant 0 : index
    %c0_6 = arith.constant 0 : index
    %19 = vector.load %arg4[%c0_5, %c0_6] : memref<16x4xbf16, #tpu.memory_space<vmem>>, vector<16x4xbf16>
    %20 = arith.truncf %18 : vector<4x2304xf32> to vector<4x2304xbf16>
    %cst_7 = arith.constant dense<0.000000e+00> : vector<16x2304xf32>
    %21 = tpu.matmul %19, %20, %cst_7 {dimension_numbers = #tpu.dot_dimension_numbers<[1], [0], [0], [1], [0, 0, 1, 1], [], []>} : vector<16x4xbf16>, vector<4x2304xbf16>, vector<16x2304xf32> -> vector<16x2304xf32>
    %22 = vector.broadcast %4 : vector<16x1xf32> to vector<16x2304xf32>
    %23 = arith.mulf %21, %22 : vector<16x2304xf32>
    %24 = vector.broadcast %5 : vector<16x1xf32> to vector<16x2304xf32>
    %25 = arith.addf %23, %24 : vector<16x2304xf32>
    %cst_8 = arith.constant 0.000000e+00 : f32
    %26 = vector.broadcast %cst_8 : f32 to vector<16x2304xf32>
    %27 = arith.maximumf %25, %26 : vector<16x2304xf32>
    %cst_9 = arith.constant 0.000000e+00 : f32
    %28 = vector.broadcast %cst_9 : f32 to vector<16x256xf32>
    %c0_10 = arith.constant 0 : index
    %c0_11 = arith.constant 0 : index
    %29 = vector.load %arg10[%c0_10, %c0_11] : memref<16x2816xf32, #tpu.memory_space<vmem>>, vector<16x256xf32>
    tpu.vector_store %arg10[%c0_10, %c0_11], %28 {strides = array<i32>} : memref<16x2816xf32, #tpu.memory_space<vmem>>, vector<16x256xf32>,
    %cst_12 = arith.constant 0.000000e+00 : f32
    %30 = vector.broadcast %cst_12 : f32 to vector<16x256xf32>
    %c0_13 = arith.constant 0 : index
    %c2560 = arith.constant 2560 : index
    %31 = vector.load %arg10[%c0_13, %c2560] : memref<16x2816xf32, #tpu.memory_space<vmem>>, vector<16x256xf32>
    tpu.vector_store %arg10[%c0_13, %c2560], %30 {strides = array<i32>} : memref<16x2816xf32, #tpu.memory_space<vmem>>, vector<16x256xf32>,
    %32 = vector.broadcast %0 : vector<1x2304xf32> to vector<16x2304xf32>
    %33 = arith.mulf %27, %32 : vector<16x2304xf32>
    %c0_14 = arith.constant 0 : index
    %c256 = arith.constant 256 : index
    %34 = vector.load %arg10[%c0_14, %c256] : memref<16x2816xf32, #tpu.memory_space<vmem>>, vector<16x2304xf32>
    tpu.vector_store %arg10[%c0_14, %c256], %33 {strides = array<i32>} : memref<16x2816xf32, #tpu.memory_space<vmem>>, vector<16x2304xf32>,
    %c0_15 = arith.constant 0 : index
    %c0_16 = arith.constant 0 : index
    %35 = vector.load %arg5[%c0_15, %c0_16] : memref<16x9xf32, #tpu.memory_space<vmem>>, vector<16x9xf32>
    %cst_17 = arith.constant 0.000000e+00 : f32
    %36 = vector.broadcast %cst_17 : f32 to vector<16x2304xf32>
    %c0_18 = arith.constant 0 : index
    %c127 = arith.constant 127 : index
    %37 = vector.load %arg10[%c0_18, %c127] : memref<16x2816xf32, #tpu.memory_space<vmem>>, vector<16x2560xf32>
    %c0_19 = arith.constant 0 : index
    %c0_20 = arith.constant 0 : index
    %38 = vector.load %arg11[%c0_19, %c0_20] : memref<16x2560xf32, #tpu.memory_space<vmem>>, vector<16x2560xf32>
    tpu.vector_store %arg11[%c0_19, %c0_20], %37 {strides = array<i32>} : memref<16x2560xf32, #tpu.memory_space<vmem>>, vector<16x2560xf32>,
    %c0_21 = arith.constant 0 : index
    %c0_22 = arith.constant 0 : index
    %39 = vector.load %arg11[%c0_21, %c0_22] : memref<16x2560xf32, #tpu.memory_space<vmem>>, vector<16x2304xf32>
    %40 = vector.extract_strided_slice %35 {offsets = [0, 0], sizes = [16, 1], strides = [1, 1]} : vector<16x9xf32> to vector<16x1xf32>
    %41 = vector.broadcast %40 : vector<16x1xf32> to vector<16x2304xf32>
    %42 = arith.mulf %39, %41 : vector<16x2304xf32>
    %43 = arith.addf %36, %42 : vector<16x2304xf32>
    %c0_23 = arith.constant 0 : index
    %c128 = arith.constant 128 : index
    %44 = vector.load %arg11[%c0_23, %c128] : memref<16x2560xf32, #tpu.memory_space<vmem>>, vector<16x2304xf32>
    %45 = vector.extract_strided_slice %35 {offsets = [0, 3], sizes = [16, 1], strides = [1, 1]} : vector<16x9xf32> to vector<16x1xf32>
    %46 = vector.broadcast %45 : vector<16x1xf32> to vector<16x2304xf32>
    %47 = arith.mulf %44, %46 : vector<16x2304xf32>
    %48 = arith.addf %43, %47 : vector<16x2304xf32>
    %c0_24 = arith.constant 0 : index
    %c256_25 = arith.constant 256 : index
    %49 = vector.load %arg11[%c0_24, %c256_25] : memref<16x2560xf32, #tpu.memory_space<vmem>>, vector<16x2304xf32>
    %50 = vector.extract_strided_slice %35 {offsets = [0, 6], sizes = [16, 1], strides = [1, 1]} : vector<16x9xf32> to vector<16x1xf32>
    %51 = vector.broadcast %50 : vector<16x1xf32> to vector<16x2304xf32>
    %52 = arith.mulf %49, %51 : vector<16x2304xf32>
    %53 = arith.addf %48, %52 : vector<16x2304xf32>
    %c0_26 = arith.constant 0 : index
    %c128_27 = arith.constant 128 : index
    %54 = vector.load %arg10[%c0_26, %c128_27] : memref<16x2816xf32, #tpu.memory_space<vmem>>, vector<16x2560xf32>
    %c0_28 = arith.constant 0 : index
    %c0_29 = arith.constant 0 : index
    %55 = vector.load %arg11[%c0_28, %c0_29] : memref<16x2560xf32, #tpu.memory_space<vmem>>, vector<16x2560xf32>
    tpu.vector_store %arg11[%c0_28, %c0_29], %54 {strides = array<i32>} : memref<16x2560xf32, #tpu.memory_space<vmem>>, vector<16x2560xf32>,
    %c0_30 = arith.constant 0 : index
    %c0_31 = arith.constant 0 : index
    %56 = vector.load %arg11[%c0_30, %c0_31] : memref<16x2560xf32, #tpu.memory_space<vmem>>, vector<16x2304xf32>
    %57 = vector.extract_strided_slice %35 {offsets = [0, 1], sizes = [16, 1], strides = [1, 1]} : vector<16x9xf32> to vector<16x1xf32>
    %58 = vector.broadcast %57 : vector<16x1xf32> to vector<16x2304xf32>
    %59 = arith.mulf %56, %58 : vector<16x2304xf32>
    %60 = arith.addf %53, %59 : vector<16x2304xf32>
    %c0_32 = arith.constant 0 : index
    %c128_33 = arith.constant 128 : index
    %61 = vector.load %arg11[%c0_32, %c128_33] : memref<16x2560xf32, #tpu.memory_space<vmem>>, vector<16x2304xf32>
    %62 = vector.extract_strided_slice %35 {offsets = [0, 4], sizes = [16, 1], strides = [1, 1]} : vector<16x9xf32> to vector<16x1xf32>
    %63 = vector.broadcast %62 : vector<16x1xf32> to vector<16x2304xf32>
    %64 = arith.mulf %61, %63 : vector<16x2304xf32>
    %65 = arith.addf %60, %64 : vector<16x2304xf32>
    %c0_34 = arith.constant 0 : index
    %c256_35 = arith.constant 256 : index
    %66 = vector.load %arg11[%c0_34, %c256_35] : memref<16x2560xf32, #tpu.memory_space<vmem>>, vector<16x2304xf32>
    %67 = vector.extract_strided_slice %35 {offsets = [0, 7], sizes = [16, 1], strides = [1, 1]} : vector<16x9xf32> to vector<16x1xf32>
    %68 = vector.broadcast %67 : vector<16x1xf32> to vector<16x2304xf32>
    %69 = arith.mulf %66, %68 : vector<16x2304xf32>
    %70 = arith.addf %65, %69 : vector<16x2304xf32>
    %c0_36 = arith.constant 0 : index
    %c129 = arith.constant 129 : index
    %71 = vector.load %arg10[%c0_36, %c129] : memref<16x2816xf32, #tpu.memory_space<vmem>>, vector<16x2560xf32>
    %c0_37 = arith.constant 0 : index
    %c0_38 = arith.constant 0 : index
    %72 = vector.load %arg11[%c0_37, %c0_38] : memref<16x2560xf32, #tpu.memory_space<vmem>>, vector<16x2560xf32>
    tpu.vector_store %arg11[%c0_37, %c0_38], %71 {strides = array<i32>} : memref<16x2560xf32, #tpu.memory_space<vmem>>, vector<16x2560xf32>,
    %c0_39 = arith.constant 0 : index
    %c0_40 = arith.constant 0 : index
    %73 = vector.load %arg11[%c0_39, %c0_40] : memref<16x2560xf32, #tpu.memory_space<vmem>>, vector<16x2304xf32>
    %74 = vector.extract_strided_slice %35 {offsets = [0, 2], sizes = [16, 1], strides = [1, 1]} : vector<16x9xf32> to vector<16x1xf32>
    %75 = vector.broadcast %74 : vector<16x1xf32> to vector<16x2304xf32>
    %76 = arith.mulf %73, %75 : vector<16x2304xf32>
    %77 = arith.addf %70, %76 : vector<16x2304xf32>
    %c0_41 = arith.constant 0 : index
    %c128_42 = arith.constant 128 : index
    %78 = vector.load %arg11[%c0_41, %c128_42] : memref<16x2560xf32, #tpu.memory_space<vmem>>, vector<16x2304xf32>
    %79 = vector.extract_strided_slice %35 {offsets = [0, 5], sizes = [16, 1], strides = [1, 1]} : vector<16x9xf32> to vector<16x1xf32>
    %80 = vector.broadcast %79 : vector<16x1xf32> to vector<16x2304xf32>
    %81 = arith.mulf %78, %80 : vector<16x2304xf32>
    %82 = arith.addf %77, %81 : vector<16x2304xf32>
    %c0_43 = arith.constant 0 : index
    %c256_44 = arith.constant 256 : index
    %83 = vector.load %arg11[%c0_43, %c256_44] : memref<16x2560xf32, #tpu.memory_space<vmem>>, vector<16x2304xf32>
    %84 = vector.extract_strided_slice %35 {offsets = [0, 8], sizes = [16, 1], strides = [1, 1]} : vector<16x9xf32> to vector<16x1xf32>
    %85 = vector.broadcast %84 : vector<16x1xf32> to vector<16x2304xf32>
    %86 = arith.mulf %83, %85 : vector<16x2304xf32>
    %87 = arith.addf %82, %86 : vector<16x2304xf32>
    %88 = vector.broadcast %6 : vector<16x1xf32> to vector<16x2304xf32>
    %89 = arith.mulf %87, %88 : vector<16x2304xf32>
    %90 = vector.broadcast %7 : vector<16x1xf32> to vector<16x2304xf32>
    %91 = arith.addf %89, %90 : vector<16x2304xf32>
    %cst_45 = arith.constant 0.000000e+00 : f32
    %92 = vector.broadcast %cst_45 : f32 to vector<16x2304xf32>
    %93 = arith.maximumf %91, %92 : vector<16x2304xf32>
    %c0_46 = arith.constant 0 : index
    %c0_47 = arith.constant 0 : index
    %94 = vector.load %arg6[%c0_46, %c0_47] : memref<8x16xbf16, #tpu.memory_space<vmem>>, vector<8x16xbf16>
    %95 = arith.truncf %93 : vector<16x2304xf32> to vector<16x2304xbf16>
    %cst_48 = arith.constant dense<0.000000e+00> : vector<8x2304xf32>
    %96 = tpu.matmul %94, %95, %cst_48 {dimension_numbers = #tpu.dot_dimension_numbers<[1], [0], [0], [1], [0, 0, 1, 1], [], []>} : vector<8x16xbf16>, vector<16x2304xbf16>, vector<8x2304xf32> -> vector<8x2304xf32>
    %97 = vector.broadcast %8 : vector<8x1xf32> to vector<8x2304xf32>
    %98 = arith.mulf %96, %97 : vector<8x2304xf32>
    %99 = vector.broadcast %9 : vector<8x1xf32> to vector<8x2304xf32>
    %100 = arith.addf %98, %99 : vector<8x2304xf32>
    %101 = vector.broadcast %0 : vector<1x2304xf32> to vector<8x2304xf32>
    %102 = arith.mulf %100, %101 : vector<8x2304xf32>
    %cst_49 = arith.constant dense<0.000000e+00> : vector<8xf32>
    %103 = vector.multi_reduction <add>, %102, %cst_49 [1] : vector<8x2304xf32> to vector<8xf32>
    %104 = vector.shape_cast %103 : vector<8xf32> to vector<8x1xf32>
    %cst_50 = arith.constant 3.906250e-03 : f32
    %105 = vector.broadcast %cst_50 : f32 to vector<8x1xf32>
    %106 = arith.mulf %104, %105 : vector<8x1xf32>
    %c0_51 = arith.constant 0 : index
    %c0_52 = arith.constant 0 : index
    %107 = vector.load %arg7[%c0_51, %c0_52] : memref<2x8xf32, #tpu.memory_space<vmem>>, vector<2x8xf32>
    %cst_53 = arith.constant dense<0.000000e+00> : vector<2x1xf32>
    %108 = tpu.matmul %107, %106, %cst_53 {dimension_numbers = #tpu.dot_dimension_numbers<[1], [0], [0], [1], [0, 0, 1, 1], [], []>} : vector<2x8xf32>, vector<8x1xf32>, vector<2x1xf32> -> vector<2x1xf32>
    %109 = arith.addf %108, %10 : vector<2x1xf32>
    %cst_54 = arith.constant 0.000000e+00 : f32
    %110 = vector.broadcast %cst_54 : f32 to vector<2x1xf32>
    %111 = arith.maximumf %109, %110 : vector<2x1xf32>
    %c0_55 = arith.constant 0 : index
    %c0_56 = arith.constant 0 : index
    %112 = vector.load %arg8[%c0_55, %c0_56] : memref<8x2xf32, #tpu.memory_space<vmem>>, vector<8x2xf32>
    %cst_57 = arith.constant dense<0.000000e+00> : vector<8x1xf32>
    %113 = tpu.matmul %112, %111, %cst_57 {dimension_numbers = #tpu.dot_dimension_numbers<[1], [0], [0], [1], [0, 0, 1, 1], [], []>} : vector<8x2xf32>, vector<2x1xf32>, vector<8x1xf32> -> vector<8x1xf32>
    %114 = arith.addf %113, %11 : vector<8x1xf32>
    %115 = arith.negf %114 : vector<8x1xf32>
    %116 = math.exp %115 : vector<8x1xf32>
    %cst_58 = arith.constant 1.000000e+00 : f32
    %117 = vector.broadcast %cst_58 : f32 to vector<8x1xf32>
    %118 = arith.addf %117, %116 : vector<8x1xf32>
    %119 = arith.divf %117, %118 : vector<8x1xf32>
    %120 = vector.broadcast %119 : vector<8x1xf32> to vector<8x2304xf32>
    %121 = arith.mulf %100, %120 : vector<8x2304xf32>
    %c0_59 = arith.constant 0 : index
    %c0_60 = arith.constant 0 : index
    %122 = vector.load %arg9[%c0_59, %c0_60] : memref<8x2304xf32, #tpu.memory_space<vmem>>, vector<8x2304xf32>
    tpu.vector_store %arg9[%c0_59, %c0_60], %121 {strides = array<i32>} : memref<8x2304xf32, #tpu.memory_space<vmem>>, vector<8x2304xf32>,
    return
  }
  func.func @transform_0(%arg0: i32) -> (i32, i32) {
    %c0_i32 = arith.constant 0 : i32
    %c0_i32_0 = arith.constant 0 : i32
    return %c0_i32, %arg0 : i32, i32
  }
  func.func @transform_1(%arg0: i32) -> (i32, i32) {
    %c0_i32 = arith.constant 0 : i32
    %c0_i32_0 = arith.constant 0 : i32
    %c0_i32_1 = arith.constant 0 : i32
    return %c0_i32, %c0_i32_0 : i32, i32
  }
  func.func @transform_2(%arg0: i32) -> (i32, i32) {
    %c0_i32 = arith.constant 0 : i32
    %c0_i32_0 = arith.constant 0 : i32
    %c0_i32_1 = arith.constant 0 : i32
    return %c0_i32, %c0_i32_0 : i32, i32
  }
  func.func @transform_3(%arg0: i32) -> (i32, i32) {
    %c0_i32 = arith.constant 0 : i32
    %c0_i32_0 = arith.constant 0 : i32
    %c0_i32_1 = arith.constant 0 : i32
    return %c0_i32, %c0_i32_0 : i32, i32
  }
  func.func @transform_4(%arg0: i32) -> (i32, i32) {
    %c0_i32 = arith.constant 0 : i32
    %c0_i32_0 = arith.constant 0 : i32
    %c0_i32_1 = arith.constant 0 : i32
    return %c0_i32, %c0_i32_0 : i32, i32
  }
  func.func @transform_5(%arg0: i32) -> (i32, i32) {
    %c0_i32 = arith.constant 0 : i32
    %c0_i32_0 = arith.constant 0 : i32
    %c0_i32_1 = arith.constant 0 : i32
    return %c0_i32, %c0_i32_0 : i32, i32
  }
  func.func @transform_6(%arg0: i32) -> (i32, i32) {
    %c0_i32 = arith.constant 0 : i32
    %c0_i32_0 = arith.constant 0 : i32
    %c0_i32_1 = arith.constant 0 : i32
    return %c0_i32, %c0_i32_0 : i32, i32
  }
  func.func @transform_7(%arg0: i32) -> (i32, i32) {
    %c0_i32 = arith.constant 0 : i32
    %c0_i32_0 = arith.constant 0 : i32
    %c0_i32_1 = arith.constant 0 : i32
    return %c0_i32, %c0_i32_0 : i32, i32
  }
  func.func @transform_8(%arg0: i32) -> (i32, i32) {
    %c0_i32 = arith.constant 0 : i32
    %c0_i32_0 = arith.constant 0 : i32
    return %c0_i32, %arg0 : i32, i32
  }
}

</mosaic_0001>

<bundles_post_ra>
// kernel: tpu_custom_call.1
= control target key start
LH: loop header
LB: loop body
LE: loop exit
PB: predicated region body
PF: predicated region fallthrough
CT: control target
= control target key end

     0   :  { %s7193_s0 = inlined_call_operand.hbm [shape: f32[4,4608], index: 0, kind: input, shape index: {}]   ;;  %s7194_s1 = inlined_call_operand.hbm [shape: f32[1,2304], index: 1, kind: input, shape index: {}]   ;;  %s7195_s2 = inlined_call_operand.hbm [shape: f32[16,10], index: 2, kind: input, shape index: {}]   ;;  %s7196_s3 = inlined_call_operand.hbm [shape: bf16[16,4], index: 3, kind: input, shape index: {}]   ;;  %s7197_s4 = inlined_call_operand.hbm [shape: f32[16,9], index: 4, kind: input, shape index: {}]   ;;  %s7198_s5 = inlined_call_operand.hbm [shape: bf16[8,16], index: 5, kind: input, shape index: {}]   ;;  %s7199_s6 = inlined_call_operand.hbm [shape: f32[2,8], index: 6, kind: input, shape index: {}]   ;;  %s7200_s7 = inlined_call_operand.hbm [shape: f32[8,2], index: 7, kind: input, shape index: {}]   ;;  %s7201_s8 = inlined_call_operand.hbm [shape: f32[8,4608], index: 8, kind: output, shape index: {}]  }
   0x1   :  { %7267 = sst [smem:[#allocation139_spill]] %s7194_s1 }
   0x2   :  { %7268 = sst [smem:[#allocation140_spill]] %s7195_s2 }
   0x3   :  { %13 = vsyncpa [#allocation5], 0 }
   0x4   :  { %15 = vsyncpa [#allocation5 + $0x1], 0 }
   0x5   :  { %16 = vsyncpa [#allocation8], 0 }
   0x6   :  { %17 = vsyncpa [#allocation11], 0 }
   0x7   :  { %18 = vsyncpa [#allocation14], 0 }
   0x8   :  { %19 = vsyncpa [#allocation17], 0 }
   0x9   :  { %20 = vsyncpa [#allocation6], 0 }
   0xa   :  { %22 = vsyncpa [#allocation6 + $0x1], 0  ;;  %s4599_s27 = smov 0   ;;  %s4601_s28 = smov 0  }
   0xb   :  { %s4603_s29 = smov 0   ;;  %s4605_s30 = smov 0  }
   0xc LB: > { %s4525_s9 = smov [#allocation7]   ;;  %s4620_s11 = sadd.s32 4294967295, %s4523_s30   ;;  %s4523_s30 = sphi %s4605_s30, %s7604_s30   ;;  %s4519_s29 = sphi %s4603_s29, %s7603_s29   ;;  %s4515_s28 = sphi %s4601_s28, %s7602_s28   ;;  %s4511_s27 = sphi %s4599_s27, %s7601_s27  }
   0xd   : > { %s245_s10 = sshll.u32 %s4525_s9, 4  ;;  %p3943_p0 = scmp.ge.s32.totalorder %s4523_s30, 1  ;;  %s246_s10 = int_to_ptr.vmem [resolvable:$true] %s245_s10 }
   0xe   : > { %p7202_p1 = scmp.eq.s32.totalorder %s4620_s11, 0  ;;  %p232_p2 = scmp.lt.s32.totalorder %s4523_s30, 3 }
   0xf   : > { %s4526_s13 = smov [#allocation10]   ;;  %s4527_s16 = smov [#allocation13]  }
  0x10   : > { %p4625_p3 = pnand %p3943_p0, %p232_p2  ;;  %s268_s14 = sshll.u32 %s4526_s13, 4  ;;  %s4632_s14 = int_to_ptr.vmem [resolvable:$true] %s268_s14 }
  0x11   : > { %s295_s17 = sshll.u32 %s4527_s16, 4  ;;  %s7271_s1 = sld [smem:[#allocation139_spill]]  ;;  %s4640_s17 = int_to_ptr.vmem [resolvable:$true] %s295_s17 }
  0x12   : > { %s7269_s12 = scalar_select %p4625_p3, 1, 0 }
  0x13   : > { %p4047_p5 = pneg %p4625_p3 }
  0x15   : > { %p4636_p6 = pnand %p4047_p5, %p7202_p1 }
  0x17   : > { %s4215_s20 = scalar_lea.hbm %s7271_s1, 288  ;;  %p4650_p8 = pneg %p4636_p6 }
  0x18   : > { %p4216_p7 = scmp.ne.s32.totalorder %s7271_s1, %s4215_s20  ;;  %p4222_p11 = scmp.lt.u32.totalorder %s4215_s20, %s7271_s1 }
  0x1a   : > { %p4218_p9 = pnand %p4650_p8, %p4216_p7 }
  0x1c   : > { %p4219_p10 = pneg %p4218_p9 }
  0x1e   : > { %p4224_p12 = pnand %p4222_p11, %p4219_p10 }
  0x20   : > { %4227 = shalt.err (!%p4224_p12)
}
  0x21   : > { %s4228_s26 = scalar_lea.vmem %s246_s10, 288  ;;  %p4236_p5 = scmp.lt.s32.totalorder %s246_s10, %s246_s10 }
  0x22   : > { %p4229_p13 = scmp.ne.s32.totalorder %s246_s10, %s4228_s26  ;;  %p4237_p4 = scmp.lt.s32.totalorder %s4228_s26, %s4228_s26 }
  0x24   : > { %p4231_p0 = pnand %p4229_p13, %p4650_p8  ;;  %p4238_p1 = por %p4237_p4, %p4236_p5 }
  0x26   : > { %p4232_p2 = pneg %p4231_p0 }
  0x28   : > { %p4239_p3 = pnand %p4238_p1, %p4232_p2 }
  0x2a   : > { %4242 = shalt.err (!%p4239_p3)
}
  0x2b   : > { %4050 = dma.hbm_to_vmem [thread:$0]  (!%p4636_p6), %s7271_s1, 288, %s246_s10, [#allocation8]  }
  0x2c   : > { %s4243_s19 = scalar_lea.hbm %s7196_s3, 128 }
  0x2d   : > { %p4244_p7 = scmp.ne.s32.totalorder %s7196_s3, %s4243_s19  ;;  %p4250_p1 = scmp.lt.u32.totalorder %s4243_s19, %s7196_s3 }
  0x2f   : > { %p4246_p9 = pnand %p4244_p7, %p4650_p8 }
  0x31   : > { %p4247_p4 = pneg %p4246_p9 }
  0x33   : > { %p4252_p3 = pnand %p4250_p1, %p4247_p4 }
  0x35   : > { %4255 = shalt.err (!%p4252_p3)
}
  0x36   : > { %s4256_s10 = scalar_lea.vmem %s4632_s14, 128  ;;  %p4264_p13 = scmp.lt.s32.totalorder %s4632_s14, %s4632_s14 }
  0x37   : > { %p4257_p10 = scmp.ne.s32.totalorder %s4632_s14, %s4256_s10  ;;  %p4265_p0 = scmp.lt.s32.totalorder %s4256_s10, %s4256_s10 }
  0x39   : > { %p4259_p11 = pnand %p4257_p10, %p4650_p8  ;;  %p4266_p2 = por %p4265_p0, %p4264_p13 }
  0x3b   : > { %p4260_p12 = pneg %p4259_p11 }
  0x3d   : > { %p4267_p5 = pnand %p4266_p2, %p4260_p12 }
  0x3f   : > { %4270 = shalt.err (!%p4267_p5)
}
  0x40   : > { %s4528_s25 = smov 64   ;;  %s4529_s26 = smov 4  }
  0x41   : > { %4056 = dma.hbm_to_vmem [thread:$0]  (!%p4636_p6), %s7196_s3, 128, %s4632_s14, [#allocation11], %s4528_s25, %s4528_s25, %s4529_s26  }
  0x42   : > { %s4271_s19 = scalar_lea.hbm %s7198_s5, 64 }
  0x43   : > { %p4272_p7 = scmp.ne.s32.totalorder %s7198_s5, %s4271_s19  ;;  %p4278_p1 = scmp.lt.u32.totalorder %s4271_s19, %s7198_s5 }
  0x45   : > { %p4274_p9 = pnand %p4272_p7, %p4650_p8 }
  0x47   : > { %p4275_p4 = pneg %p4274_p9 }
  0x49   : > { %p4280_p3 = pnand %p4278_p1, %p4275_p4 }
  0x4b   : > { %4283 = shalt.err (!%p4280_p3)
}
  0x4c   : > { %s4284_s14 = scalar_lea.vmem %s4640_s17, 64  ;;  %p4292_p13 = scmp.lt.s32.totalorder %s4640_s17, %s4640_s17 }
  0x4d   : > { %p4285_p10 = scmp.ne.s32.totalorder %s4640_s17, %s4284_s14  ;;  %p4293_p0 = scmp.lt.s32.totalorder %s4284_s14, %s4284_s14 }
  0x4f   : > { %p4287_p11 = pnand %p4285_p10, %p4650_p8  ;;  %p4294_p2 = por %p4293_p0, %p4292_p13 }
  0x51   : > { %p4288_p12 = pneg %p4287_p11 }
  0x53   : > { %p4295_p5 = pnand %p4294_p2, %p4288_p12 }
  0x55   : > { %4298 = shalt.err (!%p4295_p5)
}
  0x56   : > { %4062 = dma.hbm_to_vmem [thread:$0]  (!%p4636_p6), %s7198_s5, 64, %s4640_s17, [#allocation14]  }
  0x57   : > { %s4530_s26 = smov [#allocation9]   ;;  %s7273_s2 = sld [smem:[#allocation140_spill]] }
  0x58   : > { %s255_s9 = sshll.u32 %s4530_s26, 4  ;;  %s256_s9 = int_to_ptr.vmem [resolvable:$true] %s255_s9 }
  0x5d   : > { %s4299_s18 = scalar_lea.hbm %s7273_s2, 256 }
  0x5e   : > { %p4300_p7 = scmp.ne.s32.totalorder %s7273_s2, %s4299_s18  ;;  %p4306_p1 = scmp.lt.u32.totalorder %s4299_s18, %s7273_s2 }
  0x60   : > { %p4302_p9 = pnand %p4300_p7, %p4650_p8 }
  0x62   : > { %p4303_p4 = pneg %p4302_p9 }
  0x64   : > { %p4308_p3 = pnand %p4306_p1, %p4303_p4 }
  0x66   : > { %4311 = shalt.err (!%p4308_p3)
}
  0x67   : > { %s4312_s17 = scalar_lea.vmem %s256_s9, 256  ;;  %p4320_p13 = scmp.lt.s32.totalorder %s256_s9, %s256_s9 }
  0x68   : > { %p4313_p10 = scmp.ne.s32.totalorder %s256_s9, %s4312_s17  ;;  %p4321_p0 = scmp.lt.s32.totalorder %s4312_s17, %s4312_s17 }
  0x6a   : > { %p4315_p11 = pnand %p4313_p10, %p4650_p8  ;;  %p4322_p2 = por %p4321_p0, %p4320_p13 }
  0x6c   : > { %p4316_p12 = pneg %p4315_p11 }
  0x6e   : > { %p4323_p5 = pnand %p4322_p2, %p4316_p12 }
  0x70   : > { %4326 = shalt.err (!%p4323_p5)
}
  0x71   : > { %s4531_s24 = smov 128   ;;  %s4532_s14 = smov 8  }
  0x72   : > { %4053 = dma.hbm_to_vmem [thread:$0]  (!%p4636_p6), %s7273_s2, 256, %s256_s9, [#allocation8], %s4531_s24, %s4531_s24, %s4532_s14  }
  0x73   : > { %s4533_s26 = smov [#allocation12]   ;;  %s4534_s16 = smov [#allocation15]  }
  0x74   : > { %s281_s13 = sshll.u32 %s4533_s26, 4  ;;  %s306_s18 = sshll.u32 %s4534_s16, 4  ;;  %s282_s13 = int_to_ptr.vmem [resolvable:$true] %s281_s13  ;;  %s4730_s18 = int_to_ptr.vmem [resolvable:$true] %s306_s18 }
  0x75   : > { %s4327_s21 = scalar_lea.hbm %s7197_s4, 256 }
  0x76   : > { %p4328_p7 = scmp.ne.s32.totalorder %s7197_s4, %s4327_s21  ;;  %p4334_p1 = scmp.lt.u32.totalorder %s4327_s21, %s7197_s4 }
  0x78   : > { %p4330_p9 = pnand %p4328_p7, %p4650_p8 }
  0x7a   : > { %p4331_p4 = pneg %p4330_p9 }
  0x7c   : > { %p4336_p3 = pnand %p4334_p1, %p4331_p4 }
  0x7e   : > { %4339 = shalt.err (!%p4336_p3)
}
  0x7f   : > { %s4340_s25 = scalar_lea.vmem %s282_s13, 256  ;;  %p4348_p13 = scmp.lt.s32.totalorder %s282_s13, %s282_s13 }
  0x80   : > { %p4341_p10 = scmp.ne.s32.totalorder %s282_s13, %s4340_s25  ;;  %p4349_p0 = scmp.lt.s32.totalorder %s4340_s25, %s4340_s25 }
  0x82   : > { %p4343_p11 = pnand %p4341_p10, %p4650_p8  ;;  %p4350_p2 = por %p4349_p0, %p4348_p13 }
  0x84   : > { %p4344_p12 = pneg %p4343_p11 }
  0x86   : > { %p4351_p5 = pnand %p4350_p2, %p4344_p12 }
  0x88   : > { %4354 = shalt.err (!%p4351_p5)
}
  0x89   : > { %4059 = dma.hbm_to_vmem [thread:$0]  (!%p4636_p6), %s7197_s4, 256, %s282_s13, [#allocation11], %s4531_s24, %s4531_s24, %s4532_s14  }
  0x8a   : > { %s4355_s21 = scalar_lea.hbm %s7199_s6, 32 }
  0x8b   : > { %p4356_p7 = scmp.ne.s32.totalorder %s7199_s6, %s4355_s21  ;;  %p4362_p1 = scmp.lt.u32.totalorder %s4355_s21, %s7199_s6 }
  0x8d   : > { %p4358_p9 = pnand %p4356_p7, %p4650_p8 }
  0x8f   : > { %p4359_p4 = pneg %p4358_p9 }
  0x91   : > { %p4364_p3 = pnand %p4362_p1, %p4359_p4 }
  0x93   : > { %4367 = shalt.err (!%p4364_p3)
}
  0x94   : > { %s4368_s24 = scalar_lea.vmem %s4730_s18, 32  ;;  %p4376_p13 = scmp.lt.s32.totalorder %s4730_s18, %s4730_s18 }
  0x95   : > { %p4369_p10 = scmp.ne.s32.totalorder %s4730_s18, %s4368_s24  ;;  %p4377_p0 = scmp.lt.s32.totalorder %s4368_s24, %s4368_s24 }
  0x97   : > { %p4371_p11 = pnand %p4369_p10, %p4650_p8  ;;  %p4378_p2 = por %p4377_p0, %p4376_p13 }
  0x99   : > { %p4372_p12 = pneg %p4371_p11 }
  0x9b   : > { %p4379_p5 = pnand %p4378_p2, %p4372_p12 }
  0x9d   : > { %4382 = shalt.err (!%p4379_p5)
}
  0x9e   : > { %4065 = dma.hbm_to_vmem [thread:$0]  (!%p4636_p6), %s7199_s6, 32, %s4730_s18, [#allocation14]  }
  0x9f   : > { %s4535_s25 = smov [#allocation16]   ;;  %s4383_s20 = scalar_lea.hbm %s7200_s7, 128 }
  0xa0   : > { %s317_s26 = sshll.u32 %s4535_s25, 4  ;;  %p4384_p7 = scmp.ne.s32.totalorder %s7200_s7, %s4383_s20  ;;  %s318_s26 = int_to_ptr.vmem [resolvable:$true] %s317_s26 }
  0xa1   : > { %p4390_p1 = scmp.lt.u32.totalorder %s4383_s20, %s7200_s7 }
  0xa2   : > { %p4386_p9 = pnand %p4384_p7, %p4650_p8 }
  0xa4   : > { %p4387_p4 = pneg %p4386_p9 }
  0xa6   : > { %p4392_p3 = pnand %p4390_p1, %p4387_p4 }
  0xa8   : > { %4395 = shalt.err (!%p4392_p3)
}
  0xa9   : > { %s4396_s18 = scalar_lea.vmem %s318_s26, 128  ;;  %p4404_p13 = scmp.lt.s32.totalorder %s318_s26, %s318_s26 }
  0xaa   : > { %p4397_p10 = scmp.ne.s32.totalorder %s318_s26, %s4396_s18  ;;  %p4405_p0 = scmp.lt.s32.totalorder %s4396_s18, %s4396_s18 }
  0xac   : > { %p4399_p11 = pnand %p4397_p10, %p4650_p8  ;;  %p4406_p2 = por %p4405_p0, %p4404_p13 }
  0xae   : > { %p4400_p12 = pneg %p4399_p11 }
  0xb0   : > { %p4407_p5 = pnand %p4406_p2, %p4400_p12 }
  0xb2   : > { %4410 = shalt.err (!%p4407_p5)
}
  0xb3   : > { %4068 = dma.hbm_to_vmem [thread:$0]  (!%p4636_p6), %s7200_s7, 128, %s318_s26, [#allocation17]  }
  0xb4   : > { %s3942_s23 = sadd.s32 4294967294, %s4523_s30   ;;  %s4793_s15 = sadd.s32 1, %s4523_s30  }
  0xb5   : > { %s35_s14 = sadd.s32 1, %s4519_s29  ;;  %s32_s13 = ssub.s32 %s4523_s30, %s4793_s15 }
  0xb6   : > { %p42_p8 = scmp.ne.s32.totalorder %s4519_s29, %s4515_s28  ;;  %p33_p7 = scmp.eq.s32.totalorder %s32_s13, 0 }
  0xb7   : > { %p43_p9 = scmp.eq.s32.totalorder %s4523_s30, 0  ;;  %p48_p4 = scmp.ne.s32.totalorder %s4515_s28, %s4511_s27 }
  0xb8   : > { %p219_p1 = scmp.eq.s32.totalorder %s4620_s11, 1  ;;  %p7274_p10 = scmp.eq.s32.totalorder %s4620_s11, 0 }
  0xb9   : > { %s4805_s25 = scalar_select %p33_p7, %s4519_s29, %s35_s14  }
  0xba   : > { %p44_p3 = por %p43_p9, %p42_p8  ;;  %p4809_p11 = por %p7274_p10, %p48_p4 }
  0xbb   : > { %p4813_p6 = por %p219_p1, %p42_p8  ;;  %p225_p12 = scmp.eq.s32.totalorder %s3942_s23, 1 }
  0xbc   : > { %p4084_p13 = scmp.lt.s32.totalorder %s4523_s30, 2  ;;  %s328_s19 = sand.u32 1, %s4519_s29  }
  0xbd   : > { %s7276_s26 = scalar_select %p4813_p6, 1, 0 }
  0xbe   : > { %p4819_p0 = por %p225_p12, %p48_p4  ;;  %s4012_s21 = smul.u32 72, %s328_s19 }
  0xbf   : > { %p4823_p2 = pnand %p4084_p13, %p44_p3  ;;  %s3996_s17 = smul.u32 1152, %s4523_s30 }
  0xc0   : > { %s7277_s20 = scalar_select %p4819_p0, 1, 0 }
  0xc1   : > { %s4831_s9 = scalar_lea.hbm %s7193_s0, %s3996_s17  ;;  %s332_s24 = scalar_lea.vmem [#allocation4], %s4012_s21 }
  0xc2   : > { %s340_s23 = sshll.u32 %s332_s24, 4  ;;  %s329_s14 = scalar_lea.sflag [#allocation5], %s328_s19  ;;  %s4833_s23 = int_to_ptr.vmem [resolvable:$true] %s340_s23 }
  0xc3   : > { %s4411_s13 = scalar_lea.hbm %s4831_s9, 1152  ;;  %p4413_p8 = pneg %p4823_p2 }
  0xc4   : > { %p4412_p5 = scmp.ne.s32.totalorder %s4831_s9, %s4411_s13  ;;  %s4416_s18 = scalar_lea.hbm %s7193_s0, 2304 }
  0xc5   : > { %p4417_p4 = scmp.lt.u32.totalorder %s4831_s9, %s7193_s0  ;;  %p4418_p1 = scmp.lt.u32.totalorder %s4416_s18, %s4411_s13 }
  0xc6   : > { %p4414_p7 = pnand %p4413_p8, %p4412_p5  ;;  %p4420_p10 = scmp.lt.u32.totalorder %s4411_s13, %s4831_s9 }
  0xc7   : > { %p4419_p3 = por %p4418_p1, %p4417_p4 }
  0xc8   : > { %p4415_p9 = pneg %p4414_p7 }
  0xc9   : > { %p4421_p12 = por %p4420_p10, %p4419_p3 }
  0xcb   : > { %p4422_p13 = pnand %p4421_p12, %p4415_p9 }
  0xcd   : > { %4425 = shalt.err (!%p4422_p13)
}
  0xce   : > { %s4426_s19 = scalar_lea.vmem %s4833_s23, 1152  ;;  %s4536_s21 = smov [#allocation4]  }
  0xcf   : > { %p4427_p5 = scmp.ne.s32.totalorder %s4833_s23, %s4426_s19  ;;  %s4431_s24 = sshll.u32 %s4536_s21, 4  ;;  %s4432_s24 = int_to_ptr.vmem [resolvable:$false] %s4431_s24 }
  0xd0   : > { %s4433_s1 = scalar_lea.vmem %s4432_s24, 2304  ;;  %p4434_p6 = scmp.lt.s32.totalorder %s4833_s23, %s4432_s24 }
  0xd1   : > { %p4429_p7 = pnand %p4427_p5, %p4413_p8  ;;  %p4435_p4 = scmp.lt.s32.totalorder %s4433_s1, %s4426_s19 }
  0xd3   : > { %p4430_p0 = pneg %p4429_p7  ;;  %p4436_p1 = por %p4435_p4, %p4434_p6 }
  0xd5   : > { %p4437_p3 = pnand %p4436_p1, %p4430_p0 }
  0xd7   : > { %4440 = shalt.err (!%p4437_p3)
}
  0xd8   : > { %4072 = dma.hbm_to_vmem [thread:$0]  (!%p4823_p2), %s4831_s9, 1152, %s4833_s23, %s329_s14  }
  0xd9   : > { %p7279_p9 = scmp.ne.s32.totalorder %s7269_s12, 0 }
  0xdb   : > { %349 = sbr.rel (%p7279_p9) target bundleno = 1909 (0x775), region = 52 }
  0xe2   : > { %s4863_s2 = sand.u32 1, %s4515_s28  }
  0xe3   : > { %s4013_s13 = smul.u32 72, %s4863_s2  ;;  %s352_s10 = scalar_lea.sflag [#allocation5], %s4863_s2 }
  0xe5   : > { %s4867_s17 = scalar_lea.vmem [#allocation4], %s4013_s13 }
  0xe6   : > { %4486 = dma.done.wait (%p4809_p11), %s352_s10, 1152  }
  0xe7   : > { %4488 = vsyncadd (%p4809_p11), %s352_s10, 4294966144  ;;  %p7280_p6 = scmp.eq.s32.totalorder %s4620_s11, 0 }
  0xe9   : > { %4490 = dma.done.wait (%p7280_p6), [#allocation8], 544   ;;  %p7281_p0 = pmov %p7280_p6 }
  0xeb   : > { %4492 = vsyncadd (%p7281_p0), [#allocation8], 4294966752  ;;  %p7282_p2 = pmov %p7281_p0 }
  0xec   : > { %p7283_p8 = pmov %p7281_p0 }
  0xed   : > { %4494 = dma.done.wait (%p7282_p2), [#allocation11], 384  }
  0xee   : > { %4496 = vsyncadd (%p7283_p8), [#allocation11], 4294966912  ;;  %p7284_p10 = pmov %p7281_p0 }
  0xef   : > { %p7285_p12 = pmov %p7281_p0 }
  0xf0   : > { %4498 = dma.done.wait (%p7284_p10), [#allocation14], 96  }
  0xf1   : > { %4500 = vsyncadd (%p7285_p12), [#allocation14], 4294967200  ;;  %p7286_p11 = pmov %p7281_p0 }
  0xf2   : > { %p7287_p13 = pmov %p7281_p0 }
  0xf3   : > { %4502 = dma.done.wait (%p7286_p11), [#allocation17], 128  }
  0xf4   : > { %4504 = vsyncadd (%p7287_p13), [#allocation17], 4294967168  ;;  %v7205_v0 = vmov 0   ;;  %v4892_v1 = vld [vmem:[#allocation9] sm:$0xff]  ;;  %v4538_v2 = vmov 1   ;;  %v4896_v3 = vld [vmem:[#allocation9 + $0x8] sm:$0xff]  ;;  %v449_v16 = vlaneseq }
  0xf5   : > { %4152 = vset.pattern.permute.xlu0 %v7205_v0  ;;  %626 = vmatprep.mubr.bf16.mxu0 %v7205_v0  ;;  %v4539_v4 = vmov 2   ;;  %v4540_v5 = vmov 3   ;;  %v1279_v6 = vld [vmem:[#allocation12] sm:$0xff]  ;;  %v4541_v7 = vmov 6   ;;  %v1280_v8 = vld [vmem:[#allocation12 + $0x8] sm:$0xff]  ;;  %v4542_v9 = vmov 8  }
  0xf6   : > { %669 = vmatprep.mubr.bf16.mxu1 %v7205_v0  ;;  %444 = vperm.xlu0 %4152, %v4892_v1   ;;  %v4543_v10 = vmov 4   ;;  %v7207_v11 = vmov 0.0   ;;  %s4545_s12 = smov 1   ;;  %v4546_v12 = vmov 5   ;;  %v4547_v13 = vmov 7   ;;  %s4549_s16 = smov 127  }
  0xf7   : > { %4154 = vset.pattern.permute.xlu1 %v4539_v4  ;;  %v4548_v14 = vmov 839922192   ;;  %v4913_v18 = vshrl.u32 %v449_v16, 7  ;;  %v424_v20 = vld [vmem:[%s4867_s17] sm:$0xff]  ;;  %v425_v21 = vld [vmem:[%s4867_s17 + $0x8] sm:$0xff]  ;;  %v426_v22 = vld [vmem:[%s4867_s17 + $0x10] sm:$0xff] }
  0xf8   : > { %982 = vperm.xlu1 %4154, %v4892_v1   ;;  %v447_v15 = vunpack.c.l.s4 %v4548_v14  ;;  %v427_v23 = vld [vmem:[%s4867_s17 + $0x18] sm:$0xff]  ;;  %v428_v25 = vld [vmem:[%s4867_s17 + $0x20] sm:$0xff]  ;;  %v429_v26 = vld [vmem:[%s4867_s17 + $0x28] sm:$0xff]  ;;  %v433_v28 = vmax.f32 %v424_v20, 0.0  ;;  %v434_v29 = vmax.f32 %v425_v21, 0.0  ;;  %v435_v30 = vmax.f32 %v426_v22, 0.0 }
  0xf9   : > { %v436_v31 = vmax.f32 %v427_v23, 0.0  ;;  %v437_v32 = vmax.f32 %v428_v25, 0.0  ;;  %v438_v33 = vmax.f32 %v429_v26, 0.0  ;;  %v430_v46 = vld [vmem:[%s4867_s17 + $0x30] sm:$0xff]  ;;  %v431_v47 = vld [vmem:[%s4867_s17 + $0x38] sm:$0xff]  ;;  %vm539_vm0 = vcmask 1041408  }
  0xfa   : > { %4153 = vset.pattern.permute.xlu0 %v4538_v2  ;;  %v448_v17 = vunpack.c.0.s8 %v447_v15  ;;  %v439_v56 = vmax.f32 %v430_v46, 0.0  ;;  %v440_v57 = vmax.f32 %v431_v47, 0.0  ;;  %vm535_vm1 = vcmask 31744   ;;  %s4551_s22 = smov 120   ;;  %s4552_s9 = smov 119  }
  0xfb   : > { %464 = vperm.xlu0 %4153, %v4892_v1   ;;  %vm1449_vm2 = vcmask 7168   ;;  %vm2516_vm3 = vcmask 1039360   ;;  %vm3128_vm4 = vcmask 130048   ;;  %vm4550_vm5 = vmmov 0   ;;  %s4014_s23 = smul.u32 144, %s4863_s2  ;;  %s3791_s13 = scalar_lea.sflag [#allocation6], %s4863_s2 }
  0xfc   : > { %987 = vperm.xlu1 %4154, %v4896_v3   ;;  %v451_v19 = vsub.s32 %v448_v17, %v4913_v18  ;;  %vm3587_vm6 = vcmask 64512   ;;  %vm3666_vm7 = vcmask 15360   ;;  %s3997_s14 = smul.u32 2304, %s4620_s11  ;;  %p7598_p7 = scmp.ne.s32.totalorder %s7276_s26, 0 }
  0xfd   : > { %s7113_s18 = scalar_lea.vmem [#allocation18], %s4014_s23  ;;  %s4553_s11 = smov [#allocation18]  }
  0xfe   : > { %s3805_s19 = sshll.u32 %s7113_s18, 4  ;;  %s7143_s1 = scalar_lea.hbm %s7201_s8, %s3997_s14  ;;  %s7145_s19 = int_to_ptr.vmem [resolvable:$true] %s3805_s19 }
  0xff   : > { %4156 = vset.pattern.permute.xlu0 %v4540_v5  ;;  %s4441_s10 = scalar_lea.vmem %s7145_s19, 2304 }
 0x100   : > { %1031 = vperm.xlu0 %4156, %v4896_v3   ;;  %4155 = vset.pattern.permute.xlu1 %v4540_v5  ;;  %p4442_p5 = scmp.ne.s32.totalorder %s7145_s19, %s4441_s10 }
 0x101   : > { %1027 = vperm.xlu1 %4155, %v4892_v1  }
 0x102   : > { %p4443_p4 = pnand %p4442_p5, %p7598_p7 }
 0x104   : > { %1725 = vperm.xlu0 %4156, %v1279_v6   ;;  %p4444_p1 = pneg %p4443_p4 }
 0x105   : > { %4157 = vset.pattern.permute.xlu1 %v7205_v0 }
 0x106   : > { %1608 = vperm.xlu1 %4157, %v1279_v6  }
 0x108   : > { %4159 = vset.pattern.permute.xlu0 %v4541_v7 }
 0x109   : > { %1841 = vperm.xlu0 %4159, %v1279_v6  }
 0x10a   : > { %1613 = vperm.xlu1 %4157, %v1280_v8  }
 0x10d   : > { %4162 = vset.pattern.permute.xlu0 %v4538_v2 }
 0x10e   : > { %2041 = vperm.xlu0 %4162, %v1280_v8   ;;  %4158 = vset.pattern.permute.xlu1 %v4540_v5 }
 0x10f   : > { %1729 = vperm.xlu1 %4158, %v1280_v8  }
 0x112   : > { %4175 = vset.pattern.permute.xlu0 %v4539_v4 }
 0x113   : > { %2674 = vperm.xlu0 %4175, %v1279_v6   ;;  %4160 = vset.pattern.permute.xlu1 %v4541_v7 }
 0x114   : > { %1845 = vperm.xlu1 %4160, %v1280_v8  }
 0x117   : > { %4178 = vset.pattern.permute.xlu0 %v4542_v9 }
 0x118   : > { %2906 = vperm.xlu0 %4178, %v1279_v6   ;;  %4161 = vset.pattern.permute.xlu1 %v4538_v2 }
 0x119   : > { %2037 = vperm.xlu1 %4161, %v1279_v6  }
 0x11c   : > { %4179 = vset.pattern.permute.xlu0 %v4543_v10 }
 0x11d   : > { %2157 = vperm.xlu0 %4179, %v1280_v8   ;;  %4164 = vrot.lane.b32.xlu1 %v7207_v11, %s4545_s12 }
 0x11e   : > { %4168 = vset.pattern.permute.xlu1 %v4543_v10 }
 0x121   : > { %2986 = vperm.xlu0 %4179, %v4892_v1   ;;  %2153 = vperm.xlu1 %4168, %v1279_v6  }
 0x125   : > { %4186 = vset.pattern.permute.xlu0 %v4546_v12  ;;  %4170 = vrot.lane.b32.xlu1 %v7207_v11, %s4545_s12 }
 0x126   : > { %2794 = vperm.xlu0 %4186, %v1280_v8   ;;  %4174 = vset.pattern.permute.xlu1 %v4547_v13 }
 0x129   : > { %2269 = vperm.xlu1 %4174, %v1279_v6  }
 0x12a   : > { %3034 = vperm.xlu0 %4186, %v4896_v3  }
 0x12d   : > { %4176 = vset.pattern.permute.xlu1 %v4539_v4 }
 0x12e   : > { %4189 = vset.pattern.permute.xlu0 %v4547_v13  ;;  %2678 = vperm.xlu1 %4176, %v1280_v8  }
 0x12f   : > { %2273 = vperm.xlu0 %4189, %v1280_v8  }
 0x132   : > { %4177 = vset.pattern.permute.xlu1 %v4546_v12 }
 0x133   : > { %2790 = vperm.xlu1 %4177, %v1279_v6   ;;  %4191 = vrot.lane.b32.xlu0 %v7207_v11, %s4545_s12 }
 0x137   : > { %4180 = vset.pattern.permute.xlu1 %v4542_v9 }
 0x138   : > { %2910 = vperm.xlu1 %4180, %v1280_v8  }
 0x13c   : > { %4182 = vrot.lane.b32.xlu1 %v7207_v11, %s4549_s16 }
 0x13d   : > { %4187 = vset.pattern.permute.xlu1 %v4543_v10  ;;  %v432_v10 = vld [vmem:[%s4867_s17 + $0x40] sm:$0xff]  ;;  %s4445_s17 = sshll.u32 %s4553_s11, 4  ;;  %s4446_s17 = int_to_ptr.vmem [resolvable:$false] %s4445_s17 }
 0x13e   : > { %v441_v16 = vmax.f32 %v432_v10, 0.0  ;;  %p4448_p3 = scmp.lt.s32.totalorder %s7145_s19, %s4446_s17 }
 0x140   : > { %2990 = vperm.xlu1 %4187, %v4896_v3   ;;  %v4947_v3 = vld [vmem:[#allocation10] sm:$0xff]  }
 0x144   : > { %4188 = vset.pattern.permute.xlu1 %v4546_v12 }
 0x145   : > { %3030 = vperm.xlu1 %4188, %v4892_v1  }
 0x149   : > { %4205 = vset.pattern.permute.xlu1 %v4541_v7 }
 0x175   : > { %v445_v24 = vpop.permute.xlu0 %444 }
 0x176   : > { %v4923_v27 = vrot.slane %v445_v24, %v451_v19 }
 0x178   : > { %v454_v35 = vmul.f32 %v4923_v27, %v433_v28  ;;  %v455_v37 = vmul.f32 %v4923_v27, %v434_v29  ;;  %v456_v38 = vmul.f32 %v4923_v27, %v435_v30  ;;  %v457_v39 = vmul.f32 %v4923_v27, %v436_v31 }
 0x179   : > { %v458_v40 = vmul.f32 %v4923_v27, %v437_v32  ;;  %v459_v41 = vmul.f32 %v4923_v27, %v438_v33  ;;  %v460_v6 = vmul.f32 %v4923_v27, %v439_v56  ;;  %v461_v7 = vmul.f32 %v4923_v27, %v440_v57 }
 0x17a   : > { %v465_v34 = vpop.permute.xlu0 %464  ;;  %v462_v22 = vmul.f32 %v4923_v27, %v441_v16 }
 0x17b   : > { %v4928_v36 = vrot.slane %v465_v34, %v451_v19 }
 0x17d   : > { %v474_v42 = vadd.f32 %v4928_v36, %v454_v35  ;;  %v475_v43 = vadd.f32 %v4928_v36, %v455_v37  ;;  %v476_v44 = vadd.f32 %v4928_v36, %v456_v38  ;;  %v477_v45 = vadd.f32 %v4928_v36, %v457_v39 }
 0x17e   : > { %v478_v48 = vadd.f32 %v4928_v36, %v458_v40  ;;  %v479_v49 = vadd.f32 %v4928_v36, %v459_v41  ;;  %v480_v8 = vadd.f32 %v4928_v36, %v460_v6  ;;  %v481_v9 = vadd.f32 %v4928_v36, %v461_v7  ;;  %v5009_v41 = vld [vmem:[#allocation7] sm:$0xff] }
 0x17f   : > { %v494_v50 = vcombine.high %v474_v42, %v474_v42  ;;  %v495_v51 = vcombine.high %v475_v43, %v475_v43  ;;  %v512_v52 = vpack.c.bf16 %v474_v42, %v474_v42  ;;  %v514_v53 = vpack.c.bf16 %v475_v43, %v475_v43 }
 0x180   : > { %v496_v54 = vcombine.high %v476_v44, %v476_v44  ;;  %v497_v55 = vcombine.high %v477_v45, %v477_v45  ;;  %v516_v62 = vpack.c.bf16 %v476_v44, %v476_v44  ;;  %v518_v63 = vpack.c.bf16 %v477_v45, %v477_v45 }
 0x181   : > { %v513_v58 = vpack.c.bf16 %v494_v50, %v494_v50  ;;  %v515_v59 = vpack.c.bf16 %v495_v51, %v495_v51  ;;  %v541_v60 = vsel %vm539_vm0, %v512_v52, 0  ;;  %v547_v1 = vsel %vm539_vm0, %v514_v53, 0 }
 0x182   : > { %v517_v61 = vpack.c.bf16 %v496_v54, %v496_v54  ;;  %v519_v2 = vpack.c.bf16 %v497_v55, %v497_v55  ;;  %v498_v4 = vcombine.high %v478_v48, %v478_v48  ;;  %v499_v5 = vcombine.high %v479_v49, %v479_v49 }
 0x183   : > { %3962 = vmatprep.subr.msk.bf16.mxu0 %vm539_vm0, %v513_v58  ;;  %3964 = vmatprep.subr.msk.bf16.mxu1 %vm539_vm0, %v515_v59  ;;  %v553_v12 = vsel %vm539_vm0, %v516_v62, 0  ;;  %v559_v13 = vsel %vm539_vm0, %v518_v63, 0  ;;  %v520_v17 = vpack.c.bf16 %v478_v48, %v478_v48  ;;  %v522_v19 = vpack.c.bf16 %v479_v49, %v479_v49  ;;  %v5033_v62 = vpop.permute.xlu0 %1031 }
 0x184   : > { %595 = vmatpush1.bf16.msra.mxu0 %v541_v60  ;;  %638 = vmatpush1.bf16.msra.mxu1 %v547_v1  ;;  %v521_v14 = vpack.c.bf16 %v498_v4, %v498_v4  ;;  %v523_v15 = vpack.c.bf16 %v499_v5, %v499_v5  ;;  %v500_v20 = vcombine.high %v480_v8, %v480_v8  ;;  %v5006_v39 = vsub.s32 0, %v4913_v18 }
 0x185   : > { %3966 = vmatprep.subr.msk.bf16.mxu0 %vm539_vm0, %v517_v61  ;;  %3968 = vmatprep.subr.msk.bf16.mxu1 %vm539_vm0, %v519_v2  ;;  %v501_v21 = vcombine.high %v481_v9, %v481_v9  ;;  %v565_v23 = vsel %vm539_vm0, %v520_v17, 0  ;;  %v571_v24 = vsel %vm539_vm0, %v522_v19, 0  ;;  %v482_v28 = vadd.f32 %v4928_v36, %v462_v22  ;;  %v4999_v36 = vpop.permute.xlu1 %982 }
 0x186   : > { %v525_v25 = vpack.c.bf16 %v500_v20, %v500_v20  ;;  %v524_v27 = vpack.c.bf16 %v480_v8, %v480_v8  ;;  %v526_v29 = vpack.c.bf16 %v481_v9, %v481_v9  ;;  %v7214_v40 = vsub.s32 2, %v4913_v18 }
 0x187   : > { %3963 = vmatmul.mubr.msk.bf16.vlgmr.msra.gmra.mrb[0].mxu0 %vm535_vm1, %v4947_v3  ;;  %3965 = vmatmul.mubr.msk.bf16.vlgmr.msra.gmra.mrb[0].mxu1 %vm535_vm1, %v4947_v3  ;;  %v527_v26 = vpack.c.bf16 %v501_v21, %v501_v21  ;;  %v502_v30 = vcombine.high %v482_v28, %v482_v28  ;;  %v528_v34 = vpack.c.bf16 %v482_v28, %v482_v28  ;;  %v5015_v49 = vsub.s32 1, %v4913_v18 }
 0x188   : > { %681 = vmatpush1.bf16.msra.mxu0 %v553_v12  ;;  %724 = vmatpush1.bf16.msra.mxu1 %v559_v13  ;;  %v577_v31 = vsel %vm539_vm0, %v524_v27, 0  ;;  %v583_v32 = vsel %vm539_vm0, %v526_v29, 0  ;;  %v5020_v53 = vrot.slane %v5009_v41, %v5006_v39  ;;  %v5026_v55 = vrot.slane %v5009_v41, %v7214_v40 }
 0x189   : > { %3970 = vmatprep.subr.msk.bf16.mxu0 %vm539_vm0, %v521_v14  ;;  %3972 = vmatprep.subr.msk.bf16.mxu1 %vm539_vm0, %v523_v15  ;;  %v529_v33 = vpack.c.bf16 %v502_v30, %v502_v30  ;;  %v589_v35 = vsel %vm539_vm0, %v528_v34, 0  ;;  %v5001_v37 = vpop.permute.xlu1 %987  ;;  %v5031_v61 = vrot.slane %v5009_v41, %v5015_v49  ;;  %v7213_v19 = vsub.s32 3, %v4913_v18 }
 0x18a   : > { %712 = vmatprep.mubr.bf16.mxu0 %v7205_v0  ;;  %755 = vmatprep.mubr.bf16.mxu1 %v7205_v0  ;;  %7288 = vst [vmem:[#allocation25_spill] sm:$0xff] %v5020_v53  ;;  %7289 = vst [vmem:[#allocation26_spill] sm:$0xff] %v5026_v55 }
 0x18b   : > { %7290 = vst [vmem:[#allocation27_spill] sm:$0xff] %v5031_v61 }
 0x18d   : > { %v5003_v38 = vpop.permute.xlu1 %1027 }
 0x18f   : > { %3967 = vmatmul.mubr.msk.bf16.vlgmr.msra.gmra.mrb[4].mxu0 %vm535_vm1, %v4947_v3  ;;  %3969 = vmatmul.mubr.msk.bf16.vlgmr.msra.gmra.mrb[4].mxu1 %vm535_vm1, %v4947_v3 }
 0x190   : > { %767 = vmatpush1.bf16.msra.mxu0 %v565_v23  ;;  %810 = vmatpush1.bf16.msra.mxu1 %v571_v24  ;;  %v5074_v23 = vrot.slane %v5009_v41, %v7213_v19 }
 0x191   : > { %3974 = vmatprep.subr.msk.bf16.mxu0 %vm539_vm0, %v525_v25  ;;  %3976 = vmatprep.subr.msk.bf16.mxu1 %vm539_vm0, %v527_v26 }
 0x192   : > { %798 = vmatprep.mubr.bf16.mxu0 %v7205_v0  ;;  %841 = vmatprep.mubr.bf16.mxu1 %v7205_v0  ;;  %7291 = vst [vmem:[#allocation28_spill] sm:$0xff] %v5074_v23 }
 0x197   : > { %3971 = vmatmul.mubr.msk.bf16.vlgmr.msra.gmra.mrb[8].mxu0 %vm535_vm1, %v4947_v3  ;;  %3973 = vmatmul.mubr.msk.bf16.vlgmr.msra.gmra.mrb[8].mxu1 %vm535_vm1, %v4947_v3 }
 0x198   : > { %853 = vmatpush1.bf16.msra.mxu0 %v577_v31  ;;  %896 = vmatpush1.bf16.msra.mxu1 %v583_v32 }
 0x199   : > { %3978 = vmatprep.subr.msk.bf16.mxu0 %vm539_vm0, %v529_v33  ;;  %884 = vmatprep.mubr.bf16.mxu0 %v7205_v0 }
 0x19a   : > { %927 = vmatprep.mubr.bf16.mxu1 %v7205_v0 }
 0x19f   : > { %3975 = vmatmul.mubr.msk.bf16.vlgmr.msra.gmra.mrb[12].mxu0 %vm535_vm1, %v4947_v3  ;;  %3977 = vmatmul.mubr.msk.bf16.vlgmr.msra.gmra.mrb[12].mxu1 %vm535_vm1, %v4947_v3 }
 0x1a0   : > { %939 = vmatpush1.bf16.msra.mxu0 %v589_v35  ;;  %970 = vmatprep.mubr.bf16.mxu0 %v7205_v0 }
 0x1a1   : > { %3164 = vmatprep.mubr.bf16.mxu1 %v7205_v0 }
 0x1a7   : > { %3979 = vmatmul.mubr.msk.bf16.vlgmr.msra.gmra.mrb[16].mxu0 %vm535_vm1, %v4947_v3 }
 0x1a8   : > { %3205 = vmatprep.mubr.bf16.mxu0 %v7205_v0 }
 0x25a   : > { %v628_v42 = vpop.f32.mrb[0].mxu0  ;;  %v671_v43 = vpop.f32.mrb[0].mxu1 }
 0x25b   : > { %v990_v44 = vmul.f32 %v4999_v36, %v628_v42  ;;  %v992_v45 = vmul.f32 %v4999_v36, %v671_v43  ;;  %v630_v46 = vpop.f32.mrb[1].mxu0  ;;  %v673_v47 = vpop.f32.mrb[1].mxu1 }
 0x25c   : > { %v991_v48 = vmul.f32 %v4999_v36, %v630_v46  ;;  %v632_v50 = vpop.f32.mrb[2].mxu0  ;;  %v675_v51 = vpop.f32.mrb[2].mxu1  ;;  %v993_v4 = vmul.f32 %v4999_v36, %v673_v47 }
 0x25d   : > { %v1034_v52 = vadd.f32 %v5003_v38, %v990_v44  ;;  %v1036_v54 = vadd.f32 %v5003_v38, %v992_v45  ;;  %v634_v56 = vpop.f32.mrb[3].mxu0  ;;  %v677_v57 = vpop.f32.mrb[3].mxu1  ;;  %v1010_v3 = vmul.f32 %v5001_v37, %v675_v51  ;;  %v1008_v24 = vmul.f32 %v5001_v37, %v632_v50 }
 0x25e   : > { %v1035_v58 = vadd.f32 %v5003_v38, %v991_v48  ;;  %v1009_v14 = vmul.f32 %v5001_v37, %v634_v56  ;;  %v1037_v17 = vadd.f32 %v5003_v38, %v993_v4  ;;  %v1011_v33 = vmul.f32 %v5001_v37, %v677_v57 }
 0x25f   : > { %v1070_v59 = vmax.f32 %v1034_v52, 0.0  ;;  %v1072_v60 = vmax.f32 %v1036_v54, 0.0  ;;  %v1054_v13 = vadd.f32 %v5033_v62, %v1010_v3  ;;  %v1052_v43 = vadd.f32 %v5033_v62, %v1008_v24 }
 0x260   : > { %v1071_v2 = vmax.f32 %v1035_v58, 0.0  ;;  %v1053_v21 = vadd.f32 %v5033_v62, %v1009_v14  ;;  %v1073_v22 = vmax.f32 %v1037_v17, 0.0  ;;  %v1055_v45 = vadd.f32 %v5033_v62, %v1011_v33 }
 0x261   : > { %v5036_v63 = vmul.f32 %v5020_v53, %v1070_v59  ;;  %v5039_v1 = vmul.f32 %v5026_v55, %v1072_v60  ;;  %v1090_v20 = vmax.f32 %v1054_v13, 0.0  ;;  %v1088_v47 = vmax.f32 %v1052_v43, 0.0 }
 0x262   : > { %v714_v5 = vpop.f32.mrb[4].mxu0  ;;  %v757_v6 = vpop.f32.mrb[4].mxu1  ;;  %v5056_v12 = vmul.f32 %v5031_v61, %v1071_v2  ;;  %v1089_v32 = vmax.f32 %v1053_v21, 0.0  ;;  %v5102_v42 = vmul.f32 %v5074_v23, %v1073_v22  ;;  %v7212_v54 = vsub.s32 4, %v4913_v18 }
 0x263   : > { %v5043_v7 = vpop.f32.mrb[5].mxu0  ;;  %v5045_v8 = vpop.f32.mrb[5].mxu1  ;;  %2438 = vrot.lane.b32.xlu0 %v5039_v1, %s4549_s16  ;;  %1369 = vrot.lane.b32.xlu1 %v5036_v63, %s4545_s12  ;;  %v5094_v31 = vmul.f32 %v5026_v55, %v1090_v20  ;;  %v994_v46 = vmul.f32 %v4999_v36, %v714_v5  ;;  %v1091_v58 = vmax.f32 %v1055_v45, 0.0  ;;  %v996_v60 = vmul.f32 %v4999_v36, %v757_v6  ;;  %v5256_v55 = vld [vmem:[#allocation7 + $0x8] sm:$0xff] }
 0x264   : > { %v5051_v9 = vpop.f32.mrb[6].mxu0  ;;  %v5053_v10 = vpop.f32.mrb[6].mxu1  ;;  %v5110_v44 = vmul.f32 %v5031_v61, %v1089_v32  ;;  %v5138_v4 = vmul.f32 %v5020_v53, %v1088_v47  ;;  %v5147_v13 = vrot.slane %v5009_v41, %v7212_v54  ;;  %v7210_v14 = vsub.s32 6, %v4913_v18 }
 0x265   : > { %v5060_v15 = vpop.f32.mrb[7].mxu0  ;;  %v5062_v16 = vpop.f32.mrb[7].mxu1  ;;  %v1038_v59 = vadd.f32 %v5003_v38, %v994_v46  ;;  %v5153_v6 = vmul.f32 %v5074_v23, %v1091_v58  ;;  %v1040_v20 = vadd.f32 %v5003_v38, %v996_v60  ;;  %v997_v21 = vmul.f32 %v4999_v36, %v5045_v8 }
 0x266   : > { %v5140_v5 = vpop.permute.xlu1 %1608  ;;  %7292 = vst [vmem:[#allocation29_spill] sm:$0xff] %v5147_v13  ;;  %v5167_v32 = vrot.slane %v5009_v41, %v7210_v14  ;;  %v7209_v33 = vsub.s32 7, %v4913_v18  ;;  %v995_v47 = vmul.f32 %v4999_v36, %v5043_v7  ;;  %v7211_v60 = vsub.s32 5, %v4913_v18 }
 0x267   : > { %1371 = vrot.lane.b32.xlu0 %v5056_v12, %s4545_s12  ;;  %1373 = vrot.lane.b32.xlu1 %v5039_v1, %s4545_s12  ;;  %v1074_v17 = vmax.f32 %v1038_v59, 0.0  ;;  %v1076_v46 = vmax.f32 %v1040_v20, 0.0  ;;  %v1041_v58 = vadd.f32 %v5003_v38, %v997_v21  ;;  %v1015_v23 = vmul.f32 %v5001_v37, %v5062_v16 }
 0x268   : > { %7293 = vst [vmem:[#allocation30_spill] sm:$0xff] %v5167_v32  ;;  %v5196_v7 = vrot.slane %v5009_v41, %v7209_v33  ;;  %v5214_v33 = vpop.permute.xlu0 %1725 }
 0x269   : > { %v5177_v45 = vmul.f32 %v5147_v13, %v1074_v17  ;;  %v5190_v0 = vmul.f32 %v5167_v32, %v1076_v46  ;;  %v1039_v17 = vadd.f32 %v5003_v38, %v995_v47  ;;  %v1077_v20 = vmax.f32 %v1041_v58, 0.0  ;;  %7297 = vst [vmem:[#allocation34_spill] sm:$0xff] %v5214_v33 }
 0x26a   : > { %v5077_v25 = vpop.f32.mrb[8].mxu0  ;;  %v5079_v26 = vpop.f32.mrb[8].mxu1  ;;  %7294 = vst [vmem:[#allocation31_spill] sm:$0xff] %v5196_v7  ;;  %v5207_v46 = vrot.slane %v5009_v41, %v7211_v60  ;;  %v1012_v58 = vmul.f32 %v5001_v37, %v5051_v9  ;;  %v1059_v61 = vadd.f32 %v5033_v62, %v1015_v23 }
 0x26b   : > { %v5081_v28 = vpop.f32.mrb[9].mxu0  ;;  %v5083_v27 = vpop.f32.mrb[9].mxu1  ;;  %2436 = vrot.lane.b32.xlu0 %v5056_v12, %s4549_s16  ;;  %2434 = vrot.lane.b32.xlu1 %v5036_v63, %s4549_s16  ;;  %v1075_v11 = vmax.f32 %v1039_v17, 0.0  ;;  %v5210_v47 = vmul.f32 %v5196_v7, %v1077_v20  ;;  %v1014_v20 = vmul.f32 %v5001_v37, %v5053_v10 }
 0x26c   : > { %v5089_v29 = vpop.f32.mrb[10].mxu0  ;;  %v5091_v30 = vpop.f32.mrb[10].mxu1  ;;  %7296 = vst [vmem:[#allocation33_spill] sm:$0xff] %v5207_v46  ;;  %v1056_v41 = vadd.f32 %v5033_v62, %v1012_v58  ;;  %v1013_v58 = vmul.f32 %v5001_v37, %v5060_v15 }
 0x26d   : > { %v5097_v34 = vpop.f32.mrb[11].mxu0  ;;  %v5099_v35 = vpop.f32.mrb[11].mxu1  ;;  %v5223_v14 = vmul.f32 %v5207_v46, %v1075_v11  ;;  %v1058_v54 = vadd.f32 %v5033_v62, %v1014_v20  ;;  %v1000_v11 = vmul.f32 %v4999_v36, %v5079_v26  ;;  %v998_v20 = vmul.f32 %v4999_v36, %v5077_v25 }
 0x26e   : > { %v5174_v8 = vpop.permute.xlu1 %1613  ;;  %v5230_v9 = vpop.permute.xlu0 %1841  ;;  %v1092_v60 = vmax.f32 %v1056_v41, 0.0  ;;  %v1057_v15 = vadd.f32 %v5033_v62, %v1013_v58  ;;  %v7300_v58 = vsub.s32 2, %v4913_v18 }
 0x26f   : > { %1415 = vrot.lane.b32.xlu0 %v5094_v31, %s4545_s12  ;;  %1375 = vrot.lane.b32.xlu1 %v5102_v42, %s4545_s12  ;;  %7299 = vst [vmem:[#allocation36_spill] sm:$0xff] %v5230_v9  ;;  %v1094_v41 = vmax.f32 %v1058_v54, 0.0  ;;  %v1044_v26 = vadd.f32 %v5003_v38, %v1000_v11 }
 0x270   : > { %v5246_v10 = vmul.f32 %v5147_v13, %v1092_v60  ;;  %v1042_v60 = vadd.f32 %v5003_v38, %v998_v20  ;;  %v5271_v16 = vrot.slane %v5256_v55, %v7300_v58  ;;  %v1093_v13 = vmax.f32 %v1057_v15, 0.0 }
 0x271   : > { %v5265_v25 = vmul.f32 %v5167_v32, %v1094_v41  ;;  %v1080_v11 = vmax.f32 %v1044_v26, 0.0  ;;  %v5282_v20 = vrot.slane %v5256_v55, %v5006_v39  ;;  %v1001_v15 = vmul.f32 %v4999_v36, %v5083_v27 }
 0x272   : > { %v5114_v48 = vpop.f32.mrb[12].mxu0  ;;  %v5116_v50 = vpop.f32.mrb[12].mxu1  ;;  %7301 = vst [vmem:[#allocation37_spill] sm:$0xff] %v5271_v16  ;;  %v1078_v41 = vmax.f32 %v1042_v60, 0.0  ;;  %v5290_v23 = vmul.f32 %v5207_v46, %v1093_v13  ;;  %v1095_v58 = vmax.f32 %v1059_v61, 0.0 }
 0x273   : > { %v5118_v51 = vpop.f32.mrb[13].mxu0  ;;  %v5120_v52 = vpop.f32.mrb[13].mxu1  ;;  %1413 = vrot.lane.b32.xlu0 %v5110_v44, %s4545_s12  ;;  %2440 = vrot.lane.b32.xlu1 %v5102_v42, %s4549_s16  ;;  %7303 = vst [vmem:[#allocation39_spill] sm:$0xff] %v5282_v20  ;;  %v5285_v26 = vmul.f32 %v5271_v16, %v1080_v11  ;;  %v999_v11 = vmul.f32 %v4999_v36, %v5081_v28  ;;  %v7308_v28 = vsub.s32 3, %v4913_v18 }
 0x274   : > { %v5127_v56 = vpop.f32.mrb[14].mxu0  ;;  %v5129_v57 = vpop.f32.mrb[14].mxu1  ;;  %v5299_v60 = vmul.f32 %v5282_v20, %v1078_v41  ;;  %v1045_v27 = vadd.f32 %v5003_v38, %v1001_v15  ;;  %v5307_v61 = vmul.f32 %v5196_v7, %v1095_v58 }
 0x275   : > { %v5133_v2 = vpop.f32.mrb[15].mxu0  ;;  %v5135_v3 = vpop.f32.mrb[15].mxu1  ;;  %7304 = vst [vmem:[#allocation40_spill] sm:$0xff] %v5285_v26  ;;  %v1043_v41 = vadd.f32 %v5003_v38, %v999_v11  ;;  %v5319_v15 = vrot.slane %v5256_v55, %v7308_v28  ;;  %v1018_v28 = vmul.f32 %v5001_v37, %v5091_v30 }
 0x276   : > { %v5198_v21 = vpop.permute.xlu1 %1729  ;;  %v5251_v40 = vpop.permute.xlu0 %2041  ;;  %7305 = vst [vmem:[#allocation41_spill] sm:$0xff] %v5299_v60  ;;  %7307 = vst [vmem:[#allocation43_spill] sm:$0xff] %v5307_v61  ;;  %v1081_v46 = vmax.f32 %v1045_v27, 0.0  ;;  %v1016_v27 = vmul.f32 %v5001_v37, %v5089_v29 }
 0x277   : > { %2478 = vrot.lane.b32.xlu0 %v5110_v44, %s4549_s16  ;;  %1411 = vrot.lane.b32.xlu1 %v5138_v4, %s4545_s12  ;;  %7295 = vst [vmem:[#allocation32_spill] sm:$0xff] %v5198_v21  ;;  %7309 = vst [vmem:[#allocation44_spill] sm:$0xff] %v5319_v15  ;;  %v1079_v7 = vmax.f32 %v1043_v41, 0.0  ;;  %v5329_v21 = vrot.slane %v5256_v55, %v5015_v49  ;;  %v1062_v30 = vadd.f32 %v5033_v62, %v1018_v28 }
 0x278   : > { %v5332_v11 = vmul.f32 %v5319_v15, %v1081_v46  ;;  %v1060_v46 = vadd.f32 %v5033_v62, %v1016_v27  ;;  %v1004_v27 = vmul.f32 %v4999_v36, %v5116_v50 }
 0x279   : > { %7310 = vst [vmem:[#allocation45_spill] sm:$0xff] %v5329_v21  ;;  %v5345_v41 = vmul.f32 %v5329_v21, %v1079_v7 }
 0x27a   : > { %v5158_v22 = vpop.f32.mrb[16].mxu0  ;;  %v5220_v17 = vpop.permute.xlu1 %1845  ;;  %7311 = vst [vmem:[#allocation46_spill] sm:$0xff] %v5332_v11  ;;  %v1096_v33 = vmax.f32 %v1060_v46, 0.0  ;;  %v7317_v46 = vsub.s32 4, %v4913_v18  ;;  %v1048_v50 = vadd.f32 %v5003_v38, %v1004_v27  ;;  %v7320_v27 = vsub.s32 6, %v4913_v18 }
 0x27b   : > { %v5160_v24 = vpop.f32.mrb[17].mxu0  ;;  %2482 = vrot.lane.b32.xlu0 %v5153_v6, %s4549_s16  ;;  %2476 = vrot.lane.b32.xlu1 %v5138_v4, %s4549_s16  ;;  %7298 = vst [vmem:[#allocation35_spill] sm:$0xff] %v5220_v17  ;;  %v5276_v53 = vpop.permute.xlu0 %2674  ;;  %7312 = vst [vmem:[#allocation47_spill] sm:$0xff] %v5345_v41 }
 0x27c   : > { %v5172_v43 = vpop.f32.mrb[18].mxu0  ;;  %7302 = vst [vmem:[#allocation38_spill] sm:$0xff] %v5276_v53  ;;  %v1002_v53 = vmul.f32 %v4999_v36, %v5114_v48  ;;  %v5369_v28 = vmul.f32 %v5282_v20, %v1096_v33  ;;  %v5393_v20 = vrot.slane %v5256_v55, %v7320_v27  ;;  %v1005_v27 = vmul.f32 %v4999_v36, %v5120_v52 }
 0x27d   : > { %v5182_v59 = vpop.f32.mrb[19].mxu0 }
 0x27e   : > { %v5239_v19 = vpop.permute.xlu1 %2037  ;;  %v1046_v7 = vadd.f32 %v5003_v38, %v1002_v53  ;;  %7316 = vst [vmem:[#allocation51_spill] sm:$0xff] %v5369_v28  ;;  %v5374_v53 = vrot.slane %v5256_v55, %v7317_v46  ;;  %7321 = vst [vmem:[#allocation54_spill] sm:$0xff] %v5393_v20 }
 0x27f   : > { %2442 = vrot.lane.b32.xlu0 %v5177_v45, %s4549_s16  ;;  %2480 = vrot.lane.b32.xlu1 %v5094_v31, %s4549_s16  ;;  %v5304_v17 = vpop.permute.xlu0 %2906 }
 0x280   : > { %7306 = vst [vmem:[#allocation42_spill] sm:$0xff] %v5304_v17  ;;  %7318 = vst [vmem:[#allocation52_spill] sm:$0xff] %v5374_v53 }
 0x282   : > { %v5262_v54 = vpop.permute.xlu1 %4164 }
 0x283   : > { %2446 = vrot.lane.b32.xlu0 %v5190_v0, %s4549_s16  ;;  %1417 = vrot.lane.b32.xlu1 %v5153_v6, %s4545_s12  ;;  %v5323_v58 = vpop.permute.xlu0 %2157 }
 0x286   : > { %v5292_v32 = vpop.permute.xlu1 %2153 }
 0x287   : > { %1383 = vrot.lane.b32.xlu0 %v5210_v47, %s4545_s12  ;;  %1377 = vrot.lane.b32.xlu1 %v5177_v45, %s4545_s12  ;;  %v5350_v29 = vpop.permute.xlu0 %2986 }
 0x288   : > { %7313 = vst [vmem:[#allocation48_spill] sm:$0xff] %v5350_v29 }
 0x28a   : > { %v5313_v13 = vpop.permute.xlu1 %4170 }
 0x28b   : > { %2444 = vrot.lane.b32.xlu0 %v5223_v14, %s4549_s16  ;;  %1381 = vrot.lane.b32.xlu1 %v5190_v0, %s4545_s12  ;;  %v5364_v48 = vpop.permute.xlu0 %2794  ;;  %v4172_v46 = vunpack.i.l.bf16 %v5313_v13 }
 0x28c   : > { %7315 = vst [vmem:[#allocation50_spill] sm:$0xff] %v5364_v48  ;;  %v1017_v48 = vmul.f32 %v5001_v37, %v5097_v34 }
 0x28e   : > { %v5338_v17 = vpop.permute.xlu1 %2269 }
 0x28f   : > { %2448 = vrot.lane.b32.xlu0 %v5210_v47, %s4549_s16  ;;  %1379 = vrot.lane.b32.xlu1 %v5223_v14, %s4545_s12  ;;  %v5402_v33 = vpop.permute.xlu0 %3034 }
 0x290   : > { %7322 = vst [vmem:[#allocation55_spill] sm:$0xff] %v5402_v33  ;;  %v421_v33 = vld [vmem:[#allocation7 + $0x10] sm:$0x3] }
 0x292   : > { %v5355_v9 = vpop.permute.xlu1 %2678 }
 0x293   : > { %1419 = vrot.lane.b32.xlu0 %v5246_v10, %s4545_s12  ;;  %2484 = vrot.lane.b32.xlu1 %v5246_v10, %s4549_s16  ;;  %7314 = vst [vmem:[#allocation49_spill] sm:$0xff] %v5355_v9  ;;  %v1082_v9 = vmax.f32 %v1046_v7, 0.0  ;;  %v4173_v7 = vunpack.i.h.bf16 %v5313_v13  ;;  %v1061_v13 = vadd.f32 %v5033_v62, %v1017_v48 }
 0x295   : > { %v5398_v34 = vmul.f32 %v5374_v53, %v1082_v9  ;;  %v1022_v9 = vmul.f32 %v5001_v37, %v5129_v57  ;;  %v1023_v57 = vmul.f32 %v5001_v37, %v5135_v3 }
 0x297   : > { %1423 = vrot.lane.b32.xlu0 %v5265_v25, %s4545_s12  ;;  %2488 = vrot.lane.b32.xlu1 %v5265_v25, %s4549_s16 }
 0x29b   : > { %1389 = vrot.lane.b32.xlu0 %v5285_v26, %s4545_s12  ;;  %1421 = vrot.lane.b32.xlu1 %v5290_v23, %s4545_s12 }
 0x29f   : > { %2450 = vrot.lane.b32.xlu0 %v5299_v60, %s4549_s16  ;;  %1425 = vrot.lane.b32.xlu1 %v5307_v61, %s4545_s12 }
 0x2a3   : > { %2454 = vrot.lane.b32.xlu0 %v5285_v26, %s4549_s16  ;;  %2486 = vrot.lane.b32.xlu1 %v5290_v23, %s4549_s16  ;;  %v1098_v26 = vmax.f32 %v1062_v30, 0.0  ;;  %v5377_v30 = vpop.permute.xlu1 %2790 }
 0x2a4   : > { %7319 = vst [vmem:[#allocation53_spill] sm:$0xff] %v5377_v30  ;;  %v1020_v30 = vmul.f32 %v5001_v37, %v5127_v56  ;;  %v1021_v56 = vmul.f32 %v5001_v37, %v5133_v2 }
 0x2a5   : > { %v5380_v29 = vmul.f32 %v5271_v16, %v1098_v26  ;;  %v1084_v26 = vmax.f32 %v1048_v50, 0.0  ;;  %v1019_v16 = vmul.f32 %v5001_v37, %v5099_v35  ;;  %v7326_v35 = vsub.s32 7, %v4913_v18 }
 0x2a7   : > { %1391 = vrot.lane.b32.xlu0 %v5332_v11, %s4545_s12  ;;  %2490 = vrot.lane.b32.xlu1 %v5307_v61, %s4549_s16  ;;  %v5413_v50 = vpop.permute.xlu1 %2910  ;;  %v5425_v52 = vrot.slane %v5256_v55, %v7326_v35  ;;  %v7329_v35 = vunpack.i.h.bf16 %v5262_v54  ;;  %v1063_v3 = vadd.f32 %v5033_v62, %v1019_v16  ;;  %v5450_v61 = vrot.slane %v421_v33, %v5006_v39 }
 0x2a8   : > { %7323 = vst [vmem:[#allocation56_spill] sm:$0xff] %v5413_v50  ;;  %v5434_v50 = vmul.f32 %v5393_v20, %v1084_v26  ;;  %v1066_v26 = vadd.f32 %v5033_v62, %v1022_v9  ;;  %v1065_v16 = vadd.f32 %v5033_v62, %v1021_v56 }
 0x2a9   : > { %7327 = vst [vmem:[#allocation58_spill] sm:$0xff] %v5425_v52  ;;  %v1470_v2 = vsel %vm1449_vm2, %v4173_v7, %v7329_v35  ;;  %7330 = vst [vmem:[#allocation59_spill] sm:$0xff] %v5450_v61  ;;  %v5456_v7 = vpop.permute.xlu0 %2273 }
 0x2aa   : > { %v5475_v9 = vmul.f32 %v5174_v8, %v1470_v2  ;;  %v5584_v2 = vmul.f32 %v5456_v7, %v5110_v44 }
 0x2ab   : > { %2452 = vrot.lane.b32.xlu0 %v5345_v41, %s4549_s16  ;;  %1385 = vrot.lane.b32.xlu1 %v5299_v60, %s4545_s12  ;;  %v1049_v60 = vadd.f32 %v5003_v38, %v1005_v27 }
 0x2af   : > { %2456 = vrot.lane.b32.xlu0 %v5332_v11, %s4549_s16  ;;  %1387 = vrot.lane.b32.xlu1 %v5345_v41, %s4545_s12  ;;  %v1003_v11 = vmul.f32 %v4999_v36, %v5118_v51  ;;  %v7324_v51 = vsub.s32 5, %v4913_v18  ;;  %v7328_v18 = vunpack.i.l.bf16 %v5262_v54  ;;  %v1097_v41 = vmax.f32 %v1061_v13, 0.0 }
 0x2b0   : > { %v5461_v13 = vrot.slane %v421_v33, %v5015_v49  ;;  %v1099_v33 = vmax.f32 %v1063_v3, 0.0 }
 0x2b1   : > { %v5420_v48 = vrot.slane %v5256_v55, %v7324_v51  ;;  %v1047_v51 = vadd.f32 %v5003_v38, %v1003_v11  ;;  %v1450_v55 = vsel %vm1449_vm2, %v4172_v46, %v7328_v18  ;;  %v1006_v11 = vmul.f32 %v4999_v36, %v5158_v22 }
 0x2b2   : > { %v1007_v46 = vmul.f32 %v4999_v36, %v5160_v24  ;;  %7331 = vst [vmem:[#allocation60_spill] sm:$0xff] %v5461_v13  ;;  %v1024_v22 = vmul.f32 %v5001_v37, %v5172_v43  ;;  %v1025_v36 = vmul.f32 %v5001_v37, %v5182_v59  ;;  %v5469_v24 = vpop.permute.xlu1 %4182  ;;  %v5472_v27 = vmul.f32 %v5140_v5, %v1450_v55 }
 0x2b3   : > { %1427 = vrot.lane.b32.xlu0 %v5369_v28, %s4545_s12  ;;  %1431 = vrot.lane.b32.xlu1 %v5380_v29, %s4545_s12  ;;  %7325 = vst [vmem:[#allocation57_spill] sm:$0xff] %v5420_v48  ;;  %v1083_v39 = vmax.f32 %v1047_v51, 0.0  ;;  %v5478_v49 = vmul.f32 %v5329_v21, %v1097_v41  ;;  %v1085_v43 = vmax.f32 %v1049_v60, 0.0  ;;  %v1050_v51 = vadd.f32 %v5003_v38, %v1006_v11  ;;  %v5491_v60 = vpop.permute.xlu0 %4191 }
 0x2b4   : > { %v1051_v18 = vadd.f32 %v5003_v38, %v1007_v46  ;;  %v5485_v37 = vmul.f32 0.0, %v5239_v19  ;;  %v1101_v59 = vmax.f32 %v1065_v16, 0.0  ;;  %v1068_v35 = vadd.f32 %v5033_v62, %v1024_v22  ;;  %7332 = vst [vmem:[#allocation61_spill] sm:$0xff] %v5491_v60 }
 0x2b5   : > { %v1069_v38 = vadd.f32 %v5033_v62, %v1025_v36  ;;  %v5503_v11 = vmul.f32 %v5425_v52, %v1085_v43  ;;  %v1086_v22 = vmax.f32 %v1050_v51, 0.0  ;;  %v5532_v51 = vmul.f32 %v5338_v17, %v5056_v12 }
 0x2b6   : > { %v5519_v36 = vmul.f32 %v5420_v48, %v1101_v59  ;;  %v1104_v43 = vmax.f32 %v1068_v35, 0.0  ;;  %v5540_v59 = vmul.f32 %v5292_v32, %v5036_v63  ;;  %v5548_v35 = vmul.f32 %v5292_v32, %v5039_v1 }
 0x2b7   : > { %1393 = vrot.lane.b32.xlu0 %v5398_v34, %s4545_s12  ;;  %2492 = vrot.lane.b32.xlu1 %v5369_v28, %s4549_s16  ;;  %v1064_v28 = vadd.f32 %v5033_v62, %v1020_v30  ;;  %v1067_v30 = vadd.f32 %v5033_v62, %v1023_v57  ;;  %v1102_v57 = vmax.f32 %v1066_v26, 0.0  ;;  %v5500_v26 = vmul.f32 %v5319_v15, %v1099_v33 }
 0x2b8   : > { %v1087_v62 = vmax.f32 %v1051_v18, 0.0  ;;  %v5536_v18 = vmul.f32 %v5338_v17, %v5039_v1  ;;  %v5555_v3 = vmul.f32 %v5450_v61, %v1086_v22  ;;  %v5570_v41 = vmul.f32 %v5450_v61, %v1104_v43 }
 0x2b9   : > { %v1100_v56 = vmax.f32 %v1064_v28, 0.0  ;;  %v1103_v55 = vmax.f32 %v1067_v30, 0.0  ;;  %v5494_v28 = vmul.f32 %v5420_v48, %v1083_v39  ;;  %v5510_v30 = vmul.f32 %v5393_v20, %v1102_v57  ;;  %v5601_v20 = vpop.permute.xlu1 %2990 }
 0x2ba   : > { %v5516_v39 = vmul.f32 %v5239_v19, %v5036_v63  ;;  %v1105_v57 = vmax.f32 %v1069_v38, 0.0  ;;  %v5552_v38 = vmul.f32 %v5338_v17, %v5102_v42  ;;  %v5558_v16 = vmul.f32 %v5461_v13, %v1087_v62 }
 0x2bb   : > { %1397 = vrot.lane.b32.xlu0 %v5434_v50, %s4545_s12  ;;  %2496 = vrot.lane.b32.xlu1 %v5380_v29, %s4549_s16  ;;  %v5506_v46 = vmul.f32 %v5374_v53, %v1100_v56  ;;  %v5522_v33 = vmul.f32 %v5425_v52, %v1103_v55  ;;  %v5528_v56 = vmul.f32 %v5292_v32, %v5056_v12  ;;  %v5563_v63 = vmul.f32 0.0, %v5251_v40 }
 0x2bc   : > { %v5544_v55 = vmul.f32 %v5239_v19, %v5056_v12  ;;  %v5567_v12 = vmul.f32 %v5251_v40, %v5138_v4  ;;  %v5576_v22 = vmul.f32 %v5323_v58, %v5138_v4  ;;  %v5580_v62 = vmul.f32 %v5323_v58, %v5110_v44 }
 0x2bd   : > { %v5587_v52 = vmul.f32 %v5461_v13, %v1105_v57  ;;  %v5591_v43 = vmul.f32 %v5456_v7, %v5094_v31  ;;  %v5595_v61 = vmul.f32 %v5251_v40, %v5110_v44  ;;  %v5599_v4 = vmul.f32 %v5323_v58, %v5094_v31 }
 0x2be   : > { %v5605_v48 = vmul.f32 %v5239_v19, %v5039_v1  ;;  %v5609_v57 = vmul.f32 %v5292_v32, %v5102_v42  ;;  %v5613_v13 = vmul.f32 %v5338_v17, %v5177_v45  ;;  %v5617_v44 = vmul.f32 %v5239_v19, %v5102_v42 }
 0x2bf   : > { %2458 = vrot.lane.b32.xlu0 %v5398_v34, %s4549_s16  ;;  %1429 = vrot.lane.b32.xlu1 %v5478_v49, %s4545_s12  ;;  %v5623_v53 = vmul.f32 %v5239_v19, %v5177_v45  ;;  %v5627_v1 = vmul.f32 %v5239_v19, %v5223_v14  ;;  %v5631_v15 = vmul.f32 %v5292_v32, %v5177_v45 }
 0x2c0   : > { %v5635_v21 = vmul.f32 %v5292_v32, %v5223_v14  ;;  %v5641_v42 = vmul.f32 %v5292_v32, %v5190_v0  ;;  %v5645_v60 = vmul.f32 %v5338_v17, %v5223_v14  ;;  %v5653_v45 = vmul.f32 %v5251_v40, %v5094_v31 }
 0x2c1   : > { %7333 = vst [vmem:[#allocation62_spill] sm:$0xff] %v5623_v53  ;;  %7334 = vst [vmem:[#allocation63_spill] sm:$0xff] %v5627_v1  ;;  %v5649_v1 = vmul.f32 %v5338_v17, %v5190_v0  ;;  %v5665_v14 = vmul.f32 %v5456_v7, %v5246_v10  ;;  %v5673_v31 = vmul.f32 %v5251_v40, %v5246_v10 }
 0x2c2   : > { %7335 = vst [vmem:[#allocation64_spill] sm:$0xff] %v5631_v15  ;;  %7336 = vst [vmem:[#allocation65_spill] sm:$0xff] %v5635_v21  ;;  %v5657_v21 = vmul.f32 %v5323_v58, %v5153_v6  ;;  %v5661_v15 = vmul.f32 %v5456_v7, %v5153_v6 }
 0x2c3   : > { %1395 = vrot.lane.b32.xlu0 %v5494_v28, %s4545_s12  ;;  %1433 = vrot.lane.b32.xlu1 %v5500_v26, %s4545_s12  ;;  %7337 = vst [vmem:[#allocation66_spill] sm:$0xff] %v5641_v42  ;;  %7338 = vst [vmem:[#allocation67_spill] sm:$0xff] %v5645_v60  ;;  %v5669_v60 = vmul.f32 %v5251_v40, %v5153_v6  ;;  %v5685_v42 = vmul.f32 %v5251_v40, %v5290_v23 }
 0x2c4   : > { %7339 = vst [vmem:[#allocation68_spill] sm:$0xff] %v5649_v1  ;;  %7340 = vst [vmem:[#allocation69_spill] sm:$0xff] %v5653_v45  ;;  %v5677_v1 = vmul.f32 %v5323_v58, %v5246_v10  ;;  %v5691_v6 = vmul.f32 %v5323_v58, %v5290_v23  ;;  %v5699_v10 = vmul.f32 %v5456_v7, %v5290_v23  ;;  %v7399_v45 = vld [vmem:[#allocation36_spill] sm:$0xff] }
 0x2c5   : > { %7341 = vst [vmem:[#allocation70_spill] sm:$0xff] %v5657_v21  ;;  %7342 = vst [vmem:[#allocation71_spill] sm:$0xff] %v5665_v14  ;;  %v5681_v21 = vmul.f32 %v5338_v17, %v5210_v47  ;;  %v5719_v23 = vmul.f32 %v5292_v32, %v5210_v47 }
 0x2c6   : > { %7343 = vst [vmem:[#allocation72_spill] sm:$0xff] %v5669_v60  ;;  %7344 = vst [vmem:[#allocation73_spill] sm:$0xff] %v5673_v31  ;;  %v5695_v31 = vmul.f32 %v5323_v58, %v5265_v25  ;;  %v7352_v60 = vld [vmem:[#allocation43_spill] sm:$0xff] }
 0x2c7   : > { %1399 = vrot.lane.b32.xlu0 %v5503_v11, %s4545_s12  ;;  %2494 = vrot.lane.b32.xlu1 %v5478_v49, %s4549_s16  ;;  %7345 = vst [vmem:[#allocation74_spill] sm:$0xff] %v5677_v1  ;;  %7346 = vst [vmem:[#allocation75_spill] sm:$0xff] %v5681_v21  ;;  %v5703_v1 = vmul.f32 %v5456_v7, %v5265_v25  ;;  %v5727_v21 = vmul.f32 %v5239_v19, %v5210_v47 }
 0x2c8   : > { %7347 = vst [vmem:[#allocation76_spill] sm:$0xff] %v5685_v42  ;;  %7348 = vst [vmem:[#allocation77_spill] sm:$0xff] %v5691_v6  ;;  %v5707_v42 = vpop.permute.xlu1 %3030  ;;  %v5711_v6 = vmul.f32 %v5456_v7, %v7352_v60 }
 0x2c9   : > { %7349 = vst [vmem:[#allocation78_spill] sm:$0xff] %v5695_v31  ;;  %7350 = vst [vmem:[#allocation79_spill] sm:$0xff] %v5699_v10  ;;  %v5715_v31 = vmul.f32 %v5239_v19, %v5190_v0  ;;  %v7356_v10 = vld [vmem:[#allocation41_spill] sm:$0xff] }
 0x2ca   : > { %7351 = vst [vmem:[#allocation80_spill] sm:$0xff] %v5703_v1  ;;  %7353 = vst [vmem:[#allocation43_spill] sm:$0xff] %v5711_v6  ;;  %v5723_v1 = vmul.f32 %v5338_v17, %v7356_v10  ;;  %v5731_v14 = vmul.f32 %v5239_v19, %v7356_v10  ;;  %v7360_v6 = vld [vmem:[#allocation47_spill] sm:$0xff] }
 0x2cb   : > { %2504 = vrot.lane.b32.xlu0 %v5510_v30, %s4549_s16  ;;  %2498 = vrot.lane.b32.xlu1 %v5500_v26, %s4549_s16  ;;  %7354 = vst [vmem:[#allocation81_spill] sm:$0xff] %v5715_v31  ;;  %7355 = vst [vmem:[#allocation82_spill] sm:$0xff] %v5719_v23  ;;  %v5735_v0 = vmul.f32 %v5239_v19, %v7360_v6  ;;  %v5739_v31 = vmul.f32 %v5292_v32, %v7356_v10 }
 0x2cc   : > { %7357 = vst [vmem:[#allocation41_spill] sm:$0xff] %v5723_v1  ;;  %7358 = vst [vmem:[#allocation83_spill] sm:$0xff] %v5727_v21  ;;  %v5743_v23 = vmul.f32 %v5292_v32, %v7360_v6  ;;  %v7364_v1 = vld [vmem:[#allocation40_spill] sm:$0xff]  ;;  %v5751_v21 = vmul.f32 %v5338_v17, %v7360_v6  ;;  %v5761_v10 = vmul.f32 %v5251_v40, %v5265_v25  ;;  %v7371_v6 = vld [vmem:[#allocation46_spill] sm:$0xff] }
 0x2cd   : > { %7359 = vst [vmem:[#allocation84_spill] sm:$0xff] %v5731_v14  ;;  %7361 = vst [vmem:[#allocation47_spill] sm:$0xff] %v5735_v0  ;;  %v5747_v47 = vmul.f32 %v5292_v32, %v7364_v1  ;;  %v5757_v0 = vmul.f32 %v5338_v17, %v7364_v1  ;;  %v5783_v25 = vmul.f32 %v5338_v17, %v7371_v6 }
 0x2ce   : > { %7362 = vst [vmem:[#allocation85_spill] sm:$0xff] %v5739_v31  ;;  %7363 = vst [vmem:[#allocation86_spill] sm:$0xff] %v5743_v23  ;;  %v5765_v23 = vmul.f32 %v5323_v58, %v7352_v60 }
 0x2cf   : > { %2502 = vrot.lane.b32.xlu0 %v5519_v36, %s4549_s16  ;;  %2462 = vrot.lane.b32.xlu1 %v5434_v50, %s4549_s16  ;;  %7365 = vst [vmem:[#allocation40_spill] sm:$0xff] %v5747_v47  ;;  %7366 = vst [vmem:[#allocation87_spill] sm:$0xff] %v5751_v21  ;;  %v5769_v47 = vmul.f32 %v5239_v19, %v7364_v1  ;;  %v5775_v21 = vmul.f32 %v5292_v32, %v7371_v6 }
 0x2d0   : > { %7367 = vst [vmem:[#allocation88_spill] sm:$0xff] %v5757_v0  ;;  %7368 = vst [vmem:[#allocation89_spill] sm:$0xff] %v5761_v10  ;;  %v7373_v0 = vld [vmem:[#allocation51_spill] sm:$0xff]  ;;  %v5809_v10 = vmul.f32 %v5239_v19, %v5398_v34 }
 0x2d1   : > { %7369 = vst [vmem:[#allocation90_spill] sm:$0xff] %v5765_v23  ;;  %7370 = vst [vmem:[#allocation91_spill] sm:$0xff] %v5769_v47  ;;  %v5779_v31 = vmul.f32 %v5456_v7, %v7373_v0  ;;  %v5787_v23 = vmul.f32 %v5338_v17, %v5398_v34  ;;  %v5793_v47 = vmul.f32 %v5251_v40, %v7352_v60 }
 0x2d2   : > { %7372 = vst [vmem:[#allocation46_spill] sm:$0xff] %v5775_v21  ;;  %7375 = vst [vmem:[#allocation92_spill] sm:$0xff] %v5783_v25  ;;  %v5797_v21 = vmul.f32 %v5251_v40, %v7373_v0  ;;  %v5805_v25 = vmul.f32 %v5239_v19, %v7371_v6  ;;  %v5813_v60 = vmul.f32 %v5292_v32, %v5398_v34  ;;  %v7385_v6 = vunpack.i.l.bf16 %v5262_v54 }
 0x2d3   : > { %1401 = vrot.lane.b32.xlu0 %v5555_v3, %s4545_s12  ;;  %2460 = vrot.lane.b32.xlu1 %v5494_v28, %s4549_s16  ;;  %7374 = vst [vmem:[#allocation51_spill] sm:$0xff] %v5779_v31  ;;  %7376 = vst [vmem:[#allocation93_spill] sm:$0xff] %v5787_v23  ;;  %v5801_v31 = vmul.f32 %v5323_v58, %v7373_v0  ;;  %v5821_v0 = vmul.f32 %v5239_v19, %v5494_v28 }
 0x2d4   : > { %7377 = vst [vmem:[#allocation94_spill] sm:$0xff] %v5793_v47  ;;  %7378 = vst [vmem:[#allocation95_spill] sm:$0xff] %v5797_v21  ;;  %v5817_v21 = vmul.f32 %v5251_v40, %v5478_v49  ;;  %v5834_v34 = vmul.f32 %v5323_v58, %v5380_v29 }
 0x2d5   : > { %v5789_v1 = vpop.permute.xlu0 %2438  ;;  %7379 = vst [vmem:[#allocation96_spill] sm:$0xff] %v5801_v31  ;;  %7380 = vst [vmem:[#allocation97_spill] sm:$0xff] %v5805_v25  ;;  %v1370_v23 = vpop.permute.xlu1 %1369 }
 0x2d6   : > { %7381 = vst [vmem:[#allocation98_spill] sm:$0xff] %v5809_v10  ;;  %7382 = vst [vmem:[#allocation99_spill] sm:$0xff] %v5813_v60  ;;  %v1451_v25 = vsel %vm1449_vm2, %v7385_v6, %v1370_v23  ;;  %v5830_v10 = vmul.f32 %v5323_v58, %v5478_v49  ;;  %v5845_v6 = vmul.f32 %v5456_v7, %v5380_v29 }
 0x2d7   : > { %7383 = vst [vmem:[#allocation100_spill] sm:$0xff] %v5817_v21  ;;  %7384 = vst [vmem:[#allocation101_spill] sm:$0xff] %v5821_v0  ;;  %1403 = vrot.lane.b32.xlu0 %v5558_v16, %s4545_s12  ;;  %v5838_v21 = vmul.f32 %v5456_v7, %v5478_v49  ;;  %v7389_v0 = vld [vmem:[#allocation34_spill] sm:$0xff]  ;;  %2464 = vrot.lane.b32.xlu1 %v5503_v11, %s4549_s16  ;;  %v5857_v49 = vmul.f32 %v5292_v32, %v5494_v28 }
 0x2d8   : > { %7386 = vst [vmem:[#allocation102_spill] sm:$0xff] %v5830_v10  ;;  %7387 = vst [vmem:[#allocation103_spill] sm:$0xff] %v5834_v34  ;;  %v1732_v60 = vmul.f32 %v7389_v0, %v1451_v25  ;;  %v5849_v10 = vmul.f32 %v5456_v7, %v5500_v26  ;;  %v5853_v34 = vmul.f32 %v5239_v19, %v5434_v50 }
 0x2d9   : > { %7388 = vst [vmem:[#allocation104_spill] sm:$0xff] %v5838_v21  ;;  %7390 = vst [vmem:[#allocation34_spill] sm:$0xff] %v5845_v6  ;;  %v1372_v31 = vpop.permute.xlu0 %1371  ;;  %v5861_v21 = vmul.f32 %v5292_v32, %v5434_v50  ;;  %v5865_v6 = vmul.f32 %v5338_v17, %v5494_v28  ;;  %v1617_v47 = vmul.f32 %v5140_v5, %v1451_v25  ;;  %v1374_v14 = vpop.permute.xlu1 %1373 }
 0x2da   : > { %7391 = vst [vmem:[#allocation105_spill] sm:$0xff] %v5849_v10  ;;  %7392 = vst [vmem:[#allocation106_spill] sm:$0xff] %v5853_v34  ;;  %v5869_v10 = vmul.f32 %v5338_v17, %v5434_v50  ;;  %v1452_v34 = vsel %vm1449_vm2, %v1370_v23, %v1372_v31  ;;  %v1768_v28 = vadd.f32 %v1732_v60, %v5472_v27 }
 0x2db   : > { %7393 = vst [vmem:[#allocation107_spill] sm:$0xff] %v5857_v49  ;;  %7394 = vst [vmem:[#allocation108_spill] sm:$0xff] %v5861_v21  ;;  %v5875_v49 = vmul.f32 %v5338_v17, %v5503_v11  ;;  %v5879_v21 = vmul.f32 %v5239_v19, %v5503_v11  ;;  %v1848_v50 = vmul.f32 %v7399_v45, %v1452_v34  ;;  %2506 = vrot.lane.b32.xlu0 %v5522_v33, %s4549_s16 }
 0x2dc   : > { %7395 = vst [vmem:[#allocation109_spill] sm:$0xff] %v5865_v6  ;;  %7396 = vst [vmem:[#allocation110_spill] sm:$0xff] %v5869_v10  ;;  %v1733_v6 = vmul.f32 %v7389_v0, %v1452_v34  ;;  %v5885_v10 = vsel %vm1449_vm2, %v1372_v31, %v1374_v14  ;;  %1435 = vrot.lane.b32.xlu1 %v5506_v46, %s4545_s12  ;;  %v5893_v23 = vmul.f32 %v5239_v19, %v5555_v3 }
 0x2dd   : > { %7397 = vst [vmem:[#allocation111_spill] sm:$0xff] %v5875_v49  ;;  %7398 = vst [vmem:[#allocation112_spill] sm:$0xff] %v5879_v21  ;;  %v5897_v27 = vmul.f32 %v5292_v32, %v5555_v3  ;;  %v5901_v25 = vmul.f32 %v5292_v32, %v5558_v16  ;;  %v5905_v31 = vmul.f32 %v5292_v32, %v5503_v11  ;;  %v2437_v53 = vpop.permute.xlu0 %2436 }
 0x2de   : > { %7400 = vst [vmem:[#allocation36_spill] sm:$0xff] %v5893_v23  ;;  %v1769_v60 = vadd.f32 %v1733_v6, %v1617_v47  ;;  %v1884_v21 = vadd.f32 %v1848_v50, %v1768_v28  ;;  %v1849_v49 = vmul.f32 %v7399_v45, %v5885_v10  ;;  %v5911_v19 = vmul.f32 %v5338_v17, %v5555_v3  ;;  %v2435_v23 = vpop.permute.xlu1 %2434 }
 0x2df   : > { %7401 = vst [vmem:[#allocation113_spill] sm:$0xff] %v5897_v27  ;;  %7402 = vst [vmem:[#allocation114_spill] sm:$0xff] %v5901_v25  ;;  %v5915_v27 = vmul.f32 %v5251_v40, %v5380_v29  ;;  %v5919_v25 = vmul.f32 %v5323_v58, %v5500_v26  ;;  %v5923_v32 = vmul.f32 %v5456_v7, %v5506_v46  ;;  %2508 = vrot.lane.b32.xlu0 %v5570_v41, %s4549_s16 }
 0x2e0   : > { %7403 = vst [vmem:[#allocation115_spill] sm:$0xff] %v5905_v31  ;;  %7404 = vst [vmem:[#allocation116_spill] sm:$0xff] %v5911_v19  ;;  %v5927_v11 = vmul.f32 %v5251_v40, %v5500_v26  ;;  %v2080_v47 = vadd.f32 %v5485_v37, %v1884_v21  ;;  %v1885_v6 = vadd.f32 %v1849_v49, %v1769_v60  ;;  %1439 = vrot.lane.b32.xlu1 %v5510_v30, %s4545_s12 }
 0x2e1   : > { %7405 = vst [vmem:[#allocation117_spill] sm:$0xff] %v5915_v27  ;;  %7406 = vst [vmem:[#allocation118_spill] sm:$0xff] %v5919_v25  ;;  %v5934_v29 = vmul.f32 %v5251_v40, %v5506_v46  ;;  %v5938_v28 = vmul.f32 %v5323_v58, %v5506_v46  ;;  %v1618_v50 = vmul.f32 %v5140_v5, %v1452_v34 }
 0x2e2   : > { %7407 = vst [vmem:[#allocation119_spill] sm:$0xff] %v5923_v32  ;;  %7408 = vst [vmem:[#allocation120_spill] sm:$0xff] %v5927_v11  ;;  %v1734_v26 = vmul.f32 %v7389_v0, %v5885_v10  ;;  %v7411_v11 = vunpack.i.l.bf16 %v5469_v24  ;;  %v5950_v37 = vmul.f32 %v5323_v58, %v5519_v36  ;;  %v2081_v49 = vadd.f32 %v5516_v39, %v1885_v6  ;;  %v5965_v32 = vpop.permute.xlu1 %1375 }
 0x2e3   : > { %7409 = vst [vmem:[#allocation121_spill] sm:$0xff] %v5934_v29  ;;  %7410 = vst [vmem:[#allocation122_spill] sm:$0xff] %v5938_v28  ;;  %v2196_v60 = vadd.f32 %v5540_v59, %v2080_v47  ;;  %v5954_v28 = vpop.permute.xlu0 %1415  ;;  %v5958_v34 = vmul.f32 %v5456_v7, %v5519_v36  ;;  %v2518_v29 = vsel %vm2516_vm3, %v2435_v23, %v2437_v53  ;;  %2510 = vrot.lane.b32.xlu0 %v5587_v52, %s4549_s16 }
 0x2e4   : > { %v2517_v21 = vsel %vm2516_vm3, %v7411_v11, %v2435_v23  ;;  %7412 = vst [vmem:[#allocation123_spill] sm:$0xff] %v5950_v37  ;;  %v5962_v11 = vmul.f32 %v5456_v7, %v5510_v30  ;;  %v5969_v37 = vmul.f32 %v5251_v40, %v5519_v36  ;;  %v5973_v39 = vmul.f32 %v5323_v58, %v5510_v30 }
 0x2e5   : > { %7413 = vst [vmem:[#allocation124_spill] sm:$0xff] %v5958_v34  ;;  %v5977_v59 = vmul.f32 %v5456_v7, %v5522_v33  ;;  %v2197_v47 = vadd.f32 %v5528_v56, %v2081_v49  ;;  %v2312_v6 = vadd.f32 %v5532_v51, %v2196_v60  ;;  %v1454_v34 = vsel %vm1449_vm2, %v1374_v14, %v5965_v32  ;;  %v7420_v49 = vld [vmem:[#allocation53_spill] sm:$0xff] }
 0x2e6   : > { %7414 = vst [vmem:[#allocation125_spill] sm:$0xff] %v5962_v11  ;;  %7415 = vst [vmem:[#allocation126_spill] sm:$0xff] %v5969_v37  ;;  %v7418_v11 = vld [vmem:[#allocation38_spill] sm:$0xff]  ;;  %v1770_v37 = vadd.f32 %v1734_v26, %v1618_v50  ;;  %v1850_v25 = vmul.f32 %v7399_v45, %v1454_v34  ;;  %2500 = vrot.lane.b32.xlu1 %v5506_v46, %s4549_s16  ;;  %v5993_v56 = vmul.f32 %v5251_v40, %v5510_v30 }
 0x2e7   : > { %7416 = vst [vmem:[#allocation127_spill] sm:$0xff] %v5973_v39  ;;  %7417 = vst [vmem:[#allocation128_spill] sm:$0xff] %v5977_v59  ;;  %v2681_v23 = vmul.f32 %v7418_v11, %v2517_v21  ;;  %v2519_v39 = vsel %vm2516_vm3, %v2437_v53, %v5789_v1  ;;  %v2313_v51 = vadd.f32 %v5536_v18, %v2197_v47  ;;  %v1414_v50 = vpop.permute.xlu0 %1413  ;;  %v5998_v59 = vpop.permute.xlu1 %2440 }
 0x2e8   : > { %7419 = vst [vmem:[#allocation129_spill] sm:$0xff] %v5993_v56  ;;  %v2682_v14 = vmul.f32 %v7418_v11, %v2518_v29  ;;  %v2797_v60 = vmul.f32 %v7420_v49, %v2518_v29  ;;  %v1886_v26 = vadd.f32 %v1850_v25, %v1770_v37  ;;  %v6002_v53 = vmul.f32 %v5323_v58, %v5522_v33 }
 0x2e9   : > { %v2717_v21 = vadd.f32 %v2681_v23, %v2312_v6  ;;  %v6006_v46 = vmul.f32 %v5456_v7, %v5570_v41  ;;  %v6010_v30 = vmul.f32 %v5251_v40, %v5522_v33  ;;  %v2798_v18 = vmul.f32 %v7420_v49, %v2519_v39  ;;  %v7426_v6 = vld [vmem:[#allocation42_spill] sm:$0xff] }
 0x2ea   : > { %7421 = vst [vmem:[#allocation130_spill] sm:$0xff] %v6002_v53  ;;  %v2718_v47 = vadd.f32 %v2682_v14, %v2313_v51  ;;  %v7424_v25 = vmov 0.0   ;;  %v6017_v37 = vmul.f32 %v5251_v40, %v5570_v41  ;;  %v2913_v23 = vmul.f32 %v7426_v6, %v2519_v39  ;;  %1437 = vrot.lane.b32.xlu1 %v5519_v36, %s4545_s12 }
 0x2eb   : > { %7422 = vst [vmem:[#allocation131_spill] sm:$0xff] %v6006_v46  ;;  %7423 = vst [vmem:[#allocation132_spill] sm:$0xff] %v6010_v30  ;;  %v2833_v29 = vadd.f32 %v2797_v60, %v2717_v21  ;;  %4201 = vrot.lane.b32.xlu0 %v7424_v25, %s4549_s16  ;;  %v2082_v53 = vadd.f32 %v5544_v55, %v1886_v26  ;;  %v2520_v46 = vsel %vm2516_vm3, %v5789_v1, %v5998_v59  ;;  %v6030_v21 = vpop.permute.xlu0 %2478  ;;  %v7437_v56 = vmov 0  }
 0x2ec   : > { %7425 = vst [vmem:[#allocation133_spill] sm:$0xff] %v6017_v37  ;;  %v6028_v51 = vmul.f32 %v5323_v58, %v5570_v41  ;;  %v2834_v14 = vadd.f32 %v2798_v18, %v2718_v47  ;;  %v6034_v40 = vmul.f32 %v5323_v58, %v5587_v52  ;;  %v6038_v55 = vmul.f32 %v5456_v7, %v5587_v52  ;;  %v1412_v18 = vpop.permute.xlu1 %1411  ;;  %v6055_v37 = vld [vmem:[#allocation9] sm:$0xff] }
 0x2ed   : > { %v6042_v1 = vmul.f32 %v5338_v17, %v5558_v16  ;;  %v2949_v36 = vadd.f32 %v2913_v23, %v2833_v29  ;;  %v2198_v60 = vadd.f32 %v5548_v35, %v2082_v53  ;;  %v2914_v26 = vmul.f32 %v7426_v6, %v2520_v46 }
 0x2ee   : > { %7427 = vst [vmem:[#allocation42_spill] sm:$0xff] %v6028_v51  ;;  %7428 = vst [vmem:[#allocation134_spill] sm:$0xff] %v6034_v40  ;;  %v6047_v47 = vmul.f32 0.0, %v5338_v17  ;;  %v1473_v58 = vsel %vm1449_vm2, %v1414_v50, %v5954_v28  ;;  %v7432_v40 = vunpack.i.h.bf16 %v5262_v54  ;;  %v1472_v51 = vsel %vm1449_vm2, %v1412_v18, %v1414_v50  ;;  %1441 = vrot.lane.b32.xlu1 %v5522_v33, %s4545_s12 }
 0x2ef   : > { %7429 = vst [vmem:[#allocation135_spill] sm:$0xff] %v6038_v55  ;;  %7430 = vst [vmem:[#allocation136_spill] sm:$0xff] %v6042_v1  ;;  %3524 = vperm.xlu0 %4189, %v6055_v37   ;;  %v6059_v35 = vmul.f32 0.0, %v5456_v7  ;;  %v1735_v53 = vmul.f32 %v7389_v0, %v1454_v34  ;;  %v2314_v17 = vadd.f32 %v5552_v38, %v2198_v60  ;;  %v7435_v1 = vld [vmem:[#allocation48_spill] sm:$0xff] }
 0x2f0   : > { %7431 = vst [vmem:[#allocation137_spill] sm:$0xff] %v6047_v47  ;;  %v1471_v55 = vsel %vm1449_vm2, %v7432_v40, %v1412_v18  ;;  %v2950_v29 = vadd.f32 %v2914_v26, %v2834_v14  ;;  %v1619_v54 = vmul.f32 %v5140_v5, %v5885_v10  ;;  %v2683_v50 = vmul.f32 %v7418_v11, %v2519_v39  ;;  %v7434_v40 = vld [vmem:[#allocation32_spill] sm:$0xff]  ;;  %v6071_v47 = vpop.permute.xlu0 %2482  ;;  %v7436_v14 = vld [vmem:[#allocation35_spill] sm:$0xff]  ;;  %v2477_v26 = vpop.permute.xlu1 %2476 }
 0x2f1   : > { %7433 = vst [vmem:[#allocation138_spill] sm:$0xff] %v6059_v35  ;;  %v1635_v23 = vmul.f32 %v5174_v8, %v1471_v55  ;;  %v1750_v18 = vmul.f32 %v7434_v40, %v1471_v55  ;;  %v1751_v7 = vmul.f32 %v7434_v40, %v1472_v51  ;;  %v2993_v35 = vmul.f32 %v7435_v1, %v2949_v36 }
 0x2f2   : > { %v6075_v38 = vmul.f32 %v5140_v5, %v1454_v34  ;;  %v1867_v60 = vmul.f32 %v7436_v14, %v1473_v58  ;;  %v1636_v33 = vmul.f32 %v5174_v8, %v1472_v51  ;;  %v2719_v30 = vadd.f32 %v2683_v50, %v2314_v17  ;;  %1443 = vrot.lane.b32.xlu1 %v5570_v41, %s4545_s12 }
 0x2f3   : > { %v1786_v10 = vadd.f32 %v1750_v18, %v5475_v9  ;;  %v1787_v39 = vadd.f32 %v1751_v7, %v1635_v23  ;;  %v1866_v55 = vmul.f32 %v7436_v14, %v1472_v51  ;;  %4206 = vset.pattern.permute.xlu0 %v7437_v56  ;;  %v6082_v27 = vadd.f32 %v1735_v53, %v1619_v54 }
 0x2f4   : > { %v1752_v36 = vmul.f32 %v7434_v40, %v1473_v58  ;;  %v2799_v34 = vmul.f32 %v7420_v49, %v2520_v46  ;;  %v2994_v19 = vmul.f32 %v7435_v1, %v2950_v29  ;;  %v7438_v9 = vunpack.i.h.bf16 %v5469_v24  ;;  %v2443_v53 = vpop.permute.xlu0 %2442  ;;  %v2481_v18 = vpop.permute.xlu1 %2480 }
 0x2f5   : > { %v1902_v31 = vadd.f32 %v1866_v55, %v1786_v10  ;;  %v1903_v17 = vadd.f32 %v1867_v60, %v1787_v39  ;;  %v2538_v51 = vsel %vm2516_vm3, %v2477_v26, %v6030_v21  ;;  %v1637_v54 = vmul.f32 %v5174_v8, %v1473_v58 }
 0x2f6   : > { %v2537_v23 = vsel %vm2516_vm3, %v7438_v9, %v2477_v26  ;;  %v6096_v50 = vmul.f32 %v7418_v11, %v2520_v46  ;;  %v2521_v29 = vsel %vm2516_vm3, %v5998_v59, %v2443_v53  ;;  %v6101_v41 = vadd.f32 %v5707_v42, %v2993_v35  ;;  %v7439_v26 = vld [vmem:[#allocation49_spill] sm:$0xff]  ;;  %1445 = vrot.lane.b32.xlu1 %v5587_v52, %s4545_s12  ;;  %s4447_s12 = scalar_lea.vmem %s4446_s17, 4608 }
 0x2f7   : > { %v2835_v7 = vadd.f32 %v2799_v34, %v2719_v30  ;;  %v1788_v24 = vadd.f32 %v1752_v36, %v1636_v33  ;;  %v2098_v60 = vadd.f32 %v5563_v63, %v1902_v31  ;;  %v2099_v10 = vadd.f32 %v5567_v12, %v1903_v17  ;;  %v7440_v33 = vld [vmem:[#allocation50_spill] sm:$0xff]  ;;  %p4449_p9 = scmp.lt.s32.totalorder %s4447_s12, %s4441_s10 }
 0x2f8   : > { %v2699_v39 = vmul.f32 %v7439_v26, %v2537_v23  ;;  %v2700_v58 = vmul.f32 %v7439_v26, %v2538_v51  ;;  %v2915_v46 = vmul.f32 %v7426_v6, %v2521_v29  ;;  %v6111_v59 = vadd.f32 %v5707_v42, %v2994_v19  ;;  %v6118_v31 = vpop.permute.xlu0 %2446  ;;  %v6126_v19 = vpop.permute.xlu1 %1417 }
 0x2f9   : > { %v2214_v35 = vadd.f32 %v5576_v22, %v2098_v60  ;;  %v2215_v30 = vadd.f32 %v5580_v62, %v2099_v10  ;;  %v2815_v63 = vmul.f32 %v7440_v33, %v2538_v51  ;;  %v2539_v12 = vsel %vm2516_vm3, %v6030_v21, %v2481_v18  ;;  %v7441_v10 = vld [vmem:[#allocation56_spill] sm:$0xff]  ;;  %p4450_p6 = por %p4449_p9, %p4448_p3 }
 0x2fa   : > { %v6121_v55 = vmul.f32 %v7418_v11, %v2521_v29  ;;  %v6124_v36 = vmul.f32 %v7420_v49, %v2521_v29  ;;  %v2951_v52 = vadd.f32 %v2915_v46, %v2835_v7  ;;  %v2540_v21 = vsel %vm2516_vm3, %v2481_v18, %v6071_v47  ;;  %2466 = vrot.lane.b32.xlu1 %v5555_v3, %s4549_s16 }
 0x2fb   : > { %v2330_v62 = vadd.f32 %v5584_v2, %v2214_v35  ;;  %v2331_v34 = vadd.f32 %v5591_v43, %v2215_v30  ;;  %v1474_v17 = vsel %vm1449_vm2, %v5954_v28, %v6126_v19  ;;  %v2701_v23 = vmul.f32 %v7439_v26, %v2539_v12  ;;  %p4451_p0 = pnand %p4450_p6, %p4444_p1 }
 0x2fc   : > { %v2995_v9 = vmul.f32 %v7435_v1, %v2951_v52  ;;  %v1868_v51 = vmul.f32 %v7436_v14, %v1474_v17  ;;  %v2816_v7 = vmul.f32 %v7440_v33, %v2539_v12  ;;  %v1753_v18 = vmul.f32 %v7434_v40, %v1474_v17  ;;  %v6144_v60 = vpop.permute.xlu0 %1383  ;;  %v1378_v52 = vpop.permute.xlu1 %1377 }
 0x2fd   : > { %v2735_v29 = vadd.f32 %v2699_v39, %v2330_v62  ;;  %v2736_v43 = vadd.f32 %v2700_v58, %v2331_v34  ;;  %v6147_v28 = vmul.f32 %v7439_v26, %v2540_v21  ;;  %v2931_v46 = vmul.f32 %v7441_v10, %v2539_v12 }
 0x2fe   : > { %v2932_v35 = vmul.f32 %v7441_v10, %v2540_v21  ;;  %v1904_v30 = vadd.f32 %v1868_v51, %v1788_v24  ;;  %v1455_v39 = vsel %vm1449_vm2, %v5965_v32, %v1378_v52  ;;  %v6154_v58 = vadd.f32 %v5707_v42, %v2995_v9  ;;  %2468 = vrot.lane.b32.xlu1 %v5558_v16, %s4549_s16 }
 0x2ff   : > { %v2851_v3 = vadd.f32 %v2815_v63, %v2735_v29  ;;  %v2852_v22 = vadd.f32 %v2816_v7, %v2736_v43  ;;  %v6157_v62 = vmul.f32 %v7440_v33, %v2540_v21  ;;  %v1736_v2 = vmul.f32 %v7389_v0, %v1455_v39 }
 0x300   : > { %v2100_v34 = vadd.f32 %v5595_v61, %v1904_v30  ;;  %v1851_v12 = vmul.f32 %v7399_v45, %v1455_v39  ;;  %v6165_v51 = vmul.f32 %v5174_v8, %v1474_v17  ;;  %v1789_v32 = vadd.f32 %v1753_v18, %v1637_v54  ;;  %v2445_v9 = vpop.permute.xlu0 %2444  ;;  %v1382_v7 = vpop.permute.xlu1 %1381 }
 0x301   : > { %v2967_v24 = vadd.f32 %v2931_v46, %v2851_v3  ;;  %v2968_v63 = vadd.f32 %v2932_v35, %v2852_v22  ;;  %v1621_v21 = vmul.f32 %v5140_v5, %v1455_v39  ;;  %v2522_v43 = vsel %vm2516_vm3, %v2443_v53, %v2445_v9 }
 0x302   : > { %v2216_v29 = vadd.f32 %v5599_v4, %v2100_v34  ;;  %v1887_v61 = vadd.f32 %v1851_v12, %v6082_v27  ;;  %v1772_v16 = vadd.f32 %v1736_v2, %v6075_v38  ;;  %v2523_v22 = vsel %vm2516_vm3, %v2445_v9, %v6118_v31  ;;  %4196 = vrot.lane.b32.xlu1 %v7424_v25, %s4549_s16 }
 0x303   : > { %v6172_v30 = vmul.f32 %v5601_v20, %v2967_v24  ;;  %v6179_v17 = vmul.f32 %v5601_v20, %v2968_v63  ;;  %v6183_v27 = vmul.f32 %v7418_v11, %v2522_v43  ;;  %v6186_v53 = vmul.f32 %v7418_v11, %v2523_v22 }
 0x304   : > { %v2083_v4 = vadd.f32 %v5605_v48, %v1887_v61  ;;  %v6191_v38 = vmul.f32 %v7420_v49, %v2522_v43  ;;  %v6194_v2 = vmul.f32 %v7420_v49, %v2523_v22  ;;  %v1458_v18 = vsel %vm1449_vm2, %v1382_v7, %v6144_v60  ;;  %v6198_v46 = vpop.permute.xlu0 %2448  ;;  %v1380_v12 = vpop.permute.xlu1 %1379 }
 0x305   : > { %v2332_v48 = vadd.f32 %v5661_v15, %v2216_v29  ;;  %v2916_v3 = vmul.f32 %v7426_v6, %v2522_v43  ;;  %v6204_v39 = vmul.f32 %v7426_v6, %v2523_v22  ;;  %v6207_v34 = vmul.f32 %v5140_v5, %v1458_v18 }
 0x306   : > { %7442 = vst [vmem:[#allocation32_spill] sm:$0xff] %v6191_v38  ;;  %7443 = vst [vmem:[#allocation48_spill] sm:$0xff] %v6194_v2  ;;  %v2199_v35 = vadd.f32 %v5609_v57, %v2083_v4  ;;  %v1739_v24 = vmul.f32 %v7389_v0, %v1458_v18  ;;  %v2524_v63 = vsel %vm2516_vm3, %v6118_v31, %v6198_v46  ;;  %3502 = vperm.xlu1 %4205, %v6055_v37  }
 0x307   : > { %7444 = vst [vmem:[#allocation35_spill] sm:$0xff] %v6204_v39  ;;  %v1456_v9 = vsel %vm1449_vm2, %v1378_v52, %v1380_v12  ;;  %v1457_v15 = vsel %vm1449_vm2, %v1380_v12, %v1382_v7  ;;  %v1854_v29 = vmul.f32 %v7399_v45, %v1458_v18  ;;  %v6218_v61 = vmul.f32 %v7418_v11, %v2524_v63 }
 0x308   : > { %v2315_v57 = vadd.f32 %v5613_v13, %v2199_v35  ;;  %v2737_v43 = vadd.f32 %v2701_v23, %v2332_v48  ;;  %v1622_v22 = vmul.f32 %v5140_v5, %v1456_v9  ;;  %v1623_v4 = vmul.f32 %v5140_v5, %v1457_v15  ;;  %v1420_v54 = vpop.permute.xlu0 %1419  ;;  %v6232_v37 = vpop.permute.xlu1 %2484 }
 0x309   : > { %v1737_v31 = vmul.f32 %v7389_v0, %v1456_v9  ;;  %v1738_v52 = vmul.f32 %v7389_v0, %v1457_v15  ;;  %v6227_v13 = vmul.f32 %v7420_v49, %v2524_v63  ;;  %v1852_v18 = vmul.f32 %v7399_v45, %v1456_v9 }
 0x30a   : > { %v2720_v7 = vadd.f32 %v6096_v50, %v2315_v57  ;;  %v1475_v23 = vsel %vm1449_vm2, %v6126_v19, %v1420_v54  ;;  %v6235_v48 = vmul.f32 %v7426_v6, %v2524_v63  ;;  %v1853_v25 = vmul.f32 %v7399_v45, %v1457_v15 }
 0x30b   : > { %v1773_v35 = vadd.f32 %v1737_v31, %v1621_v21  ;;  %v1774_v12 = vadd.f32 %v1738_v52, %v1622_v22  ;;  %v1888_v50 = vadd.f32 %v1852_v18, %v1772_v16  ;;  %v1754_v57 = vmul.f32 %v7434_v40, %v1475_v23  ;;  %v7446_v31 = vld [vmem:[#allocation62_spill] sm:$0xff] }
 0x30c   : > { %7445 = vst [vmem:[#allocation49_spill] sm:$0xff] %v6235_v48  ;;  %v2836_v39 = vadd.f32 %v6124_v36, %v2720_v7  ;;  %v1869_v38 = vmul.f32 %v7436_v14, %v1475_v23  ;;  %v6241_v9 = vadd.f32 %v1739_v24, %v1623_v4  ;;  %v2541_v63 = vsel %vm2516_vm3, %v6071_v47, %v6232_v37  ;;  %v6246_v48 = vpop.permute.xlu0 %1423  ;;  %v6250_v22 = vpop.permute.xlu1 %2488  ;;  %v7447_v24 = vld [vmem:[#allocation63_spill] sm:$0xff]  ;;  %v7448_v7 = vld [vmem:[#allocation64_spill] sm:$0xff] }
 0x30d   : > { %v1889_v2 = vadd.f32 %v1853_v25, %v1773_v35  ;;  %v1890_v19 = vadd.f32 %v1854_v29, %v1774_v12  ;;  %v2084_v15 = vadd.f32 %v5617_v44, %v1888_v50  ;;  %v1639_v36 = vmul.f32 %v5174_v8, %v1475_v23  ;;  %v7451_v23 = vld [vmem:[#allocation66_spill] sm:$0xff] }
 0x30e   : > { %v2952_v21 = vadd.f32 %v2916_v3, %v2836_v39  ;;  %v1905_v16 = vadd.f32 %v1869_v38, %v1789_v32  ;;  %v1790_v25 = vadd.f32 %v1754_v57, %v6165_v51  ;;  %v2853_v29 = vadd.f32 %v6157_v62, %v2737_v43  ;;  %v7449_v3 = vld [vmem:[#allocation69_spill] sm:$0xff]  ;;  %v7453_v43 = vld [vmem:[#allocation67_spill] sm:$0xff]  ;;  %v7454_v57 = vld [vmem:[#allocation70_spill] sm:$0xff] }
 0x30f   : > { %v2085_v52 = vadd.f32 %v7446_v31, %v1889_v2  ;;  %v2086_v4 = vadd.f32 %v7447_v24, %v1890_v19  ;;  %v2200_v18 = vadd.f32 %v7448_v7, %v2084_v15  ;;  %v2933_v44 = vmul.f32 %v7441_v10, %v2541_v63  ;;  %v7450_v32 = vld [vmem:[#allocation65_spill] sm:$0xff]  ;;  %v7452_v2 = vld [vmem:[#allocation55_spill] sm:$0xff]  ;;  %v7455_v31 = vld [vmem:[#allocation68_spill] sm:$0xff] }
 0x310   : > { %v2996_v47 = vmul.f32 %v7435_v1, %v2952_v21  ;;  %v2101_v39 = vadd.f32 %v7449_v3, %v1905_v16  ;;  %v3056_v12 = vadd.f32 %v7452_v2, %v6179_v17  ;;  %v3055_v51 = vadd.f32 %v7452_v2, %v6172_v30  ;;  %v6266_v62 = vpop.permute.xlu0 %1389  ;;  %v1422_v16 = vpop.permute.xlu1 %1421  ;;  %v7456_v7 = vld [vmem:[#allocation71_spill] sm:$0xff] }
 0x311   : > { %v2201_v38 = vadd.f32 %v7450_v32, %v2085_v52  ;;  %v2202_v35 = vadd.f32 %v7451_v23, %v2086_v4  ;;  %v2316_v50 = vadd.f32 %v7453_v43, %v2200_v18  ;;  %v6271_v21 = vmul.f32 %v7439_v26, %v2541_v63 }
 0x312   : > { %v2217_v19 = vadd.f32 %v7454_v57, %v2101_v39  ;;  %v2969_v15 = vadd.f32 %v2933_v44, %v2853_v29  ;;  %v3092_v24 = vmax.f32 %v3056_v12, 0.0  ;;  %v3091_v4 = vmax.f32 %v3055_v51, 0.0 }
 0x313   : > { %v2317_v52 = vadd.f32 %v7455_v31, %v2201_v38  ;;  %v1476_v17 = vsel %vm1449_vm2, %v1420_v54, %v1422_v16  ;;  %v2818_v30 = vmul.f32 %v7440_v33, %v2541_v63  ;;  %v1477_v18 = vsel %vm1449_vm2, %v1422_v16, %v6246_v48 }
 0x314   : > { %v2333_v3 = vadd.f32 %v7456_v7, %v2217_v19  ;;  %v6280_v39 = vadd.f32 %v5707_v42, %v2996_v47  ;;  %v6283_v32 = vadd.f32 %v6121_v55, %v2316_v50  ;;  %v7457_v29 = vmax.f32 %v6111_v59, 0.0  ;;  %v6290_v12 = vpop.permute.xlu0 %2450  ;;  %v6296_v55 = vpop.permute.xlu1 %1425  ;;  %v7459_v50 = vld [vmem:[#allocation75_spill] sm:$0xff] }
 0x315   : > { %v7458_v38 = vmax.f32 %v6101_v41, 0.0  ;;  %v1640_v54 = vmul.f32 %v5174_v8, %v1476_v17  ;;  %v3013_v51 = vmul.f32 %v5601_v20, %v2969_v15  ;;  %v1755_v47 = vmul.f32 %v7434_v40, %v1476_v17  ;;  %v6306_v15 = vld [vmem:[#allocation13] sm:$0xf] }
 0x316   : > { %v3111_v44 = vpack.c.bf16 %v3092_v24, %v7457_v29  ;;  %v2738_v63 = vadd.f32 %v6147_v28, %v2333_v3  ;;  %v1756_v43 = vmul.f32 %v7434_v40, %v1477_v18  ;;  %v6299_v59 = vadd.f32 %v6183_v27, %v2317_v52  ;;  %7460 = vst [vmem:[#allocation50_spill] sm:$0xff] %v6306_v15 }
 0x317   : > { %v3110_v23 = vpack.c.bf16 %v3091_v4, %v7458_v38  ;;  %v1870_v41 = vmul.f32 %v7436_v14, %v1476_v17  ;;  %v2318_v57 = vadd.f32 %v7459_v50, %v2202_v35  ;;  %v2525_v28 = vsel %vm2516_vm3, %v6198_v46, %v6290_v12  ;;  %v7463_v38 = vld [vmem:[#allocation73_spill] sm:$0xff] }
 0x318   : > { %3132 = vmatprep.subr.bf16.mxu1 %v3111_v44  ;;  %v2854_v19 = vadd.f32 %v2818_v30, %v2738_v63  ;;  %v1641_v16 = vmul.f32 %v5174_v8, %v1477_v18  ;;  %v1791_v31 = vadd.f32 %v1755_v47, %v1639_v36  ;;  %v1871_v24 = vmul.f32 %v7436_v14, %v1477_v18  ;;  %v6312_v35 = vpop.permute.xlu0 %2454  ;;  %v2487_v30 = vpop.permute.xlu1 %2486  ;;  %v7464_v47 = vld [vmem:[#allocation74_spill] sm:$0xff] }
 0x319   : > { %3133 = vmatpush1.bf16.msra.mxu1 %v3110_v23  ;;  %v1792_v27 = vadd.f32 %v1756_v43, %v1640_v54  ;;  %v1906_v52 = vadd.f32 %v1870_v41, %v1790_v25  ;;  %v2723_v4 = vadd.f32 %v6186_v53, %v2318_v57  ;;  %v2919_v17 = vmul.f32 %v7426_v6, %v2525_v28  ;;  %v7462_v53 = vld [vmem:[#allocation72_spill] sm:$0xff] }
 0x31a   : > { %v1907_v7 = vadd.f32 %v1871_v24, %v1791_v31  ;;  %v6315_v46 = vmul.f32 %v7418_v11, %v2525_v28  ;;  %v6318_v3 = vmul.f32 %v7420_v49, %v2525_v28  ;;  %v1478_v36 = vsel %vm1449_vm2, %v6246_v48, %v6296_v55 }
 0x31b   : > { %v2102_v25 = vadd.f32 %v7462_v53, %v1906_v52  ;;  %v2839_v18 = vadd.f32 %v6227_v13, %v2723_v4  ;;  %v1757_v29 = vmul.f32 %v7434_v40, %v1478_v36  ;;  %v1872_v54 = vmul.f32 %v7436_v14, %v1478_v36 }
 0x31c   : > { %7461 = vst [vmem:[#allocation56_spill] sm:$0xff] %v6318_v3  ;;  %3980 = vmatmul.mubr.msk.bf16.vlgmr.msra.gmra.mrb[16].mxu1 %vm3128_vm4, %v6306_v15  ;;  %v2103_v23 = vadd.f32 %v7463_v38, %v1907_v7  ;;  %v2542_v63 = vsel %vm2516_vm3, %v6232_v37, %v2487_v30  ;;  %v2543_v48 = vsel %vm2516_vm3, %v2487_v30, %v6250_v22  ;;  %v6340_v50 = vpop.permute.xlu0 %1391  ;;  %v7465_v37 = vld [vmem:[#allocation77_spill] sm:$0xff]  ;;  %v6349_v4 = vpop.permute.xlu1 %2490  ;;  %v7466_v7 = vld [vmem:[#allocation79_spill] sm:$0xff] }
 0x31d   : > { %3246 = vmatprep.mubr.bf16.mxu1 %v7437_v56  ;;  %v2218_v43 = vadd.f32 %v7464_v47, %v2102_v25  ;;  %v2955_v41 = vadd.f32 %v2919_v17, %v2839_v18  ;;  %v6338_v13 = vmul.f32 %v5174_v8, %v1478_v36  ;;  %v6343_v57 = vadd.f32 %v7452_v2, %v3013_v51 }
 0x31e   : > { %v6345_v28 = vadd.f32 %v1757_v29, %v1641_v16  ;;  %v1908_v31 = vadd.f32 %v1872_v54, %v1792_v27  ;;  %v2219_v24 = vadd.f32 %v7465_v37, %v2103_v23  ;;  %v2704_v52 = vmul.f32 %v7439_v26, %v2542_v63  ;;  %v7468_v16 = vld [vmem:[#allocation76_spill] sm:$0xff] }
 0x31f   : > { %v2334_v30 = vadd.f32 %v7466_v7, %v2218_v43  ;;  %v2705_v17 = vmul.f32 %v7439_v26, %v2543_v48  ;;  %v2819_v36 = vmul.f32 %v7440_v33, %v2542_v63  ;;  %v2934_v53 = vmul.f32 %v7441_v10, %v2542_v63  ;;  %v7469_v27 = vld [vmem:[#allocation80_spill] sm:$0xff]  ;;  %v7470_v63 = vld [vmem:[#allocation78_spill] sm:$0xff] }
 0x320   : > { %v6356_v51 = vmul.f32 %v7435_v1, %v2955_v41  ;;  %v2104_v25 = vadd.f32 %v7468_v16, %v1908_v31  ;;  %v2335_v18 = vadd.f32 %v7469_v27, %v2219_v24  ;;  %v1462_v29 = vsel %vm1449_vm2, %v6266_v62, %v6340_v50  ;;  %v2453_v43 = vpop.permute.xlu0 %2452  ;;  %v1386_v24 = vpop.permute.xlu1 %1385 }
 0x321   : > { %v2739_v38 = vadd.f32 %v6271_v21, %v2334_v30  ;;  %v2820_v23 = vmul.f32 %v7440_v33, %v2543_v48  ;;  %v2935_v54 = vmul.f32 %v7441_v10, %v2543_v48  ;;  %v2970_v47 = vadd.f32 %v2934_v53, %v2854_v19  ;;  %v7471_v48 = vld [vmem:[#allocation43_spill] sm:$0xff] }
 0x322   : > { %7467 = vst [vmem:[#allocation62_spill] sm:$0xff] %v6356_v51  ;;  %v2220_v37 = vadd.f32 %v7470_v63, %v2104_v25  ;;  %v2740_v41 = vadd.f32 %v2704_v52, %v2335_v18  ;;  %v6368_v7 = vmul.f32 %v5140_v5, %v1462_v29  ;;  %v2544_v31 = vsel %vm2516_vm3, %v6250_v22, %v6349_v4 }
 0x323   : > { %v2855_v16 = vadd.f32 %v2819_v36, %v2739_v38  ;;  %v3014_v21 = vmul.f32 %v5601_v20, %v2970_v47  ;;  %v6375_v30 = vmul.f32 %v7389_v0, %v1462_v29  ;;  %v1858_v19 = vmul.f32 %v7399_v45, %v1462_v29 }
 0x324   : > { %v2336_v53 = vadd.f32 %v7471_v48, %v2220_v37  ;;  %v2856_v25 = vadd.f32 %v2820_v23, %v2740_v41  ;;  %v2936_v52 = vmul.f32 %v7441_v10, %v2544_v31  ;;  %v2526_v27 = vsel %vm2516_vm3, %v6290_v12, %v2453_v43  ;;  %v6388_v47 = vpop.permute.xlu0 %2456  ;;  %v1388_v12 = vpop.permute.xlu1 %1387 }
 0x325   : > { %v2971_v18 = vadd.f32 %v2935_v54, %v2855_v16  ;;  %v6383_v22 = vmul.f32 %v7439_v26, %v2544_v31  ;;  %v2821_v36 = vmul.f32 %v7440_v33, %v2544_v31  ;;  %v2527_v38 = vsel %vm2516_vm3, %v2453_v43, %v6312_v35 }
 0x326   : > { %v2741_v29 = vadd.f32 %v2705_v17, %v2336_v53  ;;  %v2972_v63 = vadd.f32 %v2936_v52, %v2856_v25  ;;  %v6391_v23 = vmul.f32 %v7418_v11, %v2526_v27  ;;  %v6394_v37 = vmul.f32 %v7420_v49, %v2526_v27 }
 0x327   : > { %v6397_v54 = vmul.f32 %v5601_v20, %v2971_v18  ;;  %v6400_v41 = vmul.f32 %v7418_v11, %v2527_v38  ;;  %v6403_v31 = vmul.f32 %v7420_v49, %v2527_v38  ;;  %v1459_v17 = vsel %vm1449_vm2, %v6144_v60, %v1386_v24 }
 0x328   : > { %7472 = vst [vmem:[#allocation63_spill] sm:$0xff] %v6394_v37  ;;  %v6407_v43 = vadd.f32 %v2821_v36, %v2741_v29  ;;  %v6410_v16 = vmul.f32 %v7426_v6, %v2526_v27  ;;  %v6413_v48 = vmul.f32 %v7426_v6, %v2527_v38  ;;  %v1740_v53 = vmul.f32 %v7389_v0, %v1459_v17  ;;  %v6423_v36 = vpop.permute.xlu0 %1427  ;;  %v7480_v37 = vld [vmem:[#allocation81_spill] sm:$0xff] }
 0x329   : > { %7473 = vst [vmem:[#allocation64_spill] sm:$0xff] %v6403_v31  ;;  %v1855_v25 = vmul.f32 %v7399_v45, %v1459_v17  ;;  %v2528_v52 = vsel %vm2516_vm3, %v6312_v35, %v6388_v47  ;;  %v1460_v18 = vsel %vm1449_vm2, %v1386_v24, %v1388_v12  ;;  %v1461_v60 = vsel %vm1449_vm2, %v1388_v12, %v6266_v62 }
 0x32a   : > { %7474 = vst [vmem:[#allocation69_spill] sm:$0xff] %v6410_v16  ;;  %7475 = vst [vmem:[#allocation65_spill] sm:$0xff] %v6413_v48  ;;  %v6426_v27 = vmul.f32 %v5601_v20, %v2972_v63  ;;  %v1625_v38 = vmul.f32 %v5140_v5, %v1459_v17  ;;  %v1776_v29 = vadd.f32 %v1740_v53, %v6207_v34  ;;  %v6433_v48 = vpop.permute.xlu1 %1431 }
 0x32b   : > { %7476 = vst [vmem:[#allocation66_spill] sm:$0xff] %v6423_v36  ;;  %v6431_v44 = vmul.f32 %v7418_v11, %v2528_v52  ;;  %7478 = vst [vmem:[#allocation67_spill] sm:$0xff] %v6433_v48  ;;  %v1891_v35 = vadd.f32 %v1855_v25, %v6241_v9  ;;  %v6437_v24 = vmul.f32 %v7420_v49, %v2528_v52  ;;  %v3093_v25 = vmax.f32 %v6343_v57, 0.0 }
 0x32c   : > { %v1626_v62 = vmul.f32 %v5140_v5, %v1460_v18  ;;  %v1741_v12 = vmul.f32 %v7389_v0, %v1460_v18  ;;  %v1627_v63 = vmul.f32 %v5140_v5, %v1461_v60  ;;  %v1742_v17 = vmul.f32 %v7389_v0, %v1461_v60  ;;  %v6448_v51 = vpop.permute.xlu0 %1393 }
 0x32d   : > { %7477 = vst [vmem:[#allocation55_spill] sm:$0xff] %v6431_v44  ;;  %7479 = vst [vmem:[#allocation70_spill] sm:$0xff] %v6437_v24  ;;  %v1856_v34 = vmul.f32 %v7399_v45, %v1460_v18  ;;  %v3058_v53 = vadd.f32 %v7452_v2, %v3014_v21  ;;  %v2087_v31 = vadd.f32 %v7480_v37, %v1891_v35  ;;  %v7481_v18 = vld [vmem:[#allocation82_spill] sm:$0xff] }
 0x32e   : > { %v1777_v16 = vadd.f32 %v1741_v12, %v1625_v38  ;;  %v1857_v9 = vmul.f32 %v7399_v45, %v1461_v60  ;;  %v1778_v3 = vadd.f32 %v1742_v17, %v1626_v62  ;;  %v1479_v44 = vsel %vm1449_vm2, %v6296_v55, %v6423_v36  ;;  %v6453_v24 = vpop.permute.xlu1 %2492  ;;  %v7483_v12 = vld [vmem:[#allocation83_spill] sm:$0xff]  ;;  %v7485_v55 = vld [vmem:[#allocation41_spill] sm:$0xff]  ;;  %v7486_v36 = vld [vmem:[#allocation84_spill] sm:$0xff] }
 0x32f   : > { %v1892_v49 = vadd.f32 %v1856_v34, %v1776_v29  ;;  %v3094_v48 = vmax.f32 %v3058_v53, 0.0  ;;  %v2203_v21 = vadd.f32 %v7481_v18, %v2087_v31  ;;  %v6457_v37 = vmul.f32 %v7426_v6, %v2528_v52 }
 0x330   : > { %v1893_v38 = vadd.f32 %v1857_v9, %v1777_v16  ;;  %v7482_v60 = vmax.f32 %v6154_v58, 0.0  ;;  %v1894_v35 = vadd.f32 %v1858_v19, %v1778_v3  ;;  %v7484_v29 = vmax.f32 %v6280_v39, 0.0  ;;  %v6471_v58 = vpop.permute.xlu0 %1397  ;;  %v7488_v39 = vld [vmem:[#allocation85_spill] sm:$0xff] }
 0x331   : > { %v2088_v62 = vadd.f32 %v7483_v12, %v1892_v49  ;;  %v1758_v34 = vmul.f32 %v7434_v40, %v1479_v44  ;;  %v2319_v53 = vadd.f32 %v7485_v55, %v2203_v21  ;;  %v1873_v31 = vmul.f32 %v7436_v14, %v1479_v44  ;;  %v7487_v49 = vld [vmem:[#allocation47_spill] sm:$0xff]  ;;  %v7493_v12 = vld [vmem:[#allocation89_spill] sm:$0xff] }
 0x332   : > { %v3112_v57 = vpack.c.bf16 %v3093_v25, %v7482_v60  ;;  %v3113_v17 = vpack.c.bf16 %v3094_v48, %v7484_v29  ;;  %v2089_v11 = vadd.f32 %v7486_v36, %v1893_v38  ;;  %v1463_v16 = vsel %vm1449_vm2, %v6340_v50, %v6448_v51  ;;  %v6479_v9 = vpop.permute.xlu1 %2496  ;;  %v7489_v36 = vld [vmem:[#allocation86_spill] sm:$0xff]  ;;  %v7491_v38 = vld [vmem:[#allocation87_spill] sm:$0xff] }
 0x333   : > { %v1779_v3 = vadd.f32 %v6375_v30, %v1627_v63  ;;  %v2090_v19 = vadd.f32 %v7487_v49, %v1894_v35  ;;  %v2204_v48 = vadd.f32 %v7488_v39, %v2088_v62  ;;  %v6477_v52 = vmul.f32 %v5174_v8, %v1479_v44  ;;  %v7490_v63 = vld [vmem:[#allocation40_spill] sm:$0xff]  ;;  %v7496_v39 = vld [vmem:[#allocation91_spill] sm:$0xff] }
 0x334   : > { %3173 = vmatprep.subr.bf16.mxu0 %v3113_v17  ;;  %v2205_v25 = vadd.f32 %v7489_v36, %v2089_v11  ;;  %v6483_v18 = vadd.f32 %v1758_v34, %v6338_v13  ;;  %v1909_v50 = vadd.f32 %v1873_v31, %v6345_v28  ;;  %v1744_v30 = vmul.f32 %v7389_v0, %v1463_v16  ;;  %v6501_v29 = vpop.permute.xlu0 %2458  ;;  %v7495_v49 = vld [vmem:[#allocation48_spill] sm:$0xff] }
 0x335   : > { %3174 = vmatpush1.bf16.msra.mxu0 %v3112_v57  ;;  %v2206_v21 = vadd.f32 %v7490_v63, %v2090_v19  ;;  %v2320_v60 = vadd.f32 %v7491_v38, %v2204_v48  ;;  %v1859_v35 = vmul.f32 %v7399_v45, %v1463_v16  ;;  %v2545_v44 = vsel %vm2516_vm3, %v6349_v4, %v6453_v24  ;;  %v7492_v57 = vld [vmem:[#allocation88_spill] sm:$0xff] }
 0x336   : > { %v6494_v11 = vadd.f32 %v6218_v61, %v2319_v53  ;;  %v2321_v13 = vadd.f32 %v7492_v57, %v2205_v25  ;;  %v2105_v62 = vadd.f32 %v7493_v12, %v1909_v50  ;;  %v6499_v28 = vmul.f32 %v5140_v5, %v1463_v16  ;;  %v1430_v55 = vpop.permute.xlu1 %1429  ;;  %v7494_v53 = vld [vmem:[#allocation90_spill] sm:$0xff]  ;;  %v7497_v48 = vld [vmem:[#allocation32_spill] sm:$0xff]  ;;  %v7498_v50 = vld [vmem:[#allocation51_spill] sm:$0xff] }
 0x337   : > { %v6504_v17 = vadd.f32 %v6315_v46, %v2320_v60  ;;  %v6509_v4 = vadd.f32 %v1744_v30, %v6368_v7  ;;  %v1895_v61 = vadd.f32 %v1859_v35, %v1779_v3  ;;  %v2937_v34 = vmul.f32 %v7441_v10, %v2545_v44  ;;  %v7500_v60 = vld [vmem:[#allocation92_spill] sm:$0xff]  ;;  %v7501_v12 = vld [vmem:[#allocation46_spill] sm:$0xff] }
 0x338   : > { %3981 = vmatmul.mubr.msk.bf16.vlgmr.msra.gmra.mrb[20].mxu0 %vm3128_vm4, %v6306_v15  ;;  %v2221_v31 = vadd.f32 %v7494_v53, %v2105_v62  ;;  %v6514_v16 = vmul.f32 %v7439_v26, %v2545_v44  ;;  %v2838_v19 = vadd.f32 %v7495_v49, %v6299_v59  ;;  %v3060_v46 = vadd.f32 %v7452_v2, %v6426_v27  ;;  %v7499_v59 = vld [vmem:[#allocation49_spill] sm:$0xff]  ;;  %v1396_v35 = vpop.permute.xlu0 %1395 }
 0x339   : > { %3287 = vmatprep.mubr.bf16.mxu0 %v7437_v56  ;;  %v2091_v7 = vadd.f32 %v7496_v39, %v1895_v61  ;;  %v2973_v3 = vadd.f32 %v2937_v34, %v6407_v43  ;;  %v2837_v36 = vadd.f32 %v7497_v48, %v6283_v32  ;;  %v3059_v25 = vadd.f32 %v7452_v2, %v6397_v54  ;;  %v7502_v61 = vld [vmem:[#allocation35_spill] sm:$0xff]  ;;  %v7503_v49 = vld [vmem:[#allocation93_spill] sm:$0xff]  ;;  %v7504_v39 = vld [vmem:[#allocation38_spill] sm:$0xff] }
 0x33a   : > { %v2337_v30 = vadd.f32 %v7498_v50, %v2221_v31  ;;  %v2822_v63 = vmul.f32 %v7440_v33, %v2545_v44  ;;  %v2954_v38 = vadd.f32 %v7499_v59, %v2838_v19  ;;  %v2322_v27 = vadd.f32 %v7500_v60, %v2206_v21  ;;  %v6536_v34 = vpop.permute.xlu1 %1433  ;;  %v7508_v59 = vld [vmem:[#allocation67_spill] sm:$0xff] }
 0x33b   : > { %v6532_v57 = vadd.f32 %v6391_v23, %v2321_v13  ;;  %v2207_v43 = vadd.f32 %v7501_v12, %v2091_v7  ;;  %v3096_v62 = vmax.f32 %v3060_v46, 0.0  ;;  %v2953_v32 = vadd.f32 %v7502_v61, %v2837_v36  ;;  %v7505_v7 = vld [vmem:[#allocation70_spill] sm:$0xff] }
 0x33c   : > { %v2742_v54 = vadd.f32 %v6383_v22, %v2337_v30  ;;  %v2998_v53 = vmul.f32 %v7435_v1, %v2954_v38  ;;  %v2529_v44 = vsel %vm2516_vm3, %v6388_v47, %v6501_v29  ;;  %v2727_v21 = vadd.f32 %v6400_v41, %v2322_v27  ;;  %v6555_v47 = vpop.permute.xlu0 %1399  ;;  %v7507_v30 = vld [vmem:[#allocation66_spill] sm:$0xff] }
 0x33d   : > { %v6545_v23 = vmul.f32 %v5601_v20, %v2973_v3  ;;  %v2997_v13 = vmul.f32 %v7435_v1, %v2953_v32  ;;  %v3095_v31 = vmax.f32 %v3059_v25, 0.0  ;;  %v2323_v19 = vadd.f32 %v7503_v49, %v2207_v43  ;;  %v7506_v3 = vld [vmem:[#allocation55_spill] sm:$0xff]  ;;  %v7509_v43 = vld [vmem:[#allocation53_spill] sm:$0xff] }
 0x33e   : > { %v3042_v46 = vadd.f32 %v5707_v42, %v2998_v53  ;;  %v6551_v22 = vmul.f32 %v7504_v39, %v2529_v44  ;;  %v2843_v48 = vadd.f32 %v7505_v7, %v2727_v21  ;;  %v2923_v36 = vmul.f32 %v7426_v6, %v2529_v44  ;;  %v2495_v60 = vpop.permute.xlu1 %2494 }
 0x33f   : > { %v3041_v41 = vadd.f32 %v5707_v42, %v2997_v13  ;;  %v2728_v50 = vadd.f32 %v7506_v3, %v2323_v19  ;;  %v1480_v25 = vsel %vm1449_vm2, %v7507_v30, %v1430_v55  ;;  %v1481_v38 = vsel %vm1449_vm2, %v1430_v55, %v7508_v59 }
 0x340   : > { %v6563_v27 = vadd.f32 %v2822_v63, %v2742_v54  ;;  %v3078_v12 = vmax.f32 %v3042_v46, 0.0  ;;  %v2808_v61 = vmul.f32 %v7509_v43, %v2529_v44  ;;  %v2959_v32 = vadd.f32 %v2923_v36, %v2843_v48  ;;  %v6573_v63 = vpop.permute.xlu0 %2504 }
 0x341   : > { %v3077_v53 = vmax.f32 %v3041_v41, 0.0  ;;  %v1644_v21 = vmul.f32 %v5174_v8, %v1480_v25  ;;  %v1645_v13 = vmul.f32 %v5174_v8, %v1481_v38  ;;  %v1759_v49 = vmul.f32 %v7434_v40, %v1480_v25 }
 0x342   : > { %v3115_v19 = vpack.c.bf16 %v3096_v62, %v3078_v12  ;;  %v6569_v7 = vadd.f32 %v2808_v61, %v2728_v50  ;;  %v1760_v3 = vmul.f32 %v7434_v40, %v1481_v38  ;;  %v1874_v55 = vmul.f32 %v7436_v14, %v1480_v25  ;;  %v6579_v36 = vpop.permute.xlu1 %2498 }
 0x343   : > { %v3114_v54 = vpack.c.bf16 %v3095_v31, %v3077_v53  ;;  %v1795_v44 = vadd.f32 %v1759_v49, %v6477_v52  ;;  %v1875_v46 = vmul.f32 %v7436_v14, %v1481_v38  ;;  %v1464_v48 = vsel %vm1449_vm2, %v6448_v51, %v1396_v35  ;;  %v7511_v38 = vld [vmem:[#allocation94_spill] sm:$0xff]  ;;  %v7512_v53 = vld [vmem:[#allocation95_spill] sm:$0xff] }
 0x344   : > { %3214 = vmatprep.subr.bf16.mxu1 %v3115_v19  ;;  %v6582_v62 = vmul.f32 %v7435_v1, %v2959_v32  ;;  %v1910_v41 = vadd.f32 %v1874_v55, %v6483_v18  ;;  %v1465_v50 = vsel %vm1449_vm2, %v1396_v35, %v6471_v58  ;;  %v1745_v31 = vmul.f32 %v7389_v0, %v1464_v48 }
 0x345   : > { %3215 = vmatpush1.bf16.msra.mxu1 %v3114_v54  ;;  %v1911_v52 = vadd.f32 %v1875_v46, %v1795_v44  ;;  %v1630_v30 = vmul.f32 %v5140_v5, %v1464_v48  ;;  %v1746_v25 = vmul.f32 %v7389_v0, %v1465_v50  ;;  %v1860_v51 = vmul.f32 %v7399_v45, %v1464_v48  ;;  %v6600_v54 = vpop.permute.xlu0 %2502 }
 0x346   : > { %7510 = vst [vmem:[#allocation68_spill] sm:$0xff] %v6582_v62  ;;  %v2106_v12 = vadd.f32 %v7511_v38, %v1910_v41  ;;  %v1781_v61 = vadd.f32 %v1745_v31, %v6499_v28  ;;  %v1861_v32 = vmul.f32 %v7399_v45, %v1465_v50  ;;  %v1482_v18 = vsel %vm1449_vm2, %v7508_v59, %v6536_v34  ;;  %v6602_v44 = vpop.permute.xlu1 %2462  ;;  %v7513_v28 = vld [vmem:[#allocation96_spill] sm:$0xff]  ;;  %v7516_v38 = vld [vmem:[#allocation98_spill] sm:$0xff] }
 0x347   : > { %v1796_v35 = vadd.f32 %v1760_v3, %v1644_v21  ;;  %v2107_v49 = vadd.f32 %v7512_v53, %v1911_v52  ;;  %v1631_v19 = vmul.f32 %v5140_v5, %v1465_v50  ;;  %v1896_v55 = vadd.f32 %v1860_v51, %v6509_v4  ;;  %v7514_v21 = vld [vmem:[#allocation97_spill] sm:$0xff]  ;;  %v7515_v50 = vld [vmem:[#allocation102_spill] sm:$0xff]  ;;  %v7517_v53 = vld [vmem:[#allocation99_spill] sm:$0xff] }
 0x348   : > { %3982 = vmatmul.mubr.msk.bf16.vlgmr.msra.gmra.mrb[20].mxu1 %vm3128_vm4, %v6306_v15  ;;  %v2222_v46 = vadd.f32 %v7513_v28, %v2106_v12  ;;  %v1897_v48 = vadd.f32 %v1861_v32, %v1781_v61  ;;  %v1761_v41 = vmul.f32 %v7434_v40, %v1482_v18  ;;  %v1876_v59 = vmul.f32 %v7436_v14, %v1482_v18  ;;  %v7519_v62 = vld [vmem:[#allocation100_spill] sm:$0xff]  ;;  %v7520_v15 = vld [vmem:[#allocation34_spill] sm:$0xff] }
 0x349   : > { %v2092_v3 = vadd.f32 %v7514_v21, %v1896_v55  ;;  %v1466_v4 = vsel %vm1449_vm2, %v6471_v58, %v6555_v47  ;;  %v2223_v31 = vadd.f32 %v7515_v50, %v2107_v49  ;;  %v2546_v52 = vsel %vm2516_vm3, %v6453_v24, %v2495_v60  ;;  %3328 = vmatprep.mubr.bf16.mxu1 %v7437_v56  ;;  %v7518_v21 = vld [vmem:[#allocation104_spill] sm:$0xff] }
 0x34a   : > { %v1782_v51 = vadd.f32 %v1746_v25, %v1630_v30  ;;  %v2093_v12 = vadd.f32 %v7516_v38, %v1897_v48  ;;  %v6619_v61 = vmul.f32 %v5174_v8, %v1482_v18  ;;  %v1912_v32 = vadd.f32 %v1876_v59, %v1796_v35  ;;  %v2461_v50 = vpop.permute.xlu1 %2460 }
 0x34b   : > { %v2208_v55 = vadd.f32 %v7517_v53, %v2092_v3  ;;  %v1747_v28 = vmul.f32 %v7389_v0, %v1466_v4  ;;  %v1862_v58 = vmul.f32 %v7399_v45, %v1466_v4  ;;  %v2338_v49 = vadd.f32 %v7518_v21, %v2222_v46  ;;  %v6634_v3 = vpop.permute.xlu0 %1401  ;;  %v7521_v46 = vld [vmem:[#allocation103_spill] sm:$0xff]  ;;  %v7523_v21 = vld [vmem:[#allocation101_spill] sm:$0xff] }
 0x34c   : > { %v2108_v24 = vadd.f32 %v7519_v62, %v1912_v32  ;;  %v2339_v56 = vadd.f32 %v7520_v15, %v2223_v31  ;;  %v2547_v30 = vsel %vm2516_vm3, %v2495_v60, %v6479_v9  ;;  %v2708_v25 = vmul.f32 %v7439_v26, %v2546_v52 }
 0x34d   : > { %v6630_v18 = vadd.f32 %v1761_v41, %v1645_v13  ;;  %v1632_v35 = vmul.f32 %v5140_v5, %v1466_v4  ;;  %v1898_v48 = vadd.f32 %v1862_v58, %v1782_v51  ;;  %v2743_v59 = vadd.f32 %v6514_v16, %v2338_v49  ;;  %v7522_v16 = vld [vmem:[#allocation105_spill] sm:$0xff] }
 0x34e   : > { %v2224_v38 = vadd.f32 %v7521_v46, %v2108_v24  ;;  %v2744_v53 = vadd.f32 %v2708_v25, %v2339_v56  ;;  %v2823_v62 = vmul.f32 %v7440_v33, %v2546_v52  ;;  %v2824_v15 = vmul.f32 %v7440_v33, %v2547_v30  ;;  %v6644_v4 = vpop.permute.xlu1 %2464 }
 0x34f   : > { %v1783_v31 = vadd.f32 %v1747_v28, %v1631_v19  ;;  %v2709_v60 = vmul.f32 %v7439_v26, %v2547_v30  ;;  %v2938_v13 = vmul.f32 %v7441_v10, %v2546_v52  ;;  %v2548_v41 = vsel %vm2516_vm3, %v6479_v9, %v6579_v36 }
 0x350   : > { %v2340_v51 = vadd.f32 %v7522_v16, %v2224_v38  ;;  %v2859_v32 = vadd.f32 %v2823_v62, %v2743_v59  ;;  %v2860_v58 = vadd.f32 %v2824_v15, %v2744_v53  ;;  %v2939_v56 = vmul.f32 %v7441_v10, %v2547_v30  ;;  %v1404_v38 = vpop.permute.xlu0 %1403 }
 0x351   : > { %v2094_v49 = vadd.f32 %v7523_v21, %v1898_v48  ;;  %v2974_v19 = vadd.f32 %v2938_v13, %v6563_v27  ;;  %v2940_v28 = vmul.f32 %v7441_v10, %v2548_v41  ;;  %v2551_v52 = vsel %vm2516_vm3, %v6600_v54, %v6573_v63  ;;  %v7529_v21 = vld [vmem:[#allocation109_spill] sm:$0xff] }
 0x352   : > { %v2745_v24 = vadd.f32 %v2709_v60, %v2340_v51  ;;  %v2975_v9 = vadd.f32 %v2939_v56, %v2859_v32  ;;  %v6655_v25 = vmul.f32 %v7439_v26, %v2548_v41  ;;  %v2825_v59 = vmul.f32 %v7440_v33, %v2548_v41  ;;  %v6667_v53 = vpop.permute.xlu1 %1435  ;;  %v7527_v51 = vld [vmem:[#allocation107_spill] sm:$0xff] }
 0x353   : > { %v2976_v46 = vadd.f32 %v2940_v28, %v2860_v58  ;;  %v6659_v30 = vmul.f32 %v7439_v26, %v2551_v52  ;;  %v6662_v48 = vmul.f32 %v7440_v33, %v2551_v52  ;;  %v1467_v27 = vsel %vm1449_vm2, %v6555_v47, %v6634_v3  ;;  %v7528_v47 = vld [vmem:[#allocation108_spill] sm:$0xff] }
 0x354   : > { %v3018_v62 = vmul.f32 %v5601_v20, %v2974_v19  ;;  %v6671_v15 = vmul.f32 %v5601_v20, %v2975_v9  ;;  %v6674_v60 = vmul.f32 %v7441_v10, %v2551_v52  ;;  %v1748_v13 = vmul.f32 %v7389_v0, %v1467_v27 }
 0x355   : > { %7524 = vst [vmem:[#allocation71_spill] sm:$0xff] %v6659_v30  ;;  %7525 = vst [vmem:[#allocation75_spill] sm:$0xff] %v6662_v48  ;;  %v6677_v41 = vadd.f32 %v2825_v59, %v2745_v24  ;;  %v1863_v16 = vmul.f32 %v7399_v45, %v1467_v27  ;;  %v2209_v32 = vadd.f32 %v7527_v51, %v2093_v12  ;;  %v7530_v59 = vld [vmem:[#allocation110_spill] sm:$0xff] }
 0x356   : > { %7526 = vst [vmem:[#allocation72_spill] sm:$0xff] %v6674_v60  ;;  %v2210_v58 = vadd.f32 %v7528_v47, %v2094_v49  ;;  %v1633_v56 = vmul.f32 %v5140_v5, %v1467_v27  ;;  %v2324_v19 = vadd.f32 %v7529_v21, %v2208_v55  ;;  %v2530_v28 = vsel %vm2516_vm3, %v6501_v29, %v2461_v50  ;;  %v6693_v51 = vpop.permute.xlu1 %1439  ;;  %v7531_v27 = vld [vmem:[#allocation111_spill] sm:$0xff]  ;;  %v7534_v30 = vld [vmem:[#allocation62_spill] sm:$0xff] }
 0x357   : > { %v2531_v52 = vsel %vm2516_vm3, %v2461_v50, %v6602_v44  ;;  %v6689_v9 = vmul.f32 %v5601_v20, %v2976_v46  ;;  %v1899_v24 = vadd.f32 %v1863_v16, %v1783_v31  ;;  %v2325_v60 = vadd.f32 %v7530_v59, %v2209_v32  ;;  %v6701_v16 = vpop.permute.xlu0 %2506  ;;  %v7532_v32 = vld [vmem:[#allocation106_spill] sm:$0xff] }
 0x358   : > { %v2694_v12 = vmul.f32 %v7504_v39, %v2530_v28  ;;  %v1784_v49 = vadd.f32 %v1748_v13, %v1632_v35  ;;  %v2729_v5 = vadd.f32 %v6551_v22, %v2324_v19  ;;  %v2695_v55 = vmul.f32 %v7504_v39, %v2531_v52  ;;  %v7533_v35 = vld [vmem:[#allocation56_spill] sm:$0xff] }
 0x359   : > { %v2809_v29 = vmul.f32 %v7509_v43, %v2530_v28  ;;  %v2326_v47 = vadd.f32 %v7531_v27, %v2210_v58  ;;  %v2810_v46 = vmul.f32 %v7509_v43, %v2531_v52  ;;  %v2924_v31 = vmul.f32 %v7426_v6, %v2530_v28 }
 0x35a   : > { %v2730_v50 = vadd.f32 %v2694_v12, %v2325_v60  ;;  %v2095_v21 = vadd.f32 %v7532_v32, %v1899_v24  ;;  %v2840_v13 = vadd.f32 %v7533_v35, %v6494_v11  ;;  %v3062_v22 = vadd.f32 %v7452_v2, %v3018_v62  ;;  %v6712_v28 = vpop.permute.xlu1 %2500 }
 0x35b   : > { %v2845_v59 = vadd.f32 %v2809_v29, %v2729_v5  ;;  %v2731_v19 = vadd.f32 %v2695_v55, %v2326_v47  ;;  %v2925_v48 = vmul.f32 %v7426_v6, %v2531_v52  ;;  %v3043_v60 = vadd.f32 %v5707_v42, %v7534_v30  ;;  %v7535_v5 = vld [vmem:[#allocation69_spill] sm:$0xff] }
 0x35c   : > { %v3061_v58 = vadd.f32 %v7452_v2, %v6545_v23  ;;  %v2846_v12 = vadd.f32 %v2810_v46, %v2730_v50  ;;  %v2960_v24 = vadd.f32 %v2924_v31, %v6569_v7  ;;  %v2956_v29 = vadd.f32 %v7535_v5, %v2840_v13  ;;  %v7536_v52 = vld [vmem:[#allocation61_spill] sm:$0xff]  ;;  %v7538_v31 = vld [vmem:[#allocation115_spill] sm:$0xff] }
 0x35d   : > { %v1468_v11 = vsel %vm1449_vm2, %v6634_v3, %v1404_v38  ;;  %v2961_v62 = vadd.f32 %v2925_v48, %v2845_v59  ;;  %v3079_v55 = vmax.f32 %v3043_v60, 0.0  ;;  %v7537_v47 = vunpack.i.l.bf16 %v7536_v52  ;;  %v2509_v48 = vpop.permute.xlu0 %2508 }
 0x35e   : > { %v3097_v27 = vmax.f32 %v3061_v58, 0.0  ;;  %v3000_v32 = vmul.f32 %v7435_v1, %v2956_v29  ;;  %v3098_v23 = vmax.f32 %v3062_v22, 0.0  ;;  %v1749_v35 = vmul.f32 %v7389_v0, %v1468_v11  ;;  %v6729_v59 = vpop.permute.xlu1 %1437  ;;  %v7539_v58 = vld [vmem:[#allocation116_spill] sm:$0xff] }
 0x35f   : > { %v1469_v30 = vsel %vm1449_vm2, %v1404_v38, %v7537_v47  ;;  %v1864_v50 = vmul.f32 %v7399_v45, %v1468_v11  ;;  %v2211_v13 = vadd.f32 %v7538_v31, %v2095_v21  ;;  %v2532_v3 = vsel %vm2516_vm3, %v6602_v44, %v6644_v4 }
 0x360   : > { %v3116_v7 = vpack.c.bf16 %v3097_v27, %v3079_v55  ;;  %v1865_v46 = vmul.f32 %v7399_v45, %v1469_v30  ;;  %v3044_v38 = vadd.f32 %v5707_v42, %v3000_v32  ;;  %v1785_v60 = vadd.f32 %v1749_v35, %v1633_v56  ;;  %v7540_v27 = vld [vmem:[#allocation112_spill] sm:$0xff] }
 0x361   : > { %v1900_v22 = vadd.f32 %v1864_v50, %v1784_v49  ;;  %v2696_v0 = vmul.f32 %v7504_v39, %v2532_v3  ;;  %v2327_v5 = vadd.f32 %v7539_v58, %v2211_v13  ;;  %v2811_v29 = vmul.f32 %v7509_v43, %v2532_v3  ;;  %v7541_v50 = vld [vmem:[#allocation36_spill] sm:$0xff]  ;;  %v7542_v13 = vld [vmem:[#allocation113_spill] sm:$0xff] }
 0x362   : > { %v2926_v45 = vmul.f32 %v7426_v6, %v2532_v3  ;;  %v2552_v21 = vsel %vm2516_vm3, %v6573_v63, %v6701_v16  ;;  %v6740_v44 = vmul.f32 %v7435_v1, %v2960_v24  ;;  %v3080_v11 = vmax.f32 %v3044_v38, 0.0 }
 0x363   : > { %v1901_v55 = vadd.f32 %v1865_v46, %v1785_v60  ;;  %v2096_v56 = vadd.f32 %v7540_v27, %v1900_v22  ;;  %v6744_v49 = vmul.f32 %v7435_v1, %v2961_v62  ;;  %v6746_v47 = vadd.f32 %v2696_v0, %v2327_v5  ;;  %v6757_v46 = vpop.permute.xlu1 %1441  ;;  %v7543_v62 = vld [vmem:[#allocation64_spill] sm:$0xff] }
 0x364   : > { %v2962_v30 = vadd.f32 %v2926_v45, %v2846_v12  ;;  %v6749_v32 = vmul.f32 %v7439_v26, %v2552_v21  ;;  %v3117_v35 = vpack.c.bf16 %v3098_v23, %v3080_v11  ;;  %v6752_v63 = vadd.f32 %v2811_v29, %v2731_v19  ;;  %v6769_v19 = vpop.permute.xlu0 %2510 }
 0x365   : > { %v2097_v31 = vadd.f32 %v7541_v50, %v1901_v55  ;;  %v6755_v24 = vmul.f32 %v7440_v33, %v2552_v21  ;;  %v6760_v3 = vadd.f32 %v7542_v13, %v2096_v56  ;;  %v1483_v12 = vsel %vm1449_vm2, %v6536_v34, %v6667_v53  ;;  %v7544_v34 = vld [vmem:[#allocation114_spill] sm:$0xff] }
 0x366   : > { %v2842_v38 = vadd.f32 %v7543_v62, %v6532_v57  ;;  %v3064_v23 = vadd.f32 %v7452_v2, %v6689_v9  ;;  %3255 = vmatprep.subr.bf16.mxu0 %v3117_v35  ;;  %v6772_v60 = vmul.f32 %v7435_v1, %v2962_v30  ;;  %v6775_v22 = vmul.f32 %v7441_v10, %v2552_v21  ;;  %v7545_v9 = vld [vmem:[#allocation63_spill] sm:$0xff]  ;;  %v7547_v35 = vld [vmem:[#allocation50_spill] sm:$0xff] }
 0x367   : > { %v1762_v0 = vmul.f32 %v7434_v40, %v1483_v12  ;;  %v1877_v58 = vmul.f32 %v7436_v14, %v1483_v12  ;;  %3256 = vmatpush1.bf16.msra.mxu0 %v3116_v7  ;;  %v6780_v5 = vadd.f32 %v7544_v34, %v2097_v31  ;;  %v2841_v29 = vadd.f32 %v7545_v9, %v6504_v17  ;;  %v7546_v17 = vld [vmem:[#allocation65_spill] sm:$0xff] }
 0x368   : > { %v2958_v57 = vadd.f32 %v6457_v37, %v2842_v38  ;;  %v3063_v45 = vadd.f32 %v7452_v2, %v6671_v15  ;;  %v1647_v11 = vmul.f32 %v5174_v8, %v1483_v12  ;;  %v2553_v55 = vsel %vm2516_vm3, %v6701_v16, %v2509_v48  ;;  %v7548_v15 = vld [vmem:[#allocation117_spill] sm:$0xff] }
 0x369   : > { %v1913_v21 = vadd.f32 %v1877_v58, %v6630_v18  ;;  %v6793_v7 = vsel %vm2516_vm3, %v2509_v48, %v6769_v19  ;;  %v1798_v27 = vadd.f32 %v1762_v0, %v6619_v61  ;;  %v3100_v56 = vmax.f32 %v3064_v23, 0.0  ;;  %v1444_v48 = vpop.permute.xlu1 %1443  ;;  %v7551_v23 = vld [vmem:[#allocation118_spill] sm:$0xff] }
 0x36a   : > { %v3002_v37 = vmul.f32 %v7435_v1, %v2958_v57  ;;  %v2957_v30 = vadd.f32 %v7546_v17, %v2841_v29  ;;  %3983 = vmatmul.mubr.msk.bf16.vlgmr.msra.gmra.mrb[24].mxu0 %vm3128_vm4, %v7547_v35  ;;  %v3099_v18 = vmax.f32 %v3063_v45, 0.0  ;;  %v6802_v31 = vmul.f32 %v7439_v26, %v2553_v55 }
 0x36b   : > { %v2109_v50 = vadd.f32 %v7548_v15, %v1913_v21  ;;  %v6805_v16 = vmul.f32 %v7440_v33, %v2553_v55  ;;  %v6810_v12 = vmul.f32 %v7441_v10, %v2553_v55  ;;  %v6814_v62 = vmul.f32 %v7439_v26, %v6793_v7  ;;  %v7552_v55 = vld [vmem:[#allocation119_spill] sm:$0xff] }
 0x36c   : > { %v3046_v61 = vadd.f32 %v5707_v42, %v3002_v37  ;;  %v3001_v13 = vmul.f32 %v7435_v1, %v2957_v30  ;;  %v7550_v38 = vmov 0   ;;  %v6820_v58 = vmul.f32 %v7440_v33, %v6793_v7 }
 0x36d   : > { %7549 = vst [vmem:[#allocation73_spill] sm:$0xff] %v6810_v12  ;;  %3369 = vmatprep.mubr.bf16.mxu0 %v7550_v38  ;;  %v2225_v0 = vadd.f32 %v7551_v23, %v2109_v50  ;;  %v2549_v34 = vsel %vm2516_vm3, %v6579_v36, %v6712_v28  ;;  %v2550_v57 = vsel %vm2516_vm3, %v6712_v28, %v6600_v54  ;;  %v1446_v23 = vpop.permute.xlu1 %1445 }
 0x36e   : > { %v3082_v9 = vmax.f32 %v3046_v61, 0.0  ;;  %v3045_v29 = vadd.f32 %v5707_v42, %v3001_v13  ;;  %v2711_v45 = vmul.f32 %v7439_v26, %v2549_v34  ;;  %v1484_v21 = vsel %vm1449_vm2, %v6667_v53, %v6729_v59 }
 0x36f   : > { %v2341_v37 = vadd.f32 %v7552_v55, %v2225_v0  ;;  %v6835_v17 = vmul.f32 %v7439_v26, %v2550_v57  ;;  %v2826_v36 = vmul.f32 %v7440_v33, %v2549_v34  ;;  %v2941_v30 = vmul.f32 %v7441_v10, %v2549_v34 }
 0x370   : > { %v3119_v15 = vpack.c.bf16 %v3100_v56, %v3082_v9  ;;  %v3081_v54 = vmax.f32 %v3045_v29, 0.0  ;;  %v6840_v28 = vmul.f32 %v7440_v33, %v2550_v57  ;;  %v1485_v50 = vsel %vm1449_vm2, %v6729_v59, %v6693_v51 }
 0x371   : > { %v2746_v53 = vadd.f32 %v6655_v25, %v2341_v37  ;;  %v2942_v61 = vmul.f32 %v7441_v10, %v2550_v57  ;;  %v2977_v26 = vadd.f32 %v2941_v30, %v6677_v41  ;;  %v1648_v13 = vmul.f32 %v5174_v8, %v1484_v21 }
 0x372   : > { %3296 = vmatprep.subr.bf16.mxu1 %v3119_v15  ;;  %v3118_v0 = vpack.c.bf16 %v3099_v18, %v3081_v54  ;;  %v1763_v56 = vmul.f32 %v7434_v40, %v1484_v21  ;;  %v1764_v34 = vmul.f32 %v7434_v40, %v1485_v50  ;;  %v1878_v9 = vmul.f32 %v7436_v14, %v1484_v21 }
 0x373   : > { %v2862_v29 = vadd.f32 %v2826_v36, %v2746_v53  ;;  %v3021_v59 = vmul.f32 %v5601_v20, %v2977_v26  ;;  %v1649_v25 = vmul.f32 %v5174_v8, %v1485_v50  ;;  %v1486_v41 = vsel %vm1449_vm2, %v6693_v51, %v6757_v46  ;;  %v7553_v53 = vld [vmem:[#allocation120_spill] sm:$0xff] }
 0x374   : > { %3297 = vmatpush1.bf16.msra.mxu1 %v3118_v0  ;;  %v1799_v57 = vadd.f32 %v1763_v56, %v1647_v11  ;;  %v1800_v55 = vadd.f32 %v1764_v34, %v1648_v13  ;;  %v1879_v18 = vmul.f32 %v7436_v14, %v1485_v50  ;;  %v1914_v37 = vadd.f32 %v1878_v9, %v1798_v27  ;;  %v2467_v13 = vpop.permute.xlu1 %2466  ;;  %v7555_v34 = vld [vmem:[#allocation122_spill] sm:$0xff] }
 0x375   : > { %v2978_v30 = vadd.f32 %v2942_v61, %v2862_v29  ;;  %v1765_v15 = vmul.f32 %v7434_v40, %v1486_v41  ;;  %v1880_v21 = vmul.f32 %v7436_v14, %v1486_v41  ;;  %v1487_v36 = vsel %vm1449_vm2, %v6757_v46, %v1444_v48  ;;  %v7554_v46 = vld [vmem:[#allocation121_spill] sm:$0xff] }
 0x376   : > { %v1915_v54 = vadd.f32 %v1879_v18, %v1799_v57  ;;  %v2110_v26 = vadd.f32 %v7553_v53, %v1914_v37  ;;  %v1650_v12 = vmul.f32 %v5174_v8, %v1486_v41  ;;  %v1766_v51 = vmul.f32 %v7434_v40, %v1487_v36  ;;  %v7556_v41 = vld [vmem:[#allocation126_spill] sm:$0xff]  ;;  %v7558_v37 = vld [vmem:[#allocation123_spill] sm:$0xff] }
 0x377   : > { %3984 = vmatmul.mubr.msk.bf16.vlgmr.msra.gmra.mrb[24].mxu1 %vm3128_vm4, %v7547_v35  ;;  %v1801_v11 = vadd.f32 %v1765_v15, %v1649_v25  ;;  %v1916_v27 = vadd.f32 %v1880_v21, %v1800_v55  ;;  %v1651_v50 = vmul.f32 %v5174_v8, %v1487_v36  ;;  %v1881_v61 = vmul.f32 %v7436_v14, %v1487_v36  ;;  %v7560_v53 = vld [vmem:[#allocation127_spill] sm:$0xff] }
 0x378   : > { %v3022_v0 = vmul.f32 %v5601_v20, %v2978_v30  ;;  %v2111_v56 = vadd.f32 %v7554_v46, %v1915_v54  ;;  %v2226_v9 = vadd.f32 %v7555_v34, %v2110_v26  ;;  %v1488_v29 = vsel %vm1449_vm2, %v1444_v48, %v1446_v23  ;;  %3410 = vmatprep.mubr.bf16.mxu1 %v7550_v38  ;;  %v7559_v30 = vld [vmem:[#allocation124_spill] sm:$0xff]  ;;  %v7561_v26 = vld [vmem:[#allocation129_spill] sm:$0xff] }
 0x379   : > { %v2112_v57 = vadd.f32 %v7556_v41, %v1916_v27  ;;  %v1917_v18 = vadd.f32 %v1881_v61, %v1801_v11  ;;  %v7557_v25 = vunpack.i.h.bf16 %v7536_v52  ;;  %v1767_v55 = vmul.f32 %v7434_v40, %v1488_v29  ;;  %v6885_v27 = vpop.permute.xlu0 %4201  ;;  %v7562_v52 = vld [vmem:[#allocation125_spill] sm:$0xff] }
 0x37a   : > { %v2227_v15 = vadd.f32 %v7558_v37, %v2111_v56  ;;  %v2342_v21 = vadd.f32 %v7559_v30, %v2226_v9  ;;  %v1802_v36 = vadd.f32 %v1766_v51, %v1650_v12  ;;  %v1882_v54 = vmul.f32 %v7436_v14, %v1488_v29  ;;  %v7563_v9 = vld [vmem:[#allocation128_spill] sm:$0xff]  ;;  %v7564_v51 = vld [vmem:[#allocation130_spill] sm:$0xff] }
 0x37b   : > { %v1489_v8 = vsel %vm1449_vm2, %v1446_v23, %v7557_v25  ;;  %v2228_v48 = vadd.f32 %v7560_v53, %v2112_v57  ;;  %v2113_v46 = vadd.f32 %v7561_v26, %v1917_v18  ;;  %v1803_v34 = vadd.f32 %v1767_v55, %v1651_v50  ;;  %v2469_v50 = vpop.permute.xlu1 %2468  ;;  %v7565_v18 = vld [vmem:[#allocation132_spill] sm:$0xff] }
 0x37c   : > { %v1883_v11 = vmul.f32 %v7436_v14, %v1489_v8  ;;  %v2343_v23 = vadd.f32 %v7562_v52, %v2227_v15  ;;  %v6888_v61 = vadd.f32 %v2711_v45, %v2342_v21  ;;  %v1918_v40 = vadd.f32 %v1882_v54, %v1802_v36  ;;  %v7566_v45 = vld [vmem:[#allocation68_spill] sm:$0xff]  ;;  %v7567_v15 = vld [vmem:[#allocation71_spill] sm:$0xff]  ;;  %v7569_v54 = vld [vmem:[#allocation133_spill] sm:$0xff] }
 0x37d   : > { %v4204_v56 = vunpack.i.h.bf16 %v6885_v27  ;;  %v2344_v12 = vadd.f32 %v7563_v9, %v2228_v48  ;;  %v2229_v29 = vadd.f32 %v7564_v51, %v2113_v46  ;;  %v3048_v57 = vadd.f32 %v5707_v42, %v6740_v44  ;;  %v7568_v21 = vld [vmem:[#allocation131_spill] sm:$0xff]  ;;  %v7570_v44 = vld [vmem:[#allocation42_spill] sm:$0xff] }
 0x37e   : > { %v1919_v41 = vadd.f32 %v1883_v11, %v1803_v34  ;;  %v2114_v14 = vadd.f32 %v7565_v18, %v1918_v40  ;;  %v4203_v25 = vunpack.i.l.bf16 %v6885_v27  ;;  %v3066_v8 = vadd.f32 %v7452_v2, %v3022_v0  ;;  %v7571_v11 = vld [vmem:[#allocation134_spill] sm:$0xff] }
 0x37f   : > { %v3047_v55 = vadd.f32 %v5707_v42, %v7566_v45  ;;  %v2748_v37 = vadd.f32 %v6835_v17, %v2343_v23  ;;  %v6902_v30 = vadd.f32 %v7567_v15, %v2344_v12  ;;  %v2345_v36 = vadd.f32 %v7568_v21, %v2229_v29  ;;  %v7572_v23 = vld [vmem:[#allocation135_spill] sm:$0xff]  ;;  %v7573_v29 = vld [vmem:[#allocation138_spill] sm:$0xff]  ;;  %v7575_v45 = vld [vmem:[#allocation137_spill] sm:$0xff] }
 0x380   : > { %v2115_v53 = vadd.f32 %v7569_v54, %v1919_v41  ;;  %v2230_v48 = vadd.f32 %v7570_v44, %v2114_v14  ;;  %v3084_v26 = vmax.f32 %v3048_v57, 0.0  ;;  %v3102_v46 = vmax.f32 %v3066_v8, 0.0  ;;  %v7574_v57 = vld [vmem:[#allocation136_spill] sm:$0xff]  ;;  %v4197_v14 = vpop.permute.xlu1 %4196 }
 0x381   : > { %v3065_v34 = vadd.f32 %v7452_v2, %v3021_v59  ;;  %v6909_v0 = vadd.f32 %v6749_v32, %v2345_v36  ;;  %v3083_v52 = vmax.f32 %v3047_v55, 0.0  ;;  %v2533_v17 = vsel %vm2516_vm3, %v6644_v4, %v2467_v13 }
 0x382   : > { %v2231_v27 = vadd.f32 %v7571_v11, %v2115_v53  ;;  %v2346_v40 = vadd.f32 %v7572_v23, %v2230_v48  ;;  %v3121_v9 = vpack.c.bf16 %v3102_v46, %v3084_v26  ;;  %v2697_v51 = vmul.f32 %v7504_v39, %v2533_v17  ;;  %v7576_v11 = vld [vmem:[#allocation75_spill] sm:$0xff] }
 0x383   : > { %v3101_v12 = vmax.f32 %v3065_v34, 0.0  ;;  %v2328_v59 = vadd.f32 %v7574_v57, %v6760_v3  ;;  %v2812_v32 = vmul.f32 %v7509_v43, %v2533_v17  ;;  %v2927_v18 = vmul.f32 %v7426_v6, %v2533_v17 }
 0x384   : > { %v2347_v41 = vadd.f32 %v7573_v29, %v2231_v27  ;;  %v2751_v8 = vadd.f32 %v6802_v31, %v2346_v40  ;;  %3337 = vmatprep.subr.bf16.mxu0 %v3121_v9  ;;  %v2329_v55 = vadd.f32 %v7575_v45, %v6780_v5  ;;  %v2534_v15 = vsel %vm2516_vm3, %v2467_v13, %v2469_v50 }
 0x385   : > { %v3120_v4 = vpack.c.bf16 %v3101_v12, %v3083_v52  ;;  %v2733_v21 = vadd.f32 %v2697_v51, %v2328_v59  ;;  %v2848_v36 = vadd.f32 %v2812_v32, %v6746_v47  ;;  %v2698_v54 = vmul.f32 %v7504_v39, %v2534_v15 }
 0x386   : > { %v2813_v3 = vmul.f32 %v7509_v43, %v2534_v15  ;;  %v2963_v53 = vadd.f32 %v2927_v18, %v6752_v63  ;;  %v2928_v44 = vmul.f32 %v7426_v6, %v2534_v15  ;;  %v2752_v31 = vadd.f32 %v6814_v62, %v2347_v41 }
 0x387   : > { %3338 = vmatpush1.bf16.msra.mxu0 %v3120_v4  ;;  %v4199_v48 = vunpack.i.h.bf16 %v4197_v14  ;;  %v2734_v26 = vadd.f32 %v2698_v54, %v2329_v55  ;;  %v2867_v5 = vadd.f32 %v6820_v58, %v2751_v8  ;;  %v4198_v13 = vunpack.i.l.bf16 %v4197_v14 }
 0x388   : > { %v2849_v46 = vadd.f32 %v2813_v3, %v2733_v21  ;;  %v2964_v34 = vadd.f32 %v2928_v44, %v2848_v36  ;;  %v2864_v27 = vadd.f32 %v7576_v11, %v2748_v37  ;;  %v3007_v51 = vmul.f32 %v7435_v1, %v2963_v53  ;;  %v7578_v36 = vld [vmem:[#allocation73_spill] sm:$0xff] }
 0x389   : > { %v2555_v47 = vsel %vm2516_vm3, %v6769_v19, %v4199_v48  ;;  %v2556_v39 = vsel %vm2516_vm3, %v4199_v48, %v4204_v56  ;;  %v2535_v58 = vsel %vm2516_vm3, %v2469_v50, %v4198_v13  ;;  %v2536_v23 = vsel %vm2516_vm3, %v4198_v13, %v4203_v25 }
 0x38a   : > { %3985 = vmatmul.mubr.msk.bf16.vlgmr.msra.gmra.mrb[28].mxu0 %vm3128_vm4, %v7547_v35  ;;  %v2832_v63 = vmul.f32 %v7440_v33, %v2555_v47  ;;  %v2947_v62 = vmul.f32 %v7441_v10, %v2555_v47  ;;  %v2948_v52 = vmul.f32 %v7441_v10, %v2556_v39  ;;  %v3008_v17 = vmul.f32 %v7435_v1, %v2964_v34 }
 0x38b   : > { %v2814_v19 = vmul.f32 %v7509_v43, %v2535_v58  ;;  %v2929_v56 = vmul.f32 %v7426_v6, %v2535_v58  ;;  %3451 = vmatprep.mubr.bf16.mxu0 %v7550_v38  ;;  %v2930_v33 = vmul.f32 %v7426_v6, %v2536_v23  ;;  %v2980_v40 = vadd.f32 %v6775_v22, %v2864_v27  ;;  %v7577_v22 = vld [vmem:[#allocation72_spill] sm:$0xff] }
 0x38c   : > { %v2868_v37 = vadd.f32 %v2832_v63, %v2752_v31  ;;  %v2983_v35 = vadd.f32 %v2947_v62, %v2867_v5  ;;  %v3050_v50 = vadd.f32 %v5707_v42, %v6772_v60  ;;  %v2863_v25 = vadd.f32 %v6840_v28, %v6888_v61 }
 0x38d   : > { %v2850_v9 = vadd.f32 %v2814_v19, %v2734_v26  ;;  %v2965_v12 = vadd.f32 %v2929_v56, %v2849_v46  ;;  %v2946_v43 = vmul.f32 %v7441_v10, %v6793_v7  ;;  %v3024_v41 = vmul.f32 %v5601_v20, %v2980_v40 }
 0x38e   : > { %v2984_v29 = vadd.f32 %v2948_v52, %v2868_v37  ;;  %v3027_v6 = vmul.f32 %v5601_v20, %v2983_v35  ;;  %v2979_v59 = vadd.f32 %v7577_v22, %v2863_v25  ;;  %v3049_v32 = vadd.f32 %v5707_v42, %v6744_v49  ;;  %v4213_v52 = vld [vmem:[#allocation13] sm:$0xf] }
 0x38f   : > { %v2966_v57 = vadd.f32 %v2930_v33, %v2850_v9  ;;  %v3009_v60 = vmul.f32 %v7435_v1, %v2965_v12  ;;  %v3068_v28 = vadd.f32 %v7452_v2, %v3024_v41  ;;  %v3086_v61 = vmax.f32 %v3050_v50, 0.0 }
 0x390   : > { %v2866_v10 = vadd.f32 %v6805_v16, %v6909_v0  ;;  %v3023_v7 = vmul.f32 %v5601_v20, %v2979_v59  ;;  %v3052_v18 = vadd.f32 %v5707_v42, %v3008_v17  ;;  %v2865_v14 = vadd.f32 %v6755_v24, %v6902_v30 }
 0x391   : > { %v3010_v8 = vmul.f32 %v7435_v1, %v2966_v57  ;;  %v3104_v4 = vmax.f32 %v3068_v28, 0.0  ;;  %v3051_v49 = vadd.f32 %v5707_v42, %v3007_v51  ;;  %v3028_v55 = vmul.f32 %v5601_v20, %v2984_v29  ;;  %v6988_v29 = vpop.permute.xlu1 %3502 }
 0x392   : > { %v2982_v45 = vadd.f32 %v2946_v43, %v2866_v10  ;;  %v3067_v15 = vadd.f32 %v7452_v2, %v3023_v7  ;;  %v3085_v21 = vmax.f32 %v3049_v32, 0.0  ;;  %v2981_v16 = vadd.f32 %v7578_v36, %v2865_v14  ;;  %v6993_v32 = vpop.permute.xlu0 %3524  ;;  %v7580_v14 = vld [vmem:[#allocation25_spill] sm:$0xff] }
 0x393   : > { %v3054_v0 = vadd.f32 %v5707_v42, %v3010_v8  ;;  %v3123_v54 = vpack.c.bf16 %v3104_v4, %v3086_v61  ;;  %v3072_v24 = vadd.f32 %v7452_v2, %v3028_v55  ;;  %v3053_v1 = vadd.f32 %v5707_v42, %v3009_v60  ;;  %v7581_v4 = vld [vmem:[#allocation27_spill] sm:$0xff]  ;;  %v7582_v55 = vld [vmem:[#allocation26_spill] sm:$0xff] }
 0x394   : > { %v3026_v3 = vmul.f32 %v5601_v20, %v2982_v45  ;;  %v3103_v30 = vmax.f32 %v3067_v15, 0.0  ;;  %v3025_v53 = vmul.f32 %v5601_v20, %v2981_v16  ;;  %v3071_v31 = vadd.f32 %v7452_v2, %v3027_v6 }
 0x395   : > { %v3090_v44 = vmax.f32 %v3054_v0, 0.0  ;;  %3378 = vmatprep.subr.bf16.mxu1 %v3123_v54  ;;  %v3088_v26 = vmax.f32 %v3052_v18, 0.0  ;;  %v3087_v46 = vmax.f32 %v3051_v49, 0.0  ;;  %v3108_v5 = vmax.f32 %v3072_v24, 0.0 }
 0x396   : > { %v3070_v48 = vadd.f32 %v7452_v2, %v3026_v3  ;;  %v3122_v13 = vpack.c.bf16 %v3103_v30, %v3085_v21  ;;  %v3069_v34 = vadd.f32 %v7452_v2, %v3025_v53  ;;  %v3089_v47 = vmax.f32 %v3053_v1, 0.0  ;;  %v7583_v3 = vld [vmem:[#allocation28_spill] sm:$0xff]  ;;  %v7584_v30 = vld [vmem:[#allocation29_spill] sm:$0xff] }
 0x397   : > { %v3107_v39 = vmax.f32 %v3071_v31, 0.0  ;;  %v3127_v27 = vpack.c.bf16 %v3108_v5, %v3090_v44  ;;  %v7579_v58 = vmov 0.0  }
 0x398   : > { %v3106_v11 = vmax.f32 %v3070_v48, 0.0  ;;  %3379 = vmatpush1.bf16.msra.mxu1 %v3122_v13  ;;  %v3105_v42 = vmax.f32 %v3069_v34, 0.0  ;;  %v7585_v13 = vld [vmem:[#allocation33_spill] sm:$0xff] }
 0x399   : > { %3460 = vmatprep.subr.bf16.mxu1 %v3127_v27  ;;  %v3126_v62 = vpack.c.bf16 %v3107_v39, %v3089_v47  ;;  %v7586_v27 = vld [vmem:[#allocation30_spill] sm:$0xff] }
 0x39a   : > { %v3125_v63 = vpack.c.bf16 %v3106_v11, %v3088_v26  ;;  %v3124_v20 = vpack.c.bf16 %v3105_v42, %v3087_v46 }
 0x39b   : > { %3986 = vmatmul.mubr.msk.bf16.vlgmr.msra.gmra.mrb[28].mxu1 %vm3128_vm4, %v4213_v52 }
 0x39c   : > { %3419 = vmatprep.subr.bf16.mxu0 %v3125_v63  ;;  %3461 = vmatpush1.bf16.msra.mxu1 %v3126_v62 }
 0x39d   : > { %3420 = vmatpush1.bf16.msra.mxu0 %v3124_v20  ;;  %3492 = vmatprep.mubr.bf16.mxu1 %v7550_v38 }
 0x39e   : > { %4002 = vmatprep.subr.mxu0 %v7579_v58  ;;  %4007 = vmatprep.subr.mxu1 %v7579_v58 }
 0x3a0   : > { %3987 = vmatmul.mubr.msk.bf16.vlgmr.msra.gmra.mrb[32].mxu0 %vm3128_vm4, %v4213_v52 }
 0x3a1   : > { %4004 = vmatprep.mubr.msk.f32.mxu0 %vm4550_vm5, %v7579_v58 }
 0x3a3   : > { %3988 = vmatmul.mubr.msk.bf16.vlgmr.msra.gmra.mrb[32].mxu1 %vm3128_vm4, %v4213_v52 }
 0x3a4   : > { %4009 = vmatprep.mubr.msk.f32.mxu1 %vm4550_vm5, %v7579_v58 }
 0x3ef   : > { %v3166_v2 = vpop.f32.mrb[16].mxu1 }
 0x3f0   : > { %v3168_v17 = vpop.f32.mrb[17].mxu1  ;;  %v3505_v41 = vmul.f32 %v6988_v29, %v3166_v2 }
 0x3f1   : > { %v3170_v23 = vpop.f32.mrb[18].mxu1  ;;  %v3506_v6 = vmul.f32 %v6988_v29, %v3168_v17 }
 0x3f2   : > { %v3171_v19 = vpop.f32.mrb[19].mxu1  ;;  %v6996_v28 = vadd.f32 %v6993_v32, %v3505_v41  ;;  %v7587_v23 = vld [vmem:[#allocation31_spill] sm:$0xff] }
 0x3f3   : > { %v6999_v61 = vadd.f32 %v6993_v32, %v3506_v6 }
 0x3f4   : > { %v3545_v8 = vmul.f32 %v6996_v28, %v7580_v14 }
 0x3f5   : > { %v3546_v45 = vmul.f32 %v6999_v61, %v7581_v4 }
 0x3f7   : > { %v3563_v36 = vadd.f32 %v3546_v45, %v3545_v8 }
 0x40b   : > { %v3207_v56 = vpop.f32.mrb[20].mxu0 }
 0x40c   : > { %v3209_v37 = vpop.f32.mrb[21].mxu0  ;;  %v3507_v22 = vmul.f32 %v6988_v29, %v3207_v56 }
 0x40d   : > { %v3211_v35 = vpop.f32.mrb[22].mxu0  ;;  %v3508_v18 = vmul.f32 %v6988_v29, %v3209_v37  ;;  %v7588_v37 = vld [vmem:[#allocation39_spill] sm:$0xff] }
 0x40e   : > { %v3212_v33 = vpop.f32.mrb[23].mxu0  ;;  %v7002_v7 = vadd.f32 %v6993_v32, %v3507_v22 }
 0x40f   : > { %v7013_v21 = vadd.f32 %v6993_v32, %v3508_v18 }
 0x410   : > { %v3547_v15 = vmul.f32 %v7002_v7, %v7582_v55 }
 0x411   : > { %v3548_v24 = vmul.f32 %v7013_v21, %v7583_v3 }
 0x412   : > { %v3564_v54 = vadd.f32 %v3563_v36, %v3547_v15  ;;  %v7592_v36 = vld [vmem:[#allocation52_spill] sm:$0xff] }
 0x414   : > { %v3565_v31 = vadd.f32 %v3564_v54, %v3548_v24  ;;  %v7593_v24 = vld [vmem:[#allocation57_spill] sm:$0xff] }
 0x41b   : > { %v3248_v40 = vpop.f32.mrb[20].mxu1 }
 0x41c   : > { %v3250_v9 = vpop.f32.mrb[21].mxu1  ;;  %v3509_v49 = vmul.f32 %v6988_v29, %v3248_v40 }
 0x41d   : > { %v3252_v12 = vpop.f32.mrb[22].mxu1  ;;  %v3510_v0 = vmul.f32 %v6988_v29, %v3250_v9 }
 0x41e   : > { %v3253_v38 = vpop.f32.mrb[23].mxu1  ;;  %v7016_v16 = vadd.f32 %v6993_v32, %v3509_v49 }
 0x41f   : > { %v7025_v44 = vadd.f32 %v6993_v32, %v3510_v0 }
 0x420   : > { %v3549_v53 = vmul.f32 %v7016_v16, %v7584_v30 }
 0x421   : > { %v3550_v34 = vmul.f32 %v7025_v44, %v7585_v13 }
 0x422   : > { %v3566_v5 = vadd.f32 %v3565_v31, %v3549_v53 }
 0x424   : > { %v3567_v62 = vadd.f32 %v3566_v5, %v3550_v34 }
 0x43d   : > { %v3289_v50 = vpop.f32.mrb[24].mxu0 }
 0x43e   : > { %v3291_v25 = vpop.f32.mrb[25].mxu0  ;;  %v3511_v1 = vmul.f32 %v6988_v29, %v3289_v50  ;;  %v7589_v50 = vld [vmem:[#allocation45_spill] sm:$0xff] }
 0x43f   : > { %v3293_v43 = vpop.f32.mrb[26].mxu0  ;;  %v3512_v26 = vmul.f32 %v6988_v29, %v3291_v25 }
 0x440   : > { %v3294_v51 = vpop.f32.mrb[27].mxu0  ;;  %v7028_v48 = vadd.f32 %v6993_v32, %v3511_v1  ;;  %v7590_v43 = vld [vmem:[#allocation37_spill] sm:$0xff] }
 0x441   : > { %v7037_v63 = vadd.f32 %v6993_v32, %v3512_v26 }
 0x442   : > { %v3551_v42 = vmul.f32 %v7028_v48, %v7586_v27 }
 0x443   : > { %v3552_v19 = vmul.f32 %v7037_v63, %v7587_v23 }
 0x444   : > { %v3568_v17 = vadd.f32 %v3567_v62, %v3551_v42  ;;  %v7595_v42 = vld [vmem:[#allocation58_spill] sm:$0xff] }
 0x446   : > { %v3569_v40 = vadd.f32 %v3568_v17, %v3552_v19 }
 0x44a   : > { %v3330_v57 = vpop.f32.mrb[24].mxu1 }
 0x44b   : > { %v3332_v59 = vpop.f32.mrb[25].mxu1  ;;  %v3513_v47 = vmul.f32 %v6988_v29, %v3330_v57 }
 0x44c   : > { %v3334_v60 = vpop.f32.mrb[26].mxu1  ;;  %v3514_v2 = vmul.f32 %v6988_v29, %v3332_v59  ;;  %v7591_v59 = vld [vmem:[#allocation44_spill] sm:$0xff] }
 0x44d   : > { %v3335_v10 = vpop.f32.mrb[27].mxu1  ;;  %v7040_v52 = vadd.f32 %v6993_v32, %v3513_v47  ;;  %v7594_v47 = vld [vmem:[#allocation54_spill] sm:$0xff] }
 0x44e   : > { %v7049_v33 = vadd.f32 %v6993_v32, %v3514_v2 }
 0x44f   : > { %v3553_v35 = vmul.f32 %v7040_v52, %v7588_v37 }
 0x450   : > { %v3554_v25 = vmul.f32 %v7049_v33, %v7589_v50 }
 0x451   : > { %v3570_v38 = vadd.f32 %v3569_v40, %v3553_v35  ;;  %v7596_v35 = vld [vmem:[#allocation59_spill] sm:$0xff] }
 0x453   : > { %v3571_v6 = vadd.f32 %v3570_v38, %v3554_v25 }
 0x45d   : > { %v3371_v46 = vpop.f32.mrb[28].mxu0 }
 0x45e   : > { %v3373_v39 = vpop.f32.mrb[29].mxu0  ;;  %v3515_v56 = vmul.f32 %v6988_v29, %v3371_v46 }
 0x45f   : > { %v3375_v11 = vpop.f32.mrb[30].mxu0  ;;  %v3516_v12 = vmul.f32 %v6988_v29, %v3373_v39 }
 0x460   : > { %v3376_v20 = vpop.f32.mrb[31].mxu0  ;;  %v7052_v9 = vadd.f32 %v6993_v32, %v3515_v56 }
 0x461   : > { %v7060_v41 = vadd.f32 %v6993_v32, %v3516_v12  ;;  %v7597_v12 = vld [vmem:[#allocation60_spill] sm:$0xff] }
 0x462   : > { %v3555_v51 = vmul.f32 %v7052_v9, %v7590_v43 }
 0x463   : > { %v3556_v60 = vmul.f32 %v7060_v41, %v7591_v59 }
 0x464   : > { %v3572_v22 = vadd.f32 %v3571_v6, %v3555_v51  ;;  %v3583_v51 = vld [vmem:[#allocation15] sm:$0x3] }
 0x466   : > { %v3573_v15 = vadd.f32 %v3572_v22, %v3556_v60 }
 0x46e   : > { %v3412_v57 = vpop.f32.mrb[28].mxu1 }
 0x46f   : > { %v3517_v10 = vmul.f32 %v6988_v29, %v3412_v57  ;;  %v3414_v18 = vpop.f32.mrb[29].mxu1 }
 0x470   : > { %v3518_v14 = vmul.f32 %v6988_v29, %v3414_v18  ;;  %v3416_v8 = vpop.f32.mrb[30].mxu1 }
 0x471   : > { %v7067_v4 = vadd.f32 %v6993_v32, %v3517_v10  ;;  %v3417_v45 = vpop.f32.mrb[31].mxu1  ;;  %v3662_v10 = vld [vmem:[#allocation16] sm:$0xff] }
 0x472   : > { %v7070_v49 = vadd.f32 %v6993_v32, %v3518_v14 }
 0x473   : > { %v3453_v55 = vpop.f32.mrb[32].mxu0  ;;  %v3557_v0 = vmul.f32 %v7067_v4, %v7592_v36 }
 0x474   : > { %v3519_v54 = vmul.f32 %v6988_v29, %v3453_v55  ;;  %v3455_v3 = vpop.f32.mrb[33].mxu0  ;;  %v3558_v1 = vmul.f32 %v7070_v49, %v7593_v24 }
 0x475   : > { %v3520_v30 = vmul.f32 %v6988_v29, %v3455_v3  ;;  %v3457_v53 = vpop.f32.mrb[34].mxu0  ;;  %v3574_v31 = vadd.f32 %v3573_v15, %v3557_v0 }
 0x476   : > { %v7079_v26 = vadd.f32 %v6993_v32, %v3519_v54  ;;  %v3458_v46 = vpop.f32.mrb[35].mxu0  ;;  %v3494_v13 = vpop.f32.mrb[32].mxu1 }
 0x477   : > { %v7082_v5 = vadd.f32 %v6993_v32, %v3520_v30  ;;  %v3575_v34 = vadd.f32 %v3574_v31, %v3558_v1  ;;  %v3521_v11 = vmul.f32 %v6988_v29, %v3494_v13  ;;  %v3496_v27 = vpop.f32.mrb[33].mxu1 }
 0x478   : > { %v3559_v39 = vmul.f32 %v7079_v26, %v7594_v47  ;;  %v3522_v62 = vmul.f32 %v6988_v29, %v3496_v27  ;;  %v3498_v2 = vpop.f32.mrb[34].mxu1  ;;  %v4214_v29 = vld [vmem:[#allocation9] sm:$0xff] }
 0x479   : > { %v3560_v20 = vmul.f32 %v7082_v5, %v7595_v42  ;;  %v7091_v23 = vadd.f32 %v6993_v32, %v3521_v11  ;;  %v3499_v19 = vpop.f32.mrb[35].mxu1  ;;  %3584 = vrot.lane.b32.xlu0 %v4214_v29, %s4551_s22 }
 0x47a   : > { %v3576_v17 = vadd.f32 %v3575_v34, %v3559_v39  ;;  %v7094_v56 = vadd.f32 %v6993_v32, %v3522_v62 }
 0x47b   : > { %v3561_v40 = vmul.f32 %v7091_v23, %v7596_v35 }
 0x47c   : > { %v3577_v37 = vadd.f32 %v3576_v17, %v3560_v20  ;;  %v3562_v38 = vmul.f32 %v7094_v56, %v7597_v12 }
 0x47d   : > { %3663 = vrot.lane.b32.xlu0 %v4214_v29, %s4552_s9 }
 0x47e   : > { %v3578_v50 = vadd.f32 %v3577_v37, %v3561_v40 }
 0x480   : > { %v3579_v25 = vadd.f32 %v3578_v50, %v3562_v38 }
 0x482   : > { %3580 = vadd.xlane.f32.xlu1 %v3579_v25 }
 0x4eb   : > { %v3585_v6 = vpop.permute.xlu0 %3584 }
 0x4ef   : > { %v3664_v58 = vpop.permute.xlu0 %3663 }
 0x50f   : > { %v3581_v32 = vpop.xlane.xlu1 %3580 }
 0x510   : > { %v3582_v43 = vmul.f32 0.00390625, %v3581_v32 }
 0x512   : > { %4003 = vmatpush3.msra.mxu0 %v3582_v43 }
 0x513   : > { %4005 = vmatmul.mubr.msk.f32.vlgmr.msra.gmra.mrb[36].mxu0 %vm3587_vm6, %v3583_v51 }
 0x5e6   : > { %v3657_v57 = vpop.f32.mrb[36].mxu0 }
 0x5e7   : > { %v3658_v22 = vadd.f32 %v3657_v57, %v3585_v6  ;;  %v4006_v59 = vpop.f32.mrb[37].mxu0 }
 0x5e9   : > { %v3661_v60 = vmax.f32 %v3658_v22, 0.0 }
 0x5eb   : > { %4008 = vmatpush3.msk.msra.mxu1 %vm539_vm0, %v3661_v60 }
 0x5ec   : > { %4010 = vmatmul.mubr.msk.f32.vlgmr.msra.gmra.mrb[36].mxu1 %vm3666_vm7, %v3662_v10 }
 0x6bf   : > { %v3739_v18 = vpop.f32.mrb[36].mxu1 }
 0x6c0   : > { %v3740_v14 = vadd.f32 %v3739_v18, %v3664_v58  ;;  %v4011_v8 = vpop.f32.mrb[37].mxu1 }
 0x6c2   : > { %v3992_v45 = vmul.f32 -1.442695, %v3740_v14 }
 0x6c4   : > { %4208 = vpow2.f32 %v3992_v45 }
 0x6ce   : > { %v4209_v55 = vpop.eup %4208 }
 0x6cf   : > { %v3746_v15 = vadd.f32 1.0, %v4209_v55 }
 0x6d1   : > { %4210 = vrcp.f32 %v3746_v15 }
 0x6db   : > { %v4211_v36 = vpop.eup %4210 }
 0x6dc   : > { %3751 = vperm.xlu0 %4206, %v4211_v36  }
 0x75b   : > { %v3752_v0 = vpop.permute.xlu0 %3751 }
 0x75c   : > { %v3754_v54 = vmul.f32 %v3752_v0, %v6996_v28  ;;  %v3755_v3 = vmul.f32 %v3752_v0, %v6999_v61  ;;  %v3756_v24 = vmul.f32 %v3752_v0, %v7002_v7  ;;  %v3757_v1 = vmul.f32 %v3752_v0, %v7013_v21 }
 0x75d   : > { %v3758_v30 = vmul.f32 %v3752_v0, %v7016_v16  ;;  %v3759_v53 = vmul.f32 %v3752_v0, %v7025_v44  ;;  %v3760_v31 = vmul.f32 %v3752_v0, %v7028_v48  ;;  %v3761_v46 = vmul.f32 %v3752_v0, %v7037_v63 }
 0x75e   : > { %v3762_v28 = vmul.f32 %v3752_v0, %v7040_v52  ;;  %v3763_v61 = vmul.f32 %v3752_v0, %v7049_v33  ;;  %v3764_v7 = vmul.f32 %v3752_v0, %v7052_v9  ;;  %v3765_v21 = vmul.f32 %v3752_v0, %v7060_v41  ;;  %3772 = vst [vmem:[%s7113_s18] sm:$0xff] %v3754_v54 }
 0x75f   : > { %3773 = vst [vmem:[%s7113_s18 + $0x8] sm:$0xff] %v3755_v3  ;;  %3774 = vst [vmem:[%s7113_s18 + $0x10] sm:$0xff] %v3756_v24  ;;  %v3766_v16 = vmul.f32 %v3752_v0, %v7067_v4  ;;  %v3767_v44 = vmul.f32 %v3752_v0, %v7070_v49  ;;  %v3768_v48 = vmul.f32 %v3752_v0, %v7079_v26 }
 0x760   : > { %3775 = vst [vmem:[%s7113_s18 + $0x18] sm:$0xff] %v3757_v1  ;;  %v3769_v63 = vmul.f32 %v3752_v0, %v7082_v5  ;;  %3776 = vst [vmem:[%s7113_s18 + $0x20] sm:$0xff] %v3758_v30  ;;  %v3770_v52 = vmul.f32 %v3752_v0, %v7091_v23  ;;  %v3771_v33 = vmul.f32 %v3752_v0, %v7094_v56 }
 0x761   : > { %3777 = vst [vmem:[%s7113_s18 + $0x28] sm:$0xff] %v3759_v53  ;;  %3778 = vst [vmem:[%s7113_s18 + $0x30] sm:$0xff] %v3760_v31 }
 0x762   : > { %3779 = vst [vmem:[%s7113_s18 + $0x38] sm:$0xff] %v3761_v46  ;;  %3780 = vst [vmem:[%s7113_s18 + $0x40] sm:$0xff] %v3762_v28 }
 0x763   : > { %3781 = vst [vmem:[%s7113_s18 + $0x48] sm:$0xff] %v3763_v61  ;;  %3782 = vst [vmem:[%s7113_s18 + $0x50] sm:$0xff] %v3764_v7 }
 0x764   : > { %3783 = vst [vmem:[%s7113_s18 + $0x58] sm:$0xff] %v3765_v21  ;;  %3784 = vst [vmem:[%s7113_s18 + $0x60] sm:$0xff] %v3766_v16 }
 0x765   : > { %3785 = vst [vmem:[%s7113_s18 + $0x68] sm:$0xff] %v3767_v44  ;;  %3786 = vst [vmem:[%s7113_s18 + $0x70] sm:$0xff] %v3768_v48 }
 0x766   : > { %3787 = vst [vmem:[%s7113_s18 + $0x78] sm:$0xff] %v3769_v63  ;;  %3788 = vst [vmem:[%s7113_s18 + $0x80] sm:$0xff] %v3770_v52 }
 0x767   : > { %3789 = vst [vmem:[%s7113_s18 + $0x88] sm:$0xff] %v3771_v33 }
 0x768   : > { %4454 = shalt.err (!%p4451_p0)
}
 0x769   : > { %s4455_s2 = scalar_lea.hbm %s7143_s1, 2304  ;;  %s4459_s9 = scalar_lea.hbm %s7201_s8, 4608 }
 0x76a   : > { %p4456_p2 = scmp.ne.s32.totalorder %s7143_s1, %s4455_s2  ;;  %p4460_p12 = scmp.lt.u32.totalorder %s7143_s1, %s7201_s8 }
 0x76b   : > { %p4461_p11 = scmp.lt.u32.totalorder %s4459_s9, %s4455_s2  ;;  %p4463_p5 = scmp.lt.u32.totalorder %s4455_s2, %s7143_s1 }
 0x76c   : > { %p4457_p8 = pnand %p4456_p2, %p7598_p7 }
 0x76d   : > { %p4462_p13 = por %p4461_p11, %p4460_p12 }
 0x76e   : > { %p4458_p10 = pneg %p4457_p8 }
 0x76f   : > { %p4464_p4 = por %p4463_p5, %p4462_p13 }
 0x771   : > { %p4465_p1 = pnand %p4464_p4, %p4458_p10 }
 0x773   : > { %4468 = shalt.err (!%p4465_p1)
}
 0x774   : > { %4045 = dma.vmem_to_hbm [thread:$0]  (%p7598_p7), %s7145_s19, 2304, %s7143_s1, %s3791_s13  }
 0x775 PF: > { %s3817_s18 = sand.u32 1, %s4511_s27   ;;  %p7599_p3 = scmp.ne.s32.totalorder %s7277_s20, 0 }
 0x776   : > { %p7600_p9 = scmp.ge.s32.totalorder %s4523_s30, 2  ;;  %s3818_s21 = scalar_lea.sflag [#allocation6], %s3817_s18 }
 0x778   : > { %p4074_p6 = pnand %p7600_p9, %p7599_p3 }
 0x77a   : > { %4506 = dma.done.wait (!%p4074_p6), %s3818_s21, 2304  }
 0x77b   : > { %4508 = vsyncadd (!%p4074_p6), %s3818_s21, 4294964992  ;;  %p25_p0 = scmp.ge.s32.totalorder %s4793_s15, 4   ;;  %s7601_s27 = smov %s4515_s28 }
 0x77c   : > { %s7602_s28 = smov %s4519_s29  ;;  %s7603_s29 = smov %s4805_s25 }
 0x77d   : > { %s7604_s30 = smov %s4793_s15  ;;  %27 = sbr.rel (!%p25_p0) target bundleno = 12 (0xc), region = 125 }
 0x784   :  { %3823 = vsyncpa [#allocation5], 1 }
 0x785   :  { %3825 = vsyncpa [#allocation5 + $0x1], 1 }
 0x786   :  { %3826 = vsyncpa [#allocation8], 1 }
 0x787   :  { %3827 = vsyncpa [#allocation11], 1 }
 0x788   :  { %3828 = vsyncpa [#allocation14], 1 }
 0x789   :  { %3829 = vsyncpa [#allocation17], 1 }
 0x78a   :  { %3830 = vsyncpa [#allocation6], 1 }
 0x78b   :  { %3832 = vsyncpa [#allocation6 + $0x1], 1 }

</bundles_post_ra>
